<compile_context>
chip_gen: v7x
topology: tpu7x:2x2x1
jax: 0.10.0
libtpu: 0.0.40
codegen_flags: <defaults>
</compile_context>

<pallas_src>
import functools

import jax
import jax.numpy as jnp
from jax.experimental import pallas as pl
from jax.experimental.pallas import tpu as pltpu


def _round_up(x, m):
    return (x + m - 1) // m * m


# ----------------------------------------------------------------------------
# Geometry of the stacked flat raster
# ----------------------------------------------------------------------------
# nb images of a grid block are stacked vertically into one zero-padded raster of
# (nb*(H+2)) x (W+2), flattened on the lane axis.  The conv-output slab index q is the
# flat raster index of the 3x3 window's top-left corner; its value is written back at
# raster index q + (W+2) + 1 (the window center).  HEAD is chosen so that the writable
# slab starts at a multiple of 128 lanes.
def _geometry(nb, H, W):
    Hp, Wp = H + 2, W + 2
    ghp = nb * Hp                       # stacked padded rows
    gs = ghp * Wp                       # stacked raster length
    head = (-(Wp + 1)) % 128            # front pad so that head + Wp + 1 is 128-aligned
    offstore = head + Wp + 1            # lane where the writable slab starts (mult 128)
    q_need = (ghp - 3) * Wp + W         # one past the last real pixel's slab index
    qp = _round_up(q_need, 128)         # lane-dense slab length
    sp_total = _round_up(
        max(offstore + qp, head + 2 * Wp + 2 + qp, head + gs), 128)
    return Hp, Wp, ghp, gs, head, offstore, q_need, qp, sp_total


def _pick_images_per_block(N, c_total, H, W, budget_bytes=2 << 20):
    """Largest divisor of N whose f32 feature scratch stays under budget."""
    best = 1
    for nb in range(1, N + 1):
        if N % nb:
            continue
        sp_total = _geometry(nb, H, W)[-1]
        if c_total * sp_total * 4 <= budget_bytes:
            best = nb
    return best


# ----------------------------------------------------------------------------
# Fused subDenseNet Pallas kernel (one grid step = nb batch images)
# ----------------------------------------------------------------------------
def _subdensenet_kernel(x_ref, valid_ref, w_ref, b_ref, o_ref, feat_ref, *,
                        fnum, growth, n_dense, out_ch, cin, kmax,
                        Wp, qp, head, offstore, sp_total, row_offs):
    c_total = fnum + growth * n_dense
    offs = tuple(dh * Wp + dw for dh in range(3) for dw in range(3))

    # Zero ONLY the lane ranges that the per-layer masked slab stores never touch
    # (top halo + alignment pad, and the tail past the slab); done every grid step so
    # it stays correct when the batch axis is megacore-split.
    feat_ref[:, 0:offstore] = jnp.zeros((c_total, offstore), jnp.float32)
    tail = sp_total - (offstore + qp)
    if tail > 0:
        feat_ref[:, offstore + qp:sp_total] = jnp.zeros((c_total, tail), jnp.float32)

    # Hoisted constants (JAX does not CSE broadcast_in_dim).
    cmax = max(fnum, growth, 1)
    vbig = jnp.broadcast_to(valid_ref[...], (cmax, qp))      # (cmax, qp) f32 0/1 mask
    wv = w_ref[...]                                          # (TOTC, 9*kmax) bf16
    bv = b_ref[...]                                          # (TOTC, 1)      f32
    xv = x_ref[0]                                            # (cin, sp_total) f32
    xv_bf = xv.astype(jnp.bfloat16)

    def conv3x3(read_tap, lidx, cout, cin_l, relu):
        # 9 accumulated MXU dots (K = cin_l each); no im2col temp is materialized.
        r0 = row_offs[lidx]
        acc = None
        for t, o in enumerate(offs):
            lhs = wv[r0:r0 + cout, t * kmax:t * kmax + cin_l]       # (cout, cin_l) bf16
            rhs = read_tap(o)                                       # (cin_l, qp)   bf16
            d = jnp.dot(lhs, rhs, preferred_element_type=jnp.float32)
            acc = d if acc is None else acc + d
        acc = acc + bv[r0:r0 + cout, :]
        return jnp.maximum(acc, 0.0) if relu else acc

    # inConv (the PyTorch forward does NOT apply self.activ after inConv).
    y = conv3x3(lambda o: xv_bf[:, head + o:head + o + qp], 0, fnum, cin, relu=False)
    feat_ref[0:fnum, offstore:offstore + qp] = y * vbig[0:fnum]

    # dense block: conv3x3 + ReLU; "channel concat" = write into the next slice.
    for i in range(n_dense):
        cl = fnum + growth * i
        y = conv3x3(
            lambda o, cl=cl: feat_ref[0:cl, head + o:head + o + qp].astype(jnp.bfloat16),
            1 + i, growth, cl, relu=True)
        feat_ref[cl:cl + growth, offstore:offstore + qp] = y * vbig[0:growth]

    # outConv (conv3x3 + ReLU) + residual of the subnet input.  Invalid lanes are
    # discarded by the wrapper slice, so no mask on the final store.
    y = conv3x3(
        lambda o: feat_ref[0:c_total, head + o:head + o + qp].astype(jnp.bfloat16),
        n_dense + 1, out_ch, c_total, relu=True)
    o_ref[0] = y + xv[0:out_ch, offstore:offstore + qp]


def _pack_weights(layers, kmax):
    """Pack all HWIO conv weights into one bf16 (TOTC, 9*kmax) slab + one f32 bias slab."""
    w_rows, b_rows, row_offs = [], [], []
    r = 0
    for (w, b) in layers:
        _, _, ci, co = w.shape
        row_offs.append(r)
        wm = jnp.transpose(w, (3, 0, 1, 2)).reshape(co, 9, ci)      # (Cout, tap, Cin)
        wm = jnp.pad(wm, ((0, 0), (0, 0), (0, kmax - ci))).reshape(co, 9 * kmax)
        w_rows.append(wm)
        b_rows.append(b.reshape(co, 1))
        r += co
    wpack = jnp.concatenate(w_rows, axis=0).astype(jnp.bfloat16)
    bpack = jnp.concatenate(b_rows, axis=0).astype(jnp.float32)
    return wpack, bpack, tuple(row_offs)


def subdensenet_apply(p, x):
    """Fused subDenseNet forward.  x: (N, Cin, H, W) f32 -> (N, Cout, H, W) f32."""
    N, cin, H, W = x.shape
    fnum = p["inConv"][0].shape[-1]
    n_dense = len(p["dense"])
    growth = p["dense"][0][0].shape[-1] if n_dense else 0
    out_ch = p["outConv"][0].shape[-1]
    c_total = fnum + growth * n_dense

    nb = _pick_images_per_block(N, c_total, H, W)
    NB = N // nb
    Hp, Wp, ghp, gs, head, offstore, q_need, qp, sp_total = _geometry(nb, H, W)

    # Stacked, zero-padded, lane-aligned flat input raster (wrapper-side plumbing).
    xpad = jnp.pad(x, ((0, 0), (0, 0), (1, 1), (1, 1)))              # (N,cin,Hp,Wp)
    xpad = xpad.reshape(NB, nb, cin, Hp, Wp).transpose(0, 2, 1, 3, 4)
    xflat = xpad.reshape(NB, cin, gs)
    xflat = jnp.pad(xflat, ((0, 0), (0, 0), (head, sp_total - head - gs)))

    # Mask of real-pixel slab positions (zeros halo rows, wrap cols, slab tail).
    q = jnp.arange(qp, dtype=jnp.int32)
    qrow, qcol = q // Wp, q % Wp
    valid = ((qcol < W) & ((qrow % Hp) < H) & (q < q_need)).astype(jnp.float32)
    valid = valid.reshape(1, qp)

    layers = [p["inConv"]] + list(p["dense"]) + [p["outConv"]]
    kmax = max(w.shape[2] for (w, _) in layers)
    wpack, bpack, row_offs = _pack_weights(layers, kmax)

    kern = functools.partial(
        _subdensenet_kernel, fnum=fnum, growth=growth, n_dense=n_dense,
        out_ch=out_ch, cin=cin, kmax=kmax, Wp=Wp, qp=qp, head=head,
        offstore=offstore, sp_total=sp_total, row_offs=row_offs)

    # Only override the generation-dependent scoped-VMEM default when actually needed.
    need = (c_total * sp_total * 4
            + 2 * 4 * (cin * sp_total + out_ch * qp + qp)
            + wpack.size * 2 + bpack.size * 4)
    vmem_limit = None
    if need > (8 << 20):
        vmem_limit = int(min(max(2 * need, 16 << 20), 64 << 20))

    out_flat = pl.pallas_call(
        kern,
        out_shape=jax.ShapeDtypeStruct((NB, out_ch, qp), jnp.float32),
        grid=(NB,),
        in_specs=[
            pl.BlockSpec((1, cin, sp_total), lambda n: (n, 0, 0)),
            pl.BlockSpec((1, qp), lambda n: (0, 0)),
            pl.BlockSpec(wpack.shape, lambda n: (0, 0)),
            pl.BlockSpec(bpack.shape, lambda n: (0, 0)),
        ],
        out_specs=pl.BlockSpec((1, out_ch, qp), lambda n: (n, 0, 0)),
        scratch_shapes=[pltpu.VMEM((c_total, sp_total), jnp.float32)],
        compiler_params=pltpu.CompilerParams(
            dimension_semantics=("parallel",),
            vmem_limit_bytes=vmem_limit),
    )(xflat, valid, wpack, bpack)

    # Slab lane q holds the conv output whose raster center index is q + Wp + 1.
    front = Wp + 1
    if front + qp < gs:
        raster = jnp.pad(out_flat, ((0, 0), (0, 0), (front, gs - front - qp)))
    else:
        raster = jnp.pad(out_flat, ((0, 0), (0, 0), (front, 0)))[..., :gs]
    out = raster.reshape(NB, out_ch, nb, Hp, Wp).transpose(0, 2, 1, 3, 4)
    out = out.reshape(N, out_ch, Hp, Wp)[:, :, 1:1 + H, 1:1 + W]
    return out


# ----------------------------------------------------------------------------
# Static data-consistency layer (plain JAX)
# ----------------------------------------------------------------------------
def data_consistency(x, y, mask, iscale):
    """x: (N,1,H,W) real image, y: (N,H,W,2) sampled k-space, mask: (N,H,W)."""
    # TODO(synk): FFT has no Pallas equivalent; the 3 elementwise mixing ops are left
    # to XLA (a dedicated pallas_call would cost more than the work it does).
    xf = jnp.fft.fft2(x[:, 0].astype(jnp.complex64), axes=(1, 2), norm="ortho")
    yf = y[..., 0] + 1j * y[..., 1]
    of = xf + (yf - xf) * (mask * iscale)
    xo = jnp.fft.ifft2(of, axes=(1, 2), norm="ortho")
    return jnp.real(xo)[:, None].astype(jnp.float32)


# ----------------------------------------------------------------------------
# Parameter construction (deterministic) and network forward
# ----------------------------------------------------------------------------
def _conv_params(key, cin, cout):
    kw, kb = jax.random.split(key)
    scale = 1.0 / (9.0 * cin) ** 0.5
    w = jax.random.normal(kw, (3, 3, cin, cout), jnp.float32) * scale   # HWIO
    b = jax.random.normal(kb, (cout,), jnp.float32) * scale
    return w, b


def init_subdensenet(key, in_ch, out_ch, fnum, growth, n_dense):
    keys = jax.random.split(key, n_dense + 2)
    p = {"inConv": _conv_params(keys[0], in_ch, fnum), "dense": []}
    for i in range(n_dense):
        p["dense"].append(_conv_params(keys[1 + i], fnum + growth * i, growth))
    p["outConv"] = _conv_params(keys[-1], fnum + growth * n_dense, out_ch)
    return p


def init_cn_dense(key, in_ch=1, d=4, c=2, fnum=8, growth=8):
    keys = jax.random.split(key, c)
    return {
        "subnets": [init_subdensenet(k, in_ch, in_ch, fnum, growth, d - 2)
                    for k in keys],
        "lamda": jnp.float32(1.0),   # DC weight, deterministic init
    }


def cn_dense_forward(params, x1, y, mask):
    """CN_Dense forward. x1: (N,C,H,W), y: (N,H,W,2), mask: (N,H,W) -> (N,C,H,W)."""
    iscale = params["lamda"] / (1.0 + params["lamda"])
    xin = x1
    xt = x1
    for p in params["subnets"]:
        xt = subdensenet_apply(p, xin)           # fused Pallas subDenseNet
        xt = data_consistency(xt, y, mask, iscale)
        xin = xt
    return xt


# ----------------------------------------------------------------------------
# Pure-XLA reference (for correctness check only)
# ----------------------------------------------------------------------------
def _conv3x3_ref(x, w, b, relu):
    y = jax.lax.conv_general_dilated(
        x, w, (1, 1), "SAME",
        dimension_numbers=("NCHW", "HWIO", "NCHW")) + b[None, :, None, None]
    return jnp.maximum(y, 0.0) if relu else y


def _subdensenet_ref(p, x, out_ch):
    x2 = _conv3x3_ref(x, *p["inConv"], relu=False)
    for (w, b) in p["dense"]:
        t = _conv3x3_ref(x2, w, b, relu=True)
        x2 = jnp.concatenate([x2, t], axis=1)
    x2 = _conv3x3_ref(x2, *p["outConv"], relu=True)
    return x2 + x[:, :out_ch]


def _cn_dense_ref(params, x1, y, mask):
    iscale = params["lamda"] / (1.0 + params["lamda"])
    out_ch = x1.shape[1]
    xin = x1
    xt = x1
    for p in params["subnets"]:
        xt = _subdensenet_ref(p, xin, out_ch)
        xt = data_consistency(xt, y, mask, iscale)
        xin = xt
    return xt


# ----------------------------------------------------------------------------
if __name__ == "__main__":
    key = jax.random.PRNGKey(0)
    k1, k2, k3, k4 = jax.random.split(key, 4)

    N, C, H, W = 2, 1, 16, 16
    x1 = jax.random.normal(k1, (N, C, H, W), jnp.float32)
    y = jax.random.normal(k2, (N, H, W, 2), jnp.float32)
    mask = (jax.random.uniform(k3, (N, H, W)) < 0.3).astype(jnp.float32)

    # CN_Dense config: c=2 cascades, d=4 (-> 2 dense layers/subnet), fNum=8, growth=8.
    params = init_cn_dense(k4, in_ch=C, d=4, c=2, fnum=8, growth=8)

    out = jax.jit(cn_dense_forward)(params, x1, y, mask)
    out = jax.block_until_ready(out)
    assert out.shape == (N, C, H, W)

    # End-to-end check against a pure-XLA f32 reference.  Tolerance is relative and
    # loose because the Pallas kernel feeds bf16 operands to the MXU (f32 accumulate)
    # while the reference uses XLA f32 convolutions.
    ref = jax.block_until_ready(jax.jit(_cn_dense_ref)(params, x1, y, mask))
    err = float(jnp.max(jnp.abs(out - ref)))
    scale = float(jnp.max(jnp.abs(ref))) + 1e-6
    assert err <= 5e-2 * scale + 5e-2, f"mismatch vs reference: err={err} scale={scale}"

    print("KERNEL_OK")
</pallas_src>

<mosaic_0001>
module attributes {stable_mosaic.version = 11 : i64} {
  func.func @_subdensenet_kernel(%arg0: i32, %arg1: memref<1x1x896xf32, #tpu.memory_space<vmem>>, %arg2: memref<1x640xf32, #tpu.memory_space<vmem>>, %arg3: memref<25x216xbf16, #tpu.memory_space<vmem>>, %arg4: memref<25x1xf32, #tpu.memory_space<vmem>>, %arg5: memref<1x1x640xf32, #tpu.memory_space<vmem>>, %arg6: memref<24x896xf32, #tpu.memory_space<vmem>>) attributes {dimension_semantics = [#tpu.dimension_semantics<parallel>], iteration_bounds = array<i64: 1>, scalar_prefetch = 0 : i64, scratch_operands = 1 : i64, tpu.core_type = #tpu.core_type<tc>, window_params = [{transform_indices = @transform_0, window_bounds = array<i64: 1, 1, 896>}, {pipeline_mode = #tpu.pipeline_mode<synchronous>, transform_indices = @transform_1, window_bounds = array<i64: 1, 640>}, {pipeline_mode = #tpu.pipeline_mode<synchronous>, transform_indices = @transform_2, window_bounds = array<i64: 25, 216>}, {pipeline_mode = #tpu.pipeline_mode<synchronous>, transform_indices = @transform_3, window_bounds = array<i64: 25, 1>}, {transform_indices = @transform_4, window_bounds = array<i64: 1, 1, 640>}]} {
    %cst = arith.constant 0.000000e+00 : f32
    %0 = vector.broadcast %cst : f32 to vector<24x128xf32>
    %c0 = arith.constant 0 : index
    %c0_0 = arith.constant 0 : index
    %1 = vector.load %arg6[%c0, %c0_0] : memref<24x896xf32, #tpu.memory_space<vmem>>, vector<24x128xf32>
    tpu.vector_store %arg6[%c0, %c0_0], %0 {strides = array<i32>} : memref<24x896xf32, #tpu.memory_space<vmem>>, vector<24x128xf32>,
    %cst_1 = arith.constant 0.000000e+00 : f32
    %2 = vector.broadcast %cst_1 : f32 to vector<24x128xf32>
    %c0_2 = arith.constant 0 : index
    %c768 = arith.constant 768 : index
    %3 = vector.load %arg6[%c0_2, %c768] : memref<24x896xf32, #tpu.memory_space<vmem>>, vector<24x128xf32>
    tpu.vector_store %arg6[%c0_2, %c768], %2 {strides = array<i32>} : memref<24x896xf32, #tpu.memory_space<vmem>>, vector<24x128xf32>,
    %c0_3 = arith.constant 0 : index
    %c0_4 = arith.constant 0 : index
    %4 = vector.load %arg2[%c0_3, %c0_4] : memref<1x640xf32, #tpu.memory_space<vmem>>, vector<1x640xf32>
    %5 = vector.shape_cast %4 : vector<1x640xf32> to vector<1x640xf32>
    %6 = vector.broadcast %5 : vector<1x640xf32> to vector<8x640xf32>
    %c0_5 = arith.constant 0 : index
    %c0_6 = arith.constant 0 : index
    %7 = vector.load %arg3[%c0_5, %c0_6] : memref<25x216xbf16, #tpu.memory_space<vmem>>, vector<25x216xbf16>
    %c0_7 = arith.constant 0 : index
    %c0_8 = arith.constant 0 : index
    %8 = vector.load %arg4[%c0_7, %c0_8] : memref<25x1xf32, #tpu.memory_space<vmem>>, vector<25x1xf32>
    %c0_9 = arith.constant 0 : index
    %c0_10 = arith.constant 0 : index
    %c0_11 = arith.constant 0 : index
    %9 = vector.load %arg1[%c0_9, %c0_10, %c0_11] : memref<1x1x896xf32, #tpu.memory_space<vmem>>, vector<1x1x896xf32>
    %10 = vector.shape_cast %9 : vector<1x1x896xf32> to vector<1x896xf32>
    %11 = arith.truncf %10 : vector<1x896xf32> to vector<1x896xbf16>
    %12 = vector.extract_strided_slice %7 {offsets = [0, 0], sizes = [8, 1], strides = [1, 1]} : vector<25x216xbf16> to vector<8x1xbf16>
    %13 = vector.extract_strided_slice %11 {offsets = [0, 109], sizes = [1, 640], strides = [1, 1]} : vector<1x896xbf16> to vector<1x640xbf16>
    %cst_12 = arith.constant dense<0.000000e+00> : vector<8x640xf32>
    %14 = tpu.matmul %12, %13, %cst_12 {dimension_numbers = #tpu.dot_dimension_numbers<[1], [0], [0], [1], [0, 0, 1, 1], [], []>} : vector<8x1xbf16>, vector<1x640xbf16>, vector<8x640xf32> -> vector<8x640xf32>
    %15 = vector.extract_strided_slice %7 {offsets = [0, 24], sizes = [8, 1], strides = [1, 1]} : vector<25x216xbf16> to vector<8x1xbf16>
    %16 = vector.extract_strided_slice %11 {offsets = [0, 110], sizes = [1, 640], strides = [1, 1]} : vector<1x896xbf16> to vector<1x640xbf16>
    %cst_13 = arith.constant dense<0.000000e+00> : vector<8x640xf32>
    %17 = tpu.matmul %15, %16, %cst_13 {dimension_numbers = #tpu.dot_dimension_numbers<[1], [0], [0], [1], [0, 0, 1, 1], [], []>} : vector<8x1xbf16>, vector<1x640xbf16>, vector<8x640xf32> -> vector<8x640xf32>
    %18 = arith.addf %14, %17 : vector<8x640xf32>
    %19 = vector.extract_strided_slice %7 {offsets = [0, 48], sizes = [8, 1], strides = [1, 1]} : vector<25x216xbf16> to vector<8x1xbf16>
    %20 = vector.extract_strided_slice %11 {offsets = [0, 111], sizes = [1, 640], strides = [1, 1]} : vector<1x896xbf16> to vector<1x640xbf16>
    %cst_14 = arith.constant dense<0.000000e+00> : vector<8x640xf32>
    %21 = tpu.matmul %19, %20, %cst_14 {dimension_numbers = #tpu.dot_dimension_numbers<[1], [0], [0], [1], [0, 0, 1, 1], [], []>} : vector<8x1xbf16>, vector<1x640xbf16>, vector<8x640xf32> -> vector<8x640xf32>
    %22 = arith.addf %18, %21 : vector<8x640xf32>
    %23 = vector.extract_strided_slice %7 {offsets = [0, 72], sizes = [8, 1], strides = [1, 1]} : vector<25x216xbf16> to vector<8x1xbf16>
    %24 = vector.extract_strided_slice %11 {offsets = [0, 127], sizes = [1, 640], strides = [1, 1]} : vector<1x896xbf16> to vector<1x640xbf16>
    %cst_15 = arith.constant dense<0.000000e+00> : vector<8x640xf32>
    %25 = tpu.matmul %23, %24, %cst_15 {dimension_numbers = #tpu.dot_dimension_numbers<[1], [0], [0], [1], [0, 0, 1, 1], [], []>} : vector<8x1xbf16>, vector<1x640xbf16>, vector<8x640xf32> -> vector<8x640xf32>
    %26 = arith.addf %22, %25 : vector<8x640xf32>
    %27 = vector.extract_strided_slice %7 {offsets = [0, 96], sizes = [8, 1], strides = [1, 1]} : vector<25x216xbf16> to vector<8x1xbf16>
    %28 = vector.extract_strided_slice %11 {offsets = [0, 128], sizes = [1, 640], strides = [1, 1]} : vector<1x896xbf16> to vector<1x640xbf16>
    %cst_16 = arith.constant dense<0.000000e+00> : vector<8x640xf32>
    %29 = tpu.matmul %27, %28, %cst_16 {dimension_numbers = #tpu.dot_dimension_numbers<[1], [0], [0], [1], [0, 0, 1, 1], [], []>} : vector<8x1xbf16>, vector<1x640xbf16>, vector<8x640xf32> -> vector<8x640xf32>
    %30 = arith.addf %26, %29 : vector<8x640xf32>
    %31 = vector.extract_strided_slice %7 {offsets = [0, 120], sizes = [8, 1], strides = [1, 1]} : vector<25x216xbf16> to vector<8x1xbf16>
    %32 = vector.extract_strided_slice %11 {offsets = [0, 129], sizes = [1, 640], strides = [1, 1]} : vector<1x896xbf16> to vector<1x640xbf16>
    %cst_17 = arith.constant dense<0.000000e+00> : vector<8x640xf32>
    %33 = tpu.matmul %31, %32, %cst_17 {dimension_numbers = #tpu.dot_dimension_numbers<[1], [0], [0], [1], [0, 0, 1, 1], [], []>} : vector<8x1xbf16>, vector<1x640xbf16>, vector<8x640xf32> -> vector<8x640xf32>
    %34 = arith.addf %30, %33 : vector<8x640xf32>
    %35 = vector.extract_strided_slice %7 {offsets = [0, 144], sizes = [8, 1], strides = [1, 1]} : vector<25x216xbf16> to vector<8x1xbf16>
    %36 = vector.extract_strided_slice %11 {offsets = [0, 145], sizes = [1, 640], strides = [1, 1]} : vector<1x896xbf16> to vector<1x640xbf16>
    %cst_18 = arith.constant dense<0.000000e+00> : vector<8x640xf32>
    %37 = tpu.matmul %35, %36, %cst_18 {dimension_numbers = #tpu.dot_dimension_numbers<[1], [0], [0], [1], [0, 0, 1, 1], [], []>} : vector<8x1xbf16>, vector<1x640xbf16>, vector<8x640xf32> -> vector<8x640xf32>
    %38 = arith.addf %34, %37 : vector<8x640xf32>
    %39 = vector.extract_strided_slice %7 {offsets = [0, 168], sizes = [8, 1], strides = [1, 1]} : vector<25x216xbf16> to vector<8x1xbf16>
    %40 = vector.extract_strided_slice %11 {offsets = [0, 146], sizes = [1, 640], strides = [1, 1]} : vector<1x896xbf16> to vector<1x640xbf16>
    %cst_19 = arith.constant dense<0.000000e+00> : vector<8x640xf32>
    %41 = tpu.matmul %39, %40, %cst_19 {dimension_numbers = #tpu.dot_dimension_numbers<[1], [0], [0], [1], [0, 0, 1, 1], [], []>} : vector<8x1xbf16>, vector<1x640xbf16>, vector<8x640xf32> -> vector<8x640xf32>
    %42 = arith.addf %38, %41 : vector<8x640xf32>
    %43 = vector.extract_strided_slice %7 {offsets = [0, 192], sizes = [8, 1], strides = [1, 1]} : vector<25x216xbf16> to vector<8x1xbf16>
    %44 = vector.extract_strided_slice %11 {offsets = [0, 147], sizes = [1, 640], strides = [1, 1]} : vector<1x896xbf16> to vector<1x640xbf16>
    %cst_20 = arith.constant dense<0.000000e+00> : vector<8x640xf32>
    %45 = tpu.matmul %43, %44, %cst_20 {dimension_numbers = #tpu.dot_dimension_numbers<[1], [0], [0], [1], [0, 0, 1, 1], [], []>} : vector<8x1xbf16>, vector<1x640xbf16>, vector<8x640xf32> -> vector<8x640xf32>
    %46 = arith.addf %42, %45 : vector<8x640xf32>
    %47 = vector.extract_strided_slice %8 {offsets = [0, 0], sizes = [8, 1], strides = [1, 1]} : vector<25x1xf32> to vector<8x1xf32>
    %48 = vector.broadcast %47 : vector<8x1xf32> to vector<8x640xf32>
    %49 = arith.addf %46, %48 : vector<8x640xf32>
    %50 = arith.mulf %49, %6 : vector<8x640xf32>
    %c0_21 = arith.constant 0 : index
    %c128 = arith.constant 128 : index
    %51 = vector.load %arg6[%c0_21, %c128] : memref<24x896xf32, #tpu.memory_space<vmem>>, vector<8x640xf32>
    tpu.vector_store %arg6[%c0_21, %c128], %50 {strides = array<i32>} : memref<24x896xf32, #tpu.memory_space<vmem>>, vector<8x640xf32>,
    %52 = vector.extract_strided_slice %7 {offsets = [8, 0], sizes = [8, 8], strides = [1, 1]} : vector<25x216xbf16> to vector<8x8xbf16>
    %c0_22 = arith.constant 0 : index
    %c109 = arith.constant 109 : index
    %53 = vector.load %arg6[%c0_22, %c109] : memref<24x896xf32, #tpu.memory_space<vmem>>, vector<8x640xf32>
    %54 = arith.truncf %53 : vector<8x640xf32> to vector<8x640xbf16>
    %cst_23 = arith.constant dense<0.000000e+00> : vector<8x640xf32>
    %55 = tpu.matmul %52, %54, %cst_23 {dimension_numbers = #tpu.dot_dimension_numbers<[1], [0], [0], [1], [0, 0, 1, 1], [], []>} : vector<8x8xbf16>, vector<8x640xbf16>, vector<8x640xf32> -> vector<8x640xf32>
    %56 = vector.extract_strided_slice %7 {offsets = [8, 24], sizes = [8, 8], strides = [1, 1]} : vector<25x216xbf16> to vector<8x8xbf16>
    %c0_24 = arith.constant 0 : index
    %c110 = arith.constant 110 : index
    %57 = vector.load %arg6[%c0_24, %c110] : memref<24x896xf32, #tpu.memory_space<vmem>>, vector<8x640xf32>
    %58 = arith.truncf %57 : vector<8x640xf32> to vector<8x640xbf16>
    %cst_25 = arith.constant dense<0.000000e+00> : vector<8x640xf32>
    %59 = tpu.matmul %56, %58, %cst_25 {dimension_numbers = #tpu.dot_dimension_numbers<[1], [0], [0], [1], [0, 0, 1, 1], [], []>} : vector<8x8xbf16>, vector<8x640xbf16>, vector<8x640xf32> -> vector<8x640xf32>
    %60 = arith.addf %55, %59 : vector<8x640xf32>
    %61 = vector.extract_strided_slice %7 {offsets = [8, 48], sizes = [8, 8], strides = [1, 1]} : vector<25x216xbf16> to vector<8x8xbf16>
    %c0_26 = arith.constant 0 : index
    %c111 = arith.constant 111 : index
    %62 = vector.load %arg6[%c0_26, %c111] : memref<24x896xf32, #tpu.memory_space<vmem>>, vector<8x640xf32>
    %63 = arith.truncf %62 : vector<8x640xf32> to vector<8x640xbf16>
    %cst_27 = arith.constant dense<0.000000e+00> : vector<8x640xf32>
    %64 = tpu.matmul %61, %63, %cst_27 {dimension_numbers = #tpu.dot_dimension_numbers<[1], [0], [0], [1], [0, 0, 1, 1], [], []>} : vector<8x8xbf16>, vector<8x640xbf16>, vector<8x640xf32> -> vector<8x640xf32>
    %65 = arith.addf %60, %64 : vector<8x640xf32>
    %66 = vector.extract_strided_slice %7 {offsets = [8, 72], sizes = [8, 8], strides = [1, 1]} : vector<25x216xbf16> to vector<8x8xbf16>
    %c0_28 = arith.constant 0 : index
    %c127 = arith.constant 127 : index
    %67 = vector.load %arg6[%c0_28, %c127] : memref<24x896xf32, #tpu.memory_space<vmem>>, vector<8x640xf32>
    %68 = arith.truncf %67 : vector<8x640xf32> to vector<8x640xbf16>
    %cst_29 = arith.constant dense<0.000000e+00> : vector<8x640xf32>
    %69 = tpu.matmul %66, %68, %cst_29 {dimension_numbers = #tpu.dot_dimension_numbers<[1], [0], [0], [1], [0, 0, 1, 1], [], []>} : vector<8x8xbf16>, vector<8x640xbf16>, vector<8x640xf32> -> vector<8x640xf32>
    %70 = arith.addf %65, %69 : vector<8x640xf32>
    %71 = vector.extract_strided_slice %7 {offsets = [8, 96], sizes = [8, 8], strides = [1, 1]} : vector<25x216xbf16> to vector<8x8xbf16>
    %c0_30 = arith.constant 0 : index
    %c128_31 = arith.constant 128 : index
    %72 = vector.load %arg6[%c0_30, %c128_31] : memref<24x896xf32, #tpu.memory_space<vmem>>, vector<8x640xf32>
    %73 = arith.truncf %72 : vector<8x640xf32> to vector<8x640xbf16>
    %cst_32 = arith.constant dense<0.000000e+00> : vector<8x640xf32>
    %74 = tpu.matmul %71, %73, %cst_32 {dimension_numbers = #tpu.dot_dimension_numbers<[1], [0], [0], [1], [0, 0, 1, 1], [], []>} : vector<8x8xbf16>, vector<8x640xbf16>, vector<8x640xf32> -> vector<8x640xf32>
    %75 = arith.addf %70, %74 : vector<8x640xf32>
    %76 = vector.extract_strided_slice %7 {offsets = [8, 120], sizes = [8, 8], strides = [1, 1]} : vector<25x216xbf16> to vector<8x8xbf16>
    %c0_33 = arith.constant 0 : index
    %c129 = arith.constant 129 : index
    %77 = vector.load %arg6[%c0_33, %c129] : memref<24x896xf32, #tpu.memory_space<vmem>>, vector<8x640xf32>
    %78 = arith.truncf %77 : vector<8x640xf32> to vector<8x640xbf16>
    %cst_34 = arith.constant dense<0.000000e+00> : vector<8x640xf32>
    %79 = tpu.matmul %76, %78, %cst_34 {dimension_numbers = #tpu.dot_dimension_numbers<[1], [0], [0], [1], [0, 0, 1, 1], [], []>} : vector<8x8xbf16>, vector<8x640xbf16>, vector<8x640xf32> -> vector<8x640xf32>
    %80 = arith.addf %75, %79 : vector<8x640xf32>
    %81 = vector.extract_strided_slice %7 {offsets = [8, 144], sizes = [8, 8], strides = [1, 1]} : vector<25x216xbf16> to vector<8x8xbf16>
    %c0_35 = arith.constant 0 : index
    %c145 = arith.constant 145 : index
    %82 = vector.load %arg6[%c0_35, %c145] : memref<24x896xf32, #tpu.memory_space<vmem>>, vector<8x640xf32>
    %83 = arith.truncf %82 : vector<8x640xf32> to vector<8x640xbf16>
    %cst_36 = arith.constant dense<0.000000e+00> : vector<8x640xf32>
    %84 = tpu.matmul %81, %83, %cst_36 {dimension_numbers = #tpu.dot_dimension_numbers<[1], [0], [0], [1], [0, 0, 1, 1], [], []>} : vector<8x8xbf16>, vector<8x640xbf16>, vector<8x640xf32> -> vector<8x640xf32>
    %85 = arith.addf %80, %84 : vector<8x640xf32>
    %86 = vector.extract_strided_slice %7 {offsets = [8, 168], sizes = [8, 8], strides = [1, 1]} : vector<25x216xbf16> to vector<8x8xbf16>
    %c0_37 = arith.constant 0 : index
    %c146 = arith.constant 146 : index
    %87 = vector.load %arg6[%c0_37, %c146] : memref<24x896xf32, #tpu.memory_space<vmem>>, vector<8x640xf32>
    %88 = arith.truncf %87 : vector<8x640xf32> to vector<8x640xbf16>
    %cst_38 = arith.constant dense<0.000000e+00> : vector<8x640xf32>
    %89 = tpu.matmul %86, %88, %cst_38 {dimension_numbers = #tpu.dot_dimension_numbers<[1], [0], [0], [1], [0, 0, 1, 1], [], []>} : vector<8x8xbf16>, vector<8x640xbf16>, vector<8x640xf32> -> vector<8x640xf32>
    %90 = arith.addf %85, %89 : vector<8x640xf32>
    %91 = vector.extract_strided_slice %7 {offsets = [8, 192], sizes = [8, 8], strides = [1, 1]} : vector<25x216xbf16> to vector<8x8xbf16>
    %c0_39 = arith.constant 0 : index
    %c147 = arith.constant 147 : index
    %92 = vector.load %arg6[%c0_39, %c147] : memref<24x896xf32, #tpu.memory_space<vmem>>, vector<8x640xf32>
    %93 = arith.truncf %92 : vector<8x640xf32> to vector<8x640xbf16>
    %cst_40 = arith.constant dense<0.000000e+00> : vector<8x640xf32>
    %94 = tpu.matmul %91, %93, %cst_40 {dimension_numbers = #tpu.dot_dimension_numbers<[1], [0], [0], [1], [0, 0, 1, 1], [], []>} : vector<8x8xbf16>, vector<8x640xbf16>, vector<8x640xf32> -> vector<8x640xf32>
    %95 = arith.addf %90, %94 : vector<8x640xf32>
    %96 = vector.extract_strided_slice %8 {offsets = [8, 0], sizes = [8, 1], strides = [1, 1]} : vector<25x1xf32> to vector<8x1xf32>
    %97 = vector.broadcast %96 : vector<8x1xf32> to vector<8x640xf32>
    %98 = arith.addf %95, %97 : vector<8x640xf32>
    %cst_41 = arith.constant 0.000000e+00 : f32
    %99 = vector.broadcast %cst_41 : f32 to vector<8x640xf32>
    %100 = arith.maximumf %98, %99 : vector<8x640xf32>
    %101 = arith.mulf %100, %6 : vector<8x640xf32>
    %c8 = arith.constant 8 : index
    %c128_42 = arith.constant 128 : index
    %102 = vector.load %arg6[%c8, %c128_42] : memref<24x896xf32, #tpu.memory_space<vmem>>, vector<8x640xf32>
    tpu.vector_store %arg6[%c8, %c128_42], %101 {strides = array<i32>} : memref<24x896xf32, #tpu.memory_space<vmem>>, vector<8x640xf32>,
    %103 = vector.extract_strided_slice %7 {offsets = [16, 0], sizes = [8, 16], strides = [1, 1]} : vector<25x216xbf16> to vector<8x16xbf16>
    %c0_43 = arith.constant 0 : index
    %c109_44 = arith.constant 109 : index
    %104 = vector.load %arg6[%c0_43, %c109_44] : memref<24x896xf32, #tpu.memory_space<vmem>>, vector<16x640xf32>
    %105 = arith.truncf %104 : vector<16x640xf32> to vector<16x640xbf16>
    %cst_45 = arith.constant dense<0.000000e+00> : vector<8x640xf32>
    %106 = tpu.matmul %103, %105, %cst_45 {dimension_numbers = #tpu.dot_dimension_numbers<[1], [0], [0], [1], [0, 0, 1, 1], [], []>} : vector<8x16xbf16>, vector<16x640xbf16>, vector<8x640xf32> -> vector<8x640xf32>
    %107 = vector.extract_strided_slice %7 {offsets = [16, 24], sizes = [8, 16], strides = [1, 1]} : vector<25x216xbf16> to vector<8x16xbf16>
    %c0_46 = arith.constant 0 : index
    %c110_47 = arith.constant 110 : index
    %108 = vector.load %arg6[%c0_46, %c110_47] : memref<24x896xf32, #tpu.memory_space<vmem>>, vector<16x640xf32>
    %109 = arith.truncf %108 : vector<16x640xf32> to vector<16x640xbf16>
    %cst_48 = arith.constant dense<0.000000e+00> : vector<8x640xf32>
    %110 = tpu.matmul %107, %109, %cst_48 {dimension_numbers = #tpu.dot_dimension_numbers<[1], [0], [0], [1], [0, 0, 1, 1], [], []>} : vector<8x16xbf16>, vector<16x640xbf16>, vector<8x640xf32> -> vector<8x640xf32>
    %111 = arith.addf %106, %110 : vector<8x640xf32>
    %112 = vector.extract_strided_slice %7 {offsets = [16, 48], sizes = [8, 16], strides = [1, 1]} : vector<25x216xbf16> to vector<8x16xbf16>
    %c0_49 = arith.constant 0 : index
    %c111_50 = arith.constant 111 : index
    %113 = vector.load %arg6[%c0_49, %c111_50] : memref<24x896xf32, #tpu.memory_space<vmem>>, vector<16x640xf32>
    %114 = arith.truncf %113 : vector<16x640xf32> to vector<16x640xbf16>
    %cst_51 = arith.constant dense<0.000000e+00> : vector<8x640xf32>
    %115 = tpu.matmul %112, %114, %cst_51 {dimension_numbers = #tpu.dot_dimension_numbers<[1], [0], [0], [1], [0, 0, 1, 1], [], []>} : vector<8x16xbf16>, vector<16x640xbf16>, vector<8x640xf32> -> vector<8x640xf32>
    %116 = arith.addf %111, %115 : vector<8x640xf32>
    %117 = vector.extract_strided_slice %7 {offsets = [16, 72], sizes = [8, 16], strides = [1, 1]} : vector<25x216xbf16> to vector<8x16xbf16>
    %c0_52 = arith.constant 0 : index
    %c127_53 = arith.constant 127 : index
    %118 = vector.load %arg6[%c0_52, %c127_53] : memref<24x896xf32, #tpu.memory_space<vmem>>, vector<16x640xf32>
    %119 = arith.truncf %118 : vector<16x640xf32> to vector<16x640xbf16>
    %cst_54 = arith.constant dense<0.000000e+00> : vector<8x640xf32>
    %120 = tpu.matmul %117, %119, %cst_54 {dimension_numbers = #tpu.dot_dimension_numbers<[1], [0], [0], [1], [0, 0, 1, 1], [], []>} : vector<8x16xbf16>, vector<16x640xbf16>, vector<8x640xf32> -> vector<8x640xf32>
    %121 = arith.addf %116, %120 : vector<8x640xf32>
    %122 = vector.extract_strided_slice %7 {offsets = [16, 96], sizes = [8, 16], strides = [1, 1]} : vector<25x216xbf16> to vector<8x16xbf16>
    %c0_55 = arith.constant 0 : index
    %c128_56 = arith.constant 128 : index
    %123 = vector.load %arg6[%c0_55, %c128_56] : memref<24x896xf32, #tpu.memory_space<vmem>>, vector<16x640xf32>
    %124 = arith.truncf %123 : vector<16x640xf32> to vector<16x640xbf16>
    %cst_57 = arith.constant dense<0.000000e+00> : vector<8x640xf32>
    %125 = tpu.matmul %122, %124, %cst_57 {dimension_numbers = #tpu.dot_dimension_numbers<[1], [0], [0], [1], [0, 0, 1, 1], [], []>} : vector<8x16xbf16>, vector<16x640xbf16>, vector<8x640xf32> -> vector<8x640xf32>
    %126 = arith.addf %121, %125 : vector<8x640xf32>
    %127 = vector.extract_strided_slice %7 {offsets = [16, 120], sizes = [8, 16], strides = [1, 1]} : vector<25x216xbf16> to vector<8x16xbf16>
    %c0_58 = arith.constant 0 : index
    %c129_59 = arith.constant 129 : index
    %128 = vector.load %arg6[%c0_58, %c129_59] : memref<24x896xf32, #tpu.memory_space<vmem>>, vector<16x640xf32>
    %129 = arith.truncf %128 : vector<16x640xf32> to vector<16x640xbf16>
    %cst_60 = arith.constant dense<0.000000e+00> : vector<8x640xf32>
    %130 = tpu.matmul %127, %129, %cst_60 {dimension_numbers = #tpu.dot_dimension_numbers<[1], [0], [0], [1], [0, 0, 1, 1], [], []>} : vector<8x16xbf16>, vector<16x640xbf16>, vector<8x640xf32> -> vector<8x640xf32>
    %131 = arith.addf %126, %130 : vector<8x640xf32>
    %132 = vector.extract_strided_slice %7 {offsets = [16, 144], sizes = [8, 16], strides = [1, 1]} : vector<25x216xbf16> to vector<8x16xbf16>
    %c0_61 = arith.constant 0 : index
    %c145_62 = arith.constant 145 : index
    %133 = vector.load %arg6[%c0_61, %c145_62] : memref<24x896xf32, #tpu.memory_space<vmem>>, vector<16x640xf32>
    %134 = arith.truncf %133 : vector<16x640xf32> to vector<16x640xbf16>
    %cst_63 = arith.constant dense<0.000000e+00> : vector<8x640xf32>
    %135 = tpu.matmul %132, %134, %cst_63 {dimension_numbers = #tpu.dot_dimension_numbers<[1], [0], [0], [1], [0, 0, 1, 1], [], []>} : vector<8x16xbf16>, vector<16x640xbf16>, vector<8x640xf32> -> vector<8x640xf32>
    %136 = arith.addf %131, %135 : vector<8x640xf32>
    %137 = vector.extract_strided_slice %7 {offsets = [16, 168], sizes = [8, 16], strides = [1, 1]} : vector<25x216xbf16> to vector<8x16xbf16>
    %c0_64 = arith.constant 0 : index
    %c146_65 = arith.constant 146 : index
    %138 = vector.load %arg6[%c0_64, %c146_65] : memref<24x896xf32, #tpu.memory_space<vmem>>, vector<16x640xf32>
    %139 = arith.truncf %138 : vector<16x640xf32> to vector<16x640xbf16>
    %cst_66 = arith.constant dense<0.000000e+00> : vector<8x640xf32>
    %140 = tpu.matmul %137, %139, %cst_66 {dimension_numbers = #tpu.dot_dimension_numbers<[1], [0], [0], [1], [0, 0, 1, 1], [], []>} : vector<8x16xbf16>, vector<16x640xbf16>, vector<8x640xf32> -> vector<8x640xf32>
    %141 = arith.addf %136, %140 : vector<8x640xf32>
    %142 = vector.extract_strided_slice %7 {offsets = [16, 192], sizes = [8, 16], strides = [1, 1]} : vector<25x216xbf16> to vector<8x16xbf16>
    %c0_67 = arith.constant 0 : index
    %c147_68 = arith.constant 147 : index
    %143 = vector.load %arg6[%c0_67, %c147_68] : memref<24x896xf32, #tpu.memory_space<vmem>>, vector<16x640xf32>
    %144 = arith.truncf %143 : vector<16x640xf32> to vector<16x640xbf16>
    %cst_69 = arith.constant dense<0.000000e+00> : vector<8x640xf32>
    %145 = tpu.matmul %142, %144, %cst_69 {dimension_numbers = #tpu.dot_dimension_numbers<[1], [0], [0], [1], [0, 0, 1, 1], [], []>} : vector<8x16xbf16>, vector<16x640xbf16>, vector<8x640xf32> -> vector<8x640xf32>
    %146 = arith.addf %141, %145 : vector<8x640xf32>
    %147 = vector.extract_strided_slice %8 {offsets = [16, 0], sizes = [8, 1], strides = [1, 1]} : vector<25x1xf32> to vector<8x1xf32>
    %148 = vector.broadcast %147 : vector<8x1xf32> to vector<8x640xf32>
    %149 = arith.addf %146, %148 : vector<8x640xf32>
    %cst_70 = arith.constant 0.000000e+00 : f32
    %150 = vector.broadcast %cst_70 : f32 to vector<8x640xf32>
    %151 = arith.maximumf %149, %150 : vector<8x640xf32>
    %152 = arith.mulf %151, %6 : vector<8x640xf32>
    %c16 = arith.constant 16 : index
    %c128_71 = arith.constant 128 : index
    %153 = vector.load %arg6[%c16, %c128_71] : memref<24x896xf32, #tpu.memory_space<vmem>>, vector<8x640xf32>
    tpu.vector_store %arg6[%c16, %c128_71], %152 {strides = array<i32>} : memref<24x896xf32, #tpu.memory_space<vmem>>, vector<8x640xf32>,
    %154 = vector.extract_strided_slice %7 {offsets = [24, 0], sizes = [1, 24], strides = [1, 1]} : vector<25x216xbf16> to vector<1x24xbf16>
    %c0_72 = arith.constant 0 : index
    %c109_73 = arith.constant 109 : index
    %155 = vector.load %arg6[%c0_72, %c109_73] : memref<24x896xf32, #tpu.memory_space<vmem>>, vector<24x640xf32>
    %156 = arith.truncf %155 : vector<24x640xf32> to vector<24x640xbf16>
    %cst_74 = arith.constant dense<0.000000e+00> : vector<1x640xf32>
    %157 = tpu.matmul %154, %156, %cst_74 {dimension_numbers = #tpu.dot_dimension_numbers<[1], [0], [0], [1], [0, 0, 1, 1], [], []>} : vector<1x24xbf16>, vector<24x640xbf16>, vector<1x640xf32> -> vector<1x640xf32>
    %158 = vector.extract_strided_slice %7 {offsets = [24, 24], sizes = [1, 24], strides = [1, 1]} : vector<25x216xbf16> to vector<1x24xbf16>
    %c0_75 = arith.constant 0 : index
    %c110_76 = arith.constant 110 : index
    %159 = vector.load %arg6[%c0_75, %c110_76] : memref<24x896xf32, #tpu.memory_space<vmem>>, vector<24x640xf32>
    %160 = arith.truncf %159 : vector<24x640xf32> to vector<24x640xbf16>
    %cst_77 = arith.constant dense<0.000000e+00> : vector<1x640xf32>
    %161 = tpu.matmul %158, %160, %cst_77 {dimension_numbers = #tpu.dot_dimension_numbers<[1], [0], [0], [1], [0, 0, 1, 1], [], []>} : vector<1x24xbf16>, vector<24x640xbf16>, vector<1x640xf32> -> vector<1x640xf32>
    %162 = arith.addf %157, %161 : vector<1x640xf32>
    %163 = vector.extract_strided_slice %7 {offsets = [24, 48], sizes = [1, 24], strides = [1, 1]} : vector<25x216xbf16> to vector<1x24xbf16>
    %c0_78 = arith.constant 0 : index
    %c111_79 = arith.constant 111 : index
    %164 = vector.load %arg6[%c0_78, %c111_79] : memref<24x896xf32, #tpu.memory_space<vmem>>, vector<24x640xf32>
    %165 = arith.truncf %164 : vector<24x640xf32> to vector<24x640xbf16>
    %cst_80 = arith.constant dense<0.000000e+00> : vector<1x640xf32>
    %166 = tpu.matmul %163, %165, %cst_80 {dimension_numbers = #tpu.dot_dimension_numbers<[1], [0], [0], [1], [0, 0, 1, 1], [], []>} : vector<1x24xbf16>, vector<24x640xbf16>, vector<1x640xf32> -> vector<1x640xf32>
    %167 = arith.addf %162, %166 : vector<1x640xf32>
    %168 = vector.extract_strided_slice %7 {offsets = [24, 72], sizes = [1, 24], strides = [1, 1]} : vector<25x216xbf16> to vector<1x24xbf16>
    %c0_81 = arith.constant 0 : index
    %c127_82 = arith.constant 127 : index
    %169 = vector.load %arg6[%c0_81, %c127_82] : memref<24x896xf32, #tpu.memory_space<vmem>>, vector<24x640xf32>
    %170 = arith.truncf %169 : vector<24x640xf32> to vector<24x640xbf16>
    %cst_83 = arith.constant dense<0.000000e+00> : vector<1x640xf32>
    %171 = tpu.matmul %168, %170, %cst_83 {dimension_numbers = #tpu.dot_dimension_numbers<[1], [0], [0], [1], [0, 0, 1, 1], [], []>} : vector<1x24xbf16>, vector<24x640xbf16>, vector<1x640xf32> -> vector<1x640xf32>
    %172 = arith.addf %167, %171 : vector<1x640xf32>
    %173 = vector.extract_strided_slice %7 {offsets = [24, 96], sizes = [1, 24], strides = [1, 1]} : vector<25x216xbf16> to vector<1x24xbf16>
    %c0_84 = arith.constant 0 : index
    %c128_85 = arith.constant 128 : index
    %174 = vector.load %arg6[%c0_84, %c128_85] : memref<24x896xf32, #tpu.memory_space<vmem>>, vector<24x640xf32>
    %175 = arith.truncf %174 : vector<24x640xf32> to vector<24x640xbf16>
    %cst_86 = arith.constant dense<0.000000e+00> : vector<1x640xf32>
    %176 = tpu.matmul %173, %175, %cst_86 {dimension_numbers = #tpu.dot_dimension_numbers<[1], [0], [0], [1], [0, 0, 1, 1], [], []>} : vector<1x24xbf16>, vector<24x640xbf16>, vector<1x640xf32> -> vector<1x640xf32>
    %177 = arith.addf %172, %176 : vector<1x640xf32>
    %178 = vector.extract_strided_slice %7 {offsets = [24, 120], sizes = [1, 24], strides = [1, 1]} : vector<25x216xbf16> to vector<1x24xbf16>
    %c0_87 = arith.constant 0 : index
    %c129_88 = arith.constant 129 : index
    %179 = vector.load %arg6[%c0_87, %c129_88] : memref<24x896xf32, #tpu.memory_space<vmem>>, vector<24x640xf32>
    %180 = arith.truncf %179 : vector<24x640xf32> to vector<24x640xbf16>
    %cst_89 = arith.constant dense<0.000000e+00> : vector<1x640xf32>
    %181 = tpu.matmul %178, %180, %cst_89 {dimension_numbers = #tpu.dot_dimension_numbers<[1], [0], [0], [1], [0, 0, 1, 1], [], []>} : vector<1x24xbf16>, vector<24x640xbf16>, vector<1x640xf32> -> vector<1x640xf32>
    %182 = arith.addf %177, %181 : vector<1x640xf32>
    %183 = vector.extract_strided_slice %7 {offsets = [24, 144], sizes = [1, 24], strides = [1, 1]} : vector<25x216xbf16> to vector<1x24xbf16>
    %c0_90 = arith.constant 0 : index
    %c145_91 = arith.constant 145 : index
    %184 = vector.load %arg6[%c0_90, %c145_91] : memref<24x896xf32, #tpu.memory_space<vmem>>, vector<24x640xf32>
    %185 = arith.truncf %184 : vector<24x640xf32> to vector<24x640xbf16>
    %cst_92 = arith.constant dense<0.000000e+00> : vector<1x640xf32>
    %186 = tpu.matmul %183, %185, %cst_92 {dimension_numbers = #tpu.dot_dimension_numbers<[1], [0], [0], [1], [0, 0, 1, 1], [], []>} : vector<1x24xbf16>, vector<24x640xbf16>, vector<1x640xf32> -> vector<1x640xf32>
    %187 = arith.addf %182, %186 : vector<1x640xf32>
    %188 = vector.extract_strided_slice %7 {offsets = [24, 168], sizes = [1, 24], strides = [1, 1]} : vector<25x216xbf16> to vector<1x24xbf16>
    %c0_93 = arith.constant 0 : index
    %c146_94 = arith.constant 146 : index
    %189 = vector.load %arg6[%c0_93, %c146_94] : memref<24x896xf32, #tpu.memory_space<vmem>>, vector<24x640xf32>
    %190 = arith.truncf %189 : vector<24x640xf32> to vector<24x640xbf16>
    %cst_95 = arith.constant dense<0.000000e+00> : vector<1x640xf32>
    %191 = tpu.matmul %188, %190, %cst_95 {dimension_numbers = #tpu.dot_dimension_numbers<[1], [0], [0], [1], [0, 0, 1, 1], [], []>} : vector<1x24xbf16>, vector<24x640xbf16>, vector<1x640xf32> -> vector<1x640xf32>
    %192 = arith.addf %187, %191 : vector<1x640xf32>
    %193 = vector.extract_strided_slice %7 {offsets = [24, 192], sizes = [1, 24], strides = [1, 1]} : vector<25x216xbf16> to vector<1x24xbf16>
    %c0_96 = arith.constant 0 : index
    %c147_97 = arith.constant 147 : index
    %194 = vector.load %arg6[%c0_96, %c147_97] : memref<24x896xf32, #tpu.memory_space<vmem>>, vector<24x640xf32>
    %195 = arith.truncf %194 : vector<24x640xf32> to vector<24x640xbf16>
    %cst_98 = arith.constant dense<0.000000e+00> : vector<1x640xf32>
    %196 = tpu.matmul %193, %195, %cst_98 {dimension_numbers = #tpu.dot_dimension_numbers<[1], [0], [0], [1], [0, 0, 1, 1], [], []>} : vector<1x24xbf16>, vector<24x640xbf16>, vector<1x640xf32> -> vector<1x640xf32>
    %197 = arith.addf %192, %196 : vector<1x640xf32>
    %198 = vector.extract_strided_slice %8 {offsets = [24, 0], sizes = [1, 1], strides = [1, 1]} : vector<25x1xf32> to vector<1x1xf32>
    %199 = vector.broadcast %198 : vector<1x1xf32> to vector<1x640xf32>
    %200 = arith.addf %197, %199 : vector<1x640xf32>
    %cst_99 = arith.constant 0.000000e+00 : f32
    %201 = vector.broadcast %cst_99 : f32 to vector<1x640xf32>
    %202 = arith.maximumf %200, %201 : vector<1x640xf32>
    %203 = vector.extract_strided_slice %10 {offsets = [0, 128], sizes = [1, 640], strides = [1, 1]} : vector<1x896xf32> to vector<1x640xf32>
    %204 = arith.addf %202, %203 : vector<1x640xf32>
    %c0_100 = arith.constant 0 : index
    %c0_101 = arith.constant 0 : index
    %c0_102 = arith.constant 0 : index
    %205 = vector.load %arg5[%c0_100, %c0_101, %c0_102] : memref<1x1x640xf32, #tpu.memory_space<vmem>>, vector<1x1x640xf32>
    %206 = vector.shape_cast %205 : vector<1x1x640xf32> to vector<1x640xf32>
    %207 = vector.shape_cast %204 : vector<1x640xf32> to vector<1x1x640xf32>
    tpu.vector_store %arg5[%c0_100, %c0_101, %c0_102], %207 {strides = array<i32>} : memref<1x1x640xf32, #tpu.memory_space<vmem>>, vector<1x1x640xf32>,
    return
  }
  func.func @transform_0(%arg0: i32) -> (i32, i32, i32) {
    %c0_i32 = arith.constant 0 : i32
    %c0_i32_0 = arith.constant 0 : i32
    %c0_i32_1 = arith.constant 0 : i32
    return %arg0, %c0_i32, %c0_i32_0 : i32, i32, i32
  }
  func.func @transform_1(%arg0: i32) -> (i32, i32) {
    %c0_i32 = arith.constant 0 : i32
    %c0_i32_0 = arith.constant 0 : i32
    %c0_i32_1 = arith.constant 0 : i32
    return %c0_i32, %c0_i32_0 : i32, i32
  }
  func.func @transform_2(%arg0: i32) -> (i32, i32) {
    %c0_i32 = arith.constant 0 : i32
    %c0_i32_0 = arith.constant 0 : i32
    %c0_i32_1 = arith.constant 0 : i32
    return %c0_i32, %c0_i32_0 : i32, i32
  }
  func.func @transform_3(%arg0: i32) -> (i32, i32) {
    %c0_i32 = arith.constant 0 : i32
    %c0_i32_0 = arith.constant 0 : i32
    %c0_i32_1 = arith.constant 0 : i32
    return %c0_i32, %c0_i32_0 : i32, i32
  }
  func.func @transform_4(%arg0: i32) -> (i32, i32, i32) {
    %c0_i32 = arith.constant 0 : i32
    %c0_i32_0 = arith.constant 0 : i32
    %c0_i32_1 = arith.constant 0 : i32
    return %arg0, %c0_i32, %c0_i32_0 : i32, i32, i32
  }
}

</mosaic_0001>

<bundles_post_ra>
// kernel: cn_dense_forward.2
= control target key start
LH: loop header
LB: loop body
LE: loop exit
PB: predicated region body
PF: predicated region fallthrough
CT: control target
= control target key end

     0   :  { %v8575_v0 = vlaneseq  ;;  %v8576_v2 = vmov 0   ;;  %s6833_s19 = smov 104   ;;  %s6835_s20 = smov 19   ;;  %vm126_vm0 = vcmask 146432   ;;  %vm136_vm1 = vcmask 1040384   ;;  %s8570_s2 = inlined_call_operand.vmem [shape: bf16[25,216], index: 2, kind: input, shape index: {}]   ;;  %s8571_s0 = inlined_call_operand.vmem [shape: f32[1,1,896], index: 0, kind: input, shape index: {}]   ;;  %s8572_s3 = inlined_call_operand.vmem [shape: f32[25,1], index: 3, kind: input, shape index: {}]   ;;  %s8573_s1 = inlined_call_operand.vmem [shape: f32[1,640], index: 1, kind: input, shape index: {}]   ;;  %s8574_s4 = inlined_call_operand.vmem [shape: f32[1,1,640], index: 4, kind: output, shape index: {}]  }
   0x1   :  { %v6881_v1 = vld [vmem:[%s8570_s2] sm:$0xff]  ;;  %186 = vmatprep.mubr.bf16.mxu0 %v8576_v2  ;;  %227 = vmatprep.mubr.bf16.mxu1 %v8576_v2  ;;  %s6836_s21 = smov 17   ;;  %s6837_s22 = smov 80   ;;  %v7060_v35 = vsel %vm136_vm1, 65535, %v8576_v2  ;;  %vm132_vm2 = vcmask 7168   ;;  %v8578_v44 = vmov 0.0  }
   0x2   :  { %v6887_v3 = vcombine.low %v6881_v1, %v6881_v1  ;;  %v6890_v4 = vshrl.u32 %v8575_v0, 7  ;;  %6822 = vset.pattern.permute.xlu0 %v8576_v2  ;;  %v6896_v5 = vld [vmem:[%s8571_s0] sm:$0xff]  ;;  %s6834_s0 = smov 18   ;;  %s6838_s23 = smov 1   ;;  %v6353_v27 = vcombine.high %v6881_v1, %v6881_v1  ;;  %vm288_vm3 = vcmask 154624  }
   0x3   :  { %s6839_s24 = smov 56   ;;  %s6840_s25 = smov 32   ;;  %v55_v29 = vld [vmem:[%s8572_s3] sm:$0xff]  ;;  %vm6850_vm4 = vmmov 0   ;;  %vm448_vm5 = vcmask 138240   ;;  %vm926_vm6 = vcmask 1039360  }
   0x4   :  { %8591 = vst [vmem:[#allocation3_spill] sm:$0xff] %v6890_v4  ;;  %106 = vrot.lane.b32.xlu1 %v6887_v3, %s6833_s19  ;;  %v32_v6 = vsub.s32 1, %v6890_v4  ;;  %v28_v7 = vsub.s32 0, %v6890_v4  ;;  %v36_v8 = vsub.s32 2, %v6890_v4  ;;  %v40_v9 = vsub.s32 3, %v6890_v4  ;;  %s6841_s26 = smov 127  }
   0x5   :  { %v44_v13 = vsub.s32 4, %v6890_v4  ;;  %v83_v20 = vsub.s32 5, %v6890_v4  ;;  %v87_v24 = vsub.s32 6, %v6890_v4  ;;  %s6842_s27 = smov 8   ;;  %s6843_s28 = smov 111   ;;  %vm1093_vm7 = vcmask 908288  }
   0x6   :  { %v6907_v10 = vrot.slane %v6896_v5, %v32_v6  ;;  %v64_v11 = vrot.slane %v6896_v5, %v28_v7  ;;  %v6915_v12 = vrot.slane %v6896_v5, %v36_v8  ;;  %v6921_v14 = vrot.slane %v6896_v5, %v40_v9  ;;  %s6844_s29 = smov 112   ;;  %s6845_s30 = smov 110  }
   0x7   :  { %v6941_v19 = vrot.slane %v6896_v5, %v44_v13  ;;  %v6953_v22 = vrot.slane %v6896_v5, %v83_v20  ;;  %v88_v25 = vrot.slane %v6896_v5, %v87_v24  ;;  %s6846_s5 = smov 88   ;;  %s6847_s6 = smov 109   ;;  %vm1258_vm8 = vcmask 900096  }
   0x8   :  { %8592 = vst [vmem:[#allocation4_spill] sm:$0xff] %v6907_v10  ;;  %8593 = vst [vmem:[#allocation5_spill] sm:$0xff] %v6915_v12  ;;  %v6925_v15 = vpack.c.bf16 %v6907_v10, %v6907_v10  ;;  %v96_v16 = vpack.c.bf16 %v64_v11, %v64_v11  ;;  %v6932_v17 = vpack.c.bf16 %v6915_v12, %v6915_v12  ;;  %s6848_s7 = smov 64   ;;  %vm1423_vm9 = vcmask 891904  }
   0x9   :  { %8594 = vst [vmem:[#allocation6_spill] sm:$0xff] %v6921_v14  ;;  %v6936_v18 = vpack.c.bf16 %v6921_v14, %v6921_v14  ;;  %8595 = vst [vmem:[#allocation7_spill] sm:$0xff] %v6941_v19  ;;  %v6950_v21 = vpack.c.bf16 %v6941_v19, %v6941_v19  ;;  %v6959_v23 = vpack.c.bf16 %v6953_v22, %v6953_v22  ;;  %vm1638_vm10 = vcmask 1043456  }
   0xa   :  { %116 = vrot.lane.b32.xlu0 %v6925_v15, %s6834_s0  ;;  %114 = vrot.lane.b32.xlu1 %v96_v16, %s6834_s0  ;;  %8596 = vst [vmem:[#allocation8_spill] sm:$0xff] %v6953_v22  ;;  %v102_v26 = vpack.c.bf16 %v88_v25, %v88_v25  ;;  %vm1634_vm11 = vcmask 64512   ;;  %vm3160_vm12 = vcmask 130048   ;;  %vm4630_vm13 = vcmask 195584  }
   0xe   :  { %118 = vrot.lane.b32.xlu0 %v6932_v17, %s6834_s0  ;;  %120 = vrot.lane.b32.xlu1 %v6936_v18, %s6834_s0 }
  0x12   :  { %122 = vrot.lane.b32.xlu0 %v6950_v21, %s6834_s0  ;;  %278 = vrot.lane.b32.xlu1 %v6925_v15, %s6835_s20 }
  0x16   :  { %124 = vrot.lane.b32.xlu0 %v6959_v23, %s6834_s0  ;;  %276 = vrot.lane.b32.xlu1 %v96_v16, %s6835_s20 }
  0x1a   :  { %280 = vrot.lane.b32.xlu0 %v6932_v17, %s6835_s20  ;;  %284 = vrot.lane.b32.xlu1 %v6950_v21, %s6835_s20 }
  0x1e   :  { %282 = vrot.lane.b32.xlu0 %v6936_v18, %s6835_s20  ;;  %438 = vrot.lane.b32.xlu1 %v6925_v15, %s6836_s21 }
  0x22   :  { %286 = vrot.lane.b32.xlu0 %v6959_v23, %s6835_s20  ;;  %436 = vrot.lane.b32.xlu1 %v96_v16, %s6836_s21 }
  0x26   :  { %440 = vrot.lane.b32.xlu0 %v6932_v17, %s6836_s21  ;;  %444 = vrot.lane.b32.xlu1 %v6950_v21, %s6836_s21 }
  0x2a   :  { %442 = vrot.lane.b32.xlu0 %v6936_v18, %s6836_s21  ;;  %446 = vrot.lane.b32.xlu1 %v6959_v23, %s6836_s21 }
  0x2e   :  { %434 = vrot.lane.b32.xlu0 %v6887_v3, %s6837_s22  ;;  %605 = vrot.lane.b32.xlu1 %v6932_v17, %s6838_s23 }
  0x32   :  { %603 = vrot.lane.b32.xlu0 %v6925_v15, %s6838_s23  ;;  %607 = vrot.lane.b32.xlu1 %v6936_v18, %s6838_s23 }
  0x36   :  { %601 = vrot.lane.b32.xlu0 %v96_v16, %s6838_s23  ;;  %599 = vrot.lane.b32.xlu1 %v6887_v3, %s6839_s24 }
  0x3a   :  { %609 = vrot.lane.b32.xlu0 %v6950_v21, %s6838_s23  ;;  %764 = vrot.lane.b32.xlu1 %v6887_v3, %s6840_s25 }
  0x3e   :  { %611 = vrot.lane.b32.xlu0 %v6959_v23, %s6838_s23  ;;  %918 = vrot.lane.b32.xlu1 %v6936_v18, %s6841_s26 }
  0x42   :  { %916 = vrot.lane.b32.xlu0 %v6932_v17, %s6841_s26  ;;  %920 = vrot.lane.b32.xlu1 %v6950_v21, %s6841_s26 }
  0x46   :  { %914 = vrot.lane.b32.xlu0 %v6925_v15, %s6841_s26  ;;  %911 = vrot.lane.b32.xlu1 %v6887_v3, %s6842_s27 }
  0x4a   :  { %922 = vrot.lane.b32.xlu0 %v6959_v23, %s6841_s26  ;;  %1083 = vrot.lane.b32.xlu1 %v6932_v17, %s6843_s28 }
  0x4e   :  { %924 = vrot.lane.b32.xlu0 %v102_v26, %s6841_s26  ;;  %1081 = vrot.lane.b32.xlu1 %v6925_v15, %s6843_s28 }
  0x52   :  { %1085 = vrot.lane.b32.xlu0 %v6936_v18, %s6843_s28  ;;  %1089 = vrot.lane.b32.xlu1 %v6959_v23, %s6843_s28 }
  0x56   :  { %1087 = vrot.lane.b32.xlu0 %v6950_v21, %s6843_s28  ;;  %1091 = vrot.lane.b32.xlu1 %v102_v26, %s6843_s28 }
  0x5a   :  { %1079 = vrot.lane.b32.xlu0 %v6353_v27, %s6844_s29  ;;  %1250 = vrot.lane.b32.xlu1 %v6936_v18, %s6845_s30 }
  0x5e   :  { %1248 = vrot.lane.b32.xlu0 %v6932_v17, %s6845_s30  ;;  %1252 = vrot.lane.b32.xlu1 %v6950_v21, %s6845_s30 }
  0x62   :  { %1246 = vrot.lane.b32.xlu0 %v6925_v15, %s6845_s30  ;;  %1244 = vrot.lane.b32.xlu1 %v6353_v27, %s6846_s5 }
  0x66   :  { %1254 = vrot.lane.b32.xlu0 %v6959_v23, %s6845_s30  ;;  %1413 = vrot.lane.b32.xlu1 %v6932_v17, %s6847_s6 }
  0x6a   :  { %1256 = vrot.lane.b32.xlu0 %v102_v26, %s6845_s30  ;;  %1411 = vrot.lane.b32.xlu1 %v6925_v15, %s6847_s6 }
  0x6e   :  { %1415 = vrot.lane.b32.xlu0 %v6936_v18, %s6847_s6  ;;  %1419 = vrot.lane.b32.xlu1 %v6959_v23, %s6847_s6 }
  0x72   :  { %1417 = vrot.lane.b32.xlu0 %v6950_v21, %s6847_s6  ;;  %1421 = vrot.lane.b32.xlu1 %v102_v26, %s6847_s6 }
  0x76   :  { %v107_v28 = vpop.permute.xlu1 %106  ;;  %1409 = vrot.lane.b32.xlu0 %v6353_v27, %s6848_s7 }
  0x7a   :  { %1576 = vperm.xlu0 %6822, %v55_v29  }
  0x7c   :  { %v117_v30 = vpop.permute.xlu0 %116  ;;  %v115_v31 = vpop.permute.xlu1 %114 }
  0x7d   :  { %v127_v32 = vsel %vm126_vm0, %v115_v31, %v117_v30 }
  0x7e   :  { %v140_v38 = vand.u32 %v7060_v35, %v127_v32 }
  0x80   :  { %v119_v33 = vpop.permute.xlu0 %118  ;;  %v121_v34 = vpop.permute.xlu1 %120 }
  0x81   :  { %v128_v36 = vsel %vm126_vm0, %v117_v30, %v119_v33  ;;  %v129_v41 = vsel %vm126_vm0, %v119_v33, %v121_v34 }
  0x82   :  { %v143_v37 = vand.u32 %v7060_v35, %v128_v36  ;;  %v146_v45 = vand.u32 %v7060_v35, %v129_v41 }
  0x84   :  { %154 = vmatprep.subr.bf16.mxu0 %v143_v37  ;;  %v123_v39 = vpop.permute.xlu0 %122  ;;  %v279_v40 = vpop.permute.xlu1 %278 }
  0x85   :  { %155 = vmatpush1.bf16.msra.mxu0 %v140_v38  ;;  %v130_v42 = vsel %vm126_vm0, %v121_v34, %v123_v39 }
  0x86   :  { %v149_v43 = vand.u32 %v7060_v35, %v130_v42  ;;  %6567 = vmatprep.subr.bf16.mxu0 %v8578_v44 }
  0x88   :  { %v125_v46 = vpop.permute.xlu0 %124  ;;  %6335 = vmatmul.mubr.msk.bf16.vlgmr.msra.gmra.mrb[0].mxu0 %vm132_vm2, %v107_v28  ;;  %195 = vmatprep.subr.bf16.mxu1 %v149_v43  ;;  %v277_v47 = vpop.permute.xlu1 %276 }
  0x89   :  { %v131_v48 = vsel %vm126_vm0, %v123_v39, %v125_v46  ;;  %196 = vmatpush1.bf16.msra.mxu1 %v146_v45  ;;  %6569 = vmatprep.mubr.msk.bf16.mxu0 %vm6850_vm4, %v8578_v44  ;;  %v289_v50 = vsel %vm288_vm3, %v277_v47, %v279_v40 }
  0x8a   :  { %v152_v49 = vand.u32 %v7060_v35, %v131_v48  ;;  %v298_v54 = vand.u32 %v289_v50, %v7060_v35 }
  0x8c   :  { %v281_v51 = vpop.permute.xlu0 %280  ;;  %6336 = vmatmul.mubr.msk.bf16.vlgmr.msra.gmra.mrb[0].mxu1 %vm132_vm2, %v107_v28  ;;  %6568 = vmatpush3.bf16.msra.mxu0 %v152_v49  ;;  %v285_v52 = vpop.permute.xlu1 %284 }
  0x8d   :  { %v290_v53 = vsel %vm288_vm3, %v279_v40, %v281_v51  ;;  %344 = vmatprep.mubr.bf16.mxu1 %v8576_v2 }
  0x8e   :  { %v301_v55 = vand.u32 %v290_v53, %v7060_v35 }
  0x90   :  { %v283_v56 = vpop.permute.xlu0 %282  ;;  %6570 = vmatmul.mubr.msk.bf16.vlgmr.msra.gmra.mrb[4].mxu0 %vm132_vm2, %v107_v28  ;;  %312 = vmatprep.subr.bf16.mxu1 %v301_v55  ;;  %v439_v57 = vpop.permute.xlu1 %438 }
  0x91   :  { %v291_v58 = vsel %vm288_vm3, %v281_v51, %v283_v56  ;;  %v292_v59 = vsel %vm288_vm3, %v283_v56, %v285_v52  ;;  %313 = vmatpush1.bf16.msra.mxu1 %v298_v54  ;;  %385 = vmatprep.mubr.bf16.mxu0 %v8576_v2  ;;  %v773_v51 = vand.u32 %v7060_v35, %v6932_v17 }
  0x92   :  { %v304_v60 = vand.u32 %v291_v58, %v7060_v35  ;;  %v307_v61 = vand.u32 %v292_v59, %v7060_v35  ;;  %6573 = vmatprep.subr.bf16.mxu1 %v8578_v44  ;;  %v770_v56 = vand.u32 %v7060_v35, %v6925_v15 }
  0x94   :  { %v287_v62 = vpop.permute.xlu0 %286  ;;  %6338 = vmatmul.mubr.msk.bf16.vlgmr.msra.gmra.mrb[4].mxu1 %vm132_vm2, %v6881_v1  ;;  %353 = vmatprep.subr.bf16.mxu0 %v307_v61  ;;  %v437_v63 = vpop.permute.xlu1 %436 }
  0x95   :  { %v293_v3 = vsel %vm288_vm3, %v285_v52, %v287_v62  ;;  %354 = vmatpush1.bf16.msra.mxu0 %v304_v60  ;;  %6575 = vmatprep.mubr.msk.bf16.mxu1 %vm6850_vm4, %v8578_v44  ;;  %v449_v11 = vsel %vm448_vm5, %v437_v63, %v439_v57  ;;  %v776_v60 = vand.u32 %v7060_v35, %v6936_v18 }
  0x96   :  { %v310_v5 = vand.u32 %v293_v3, %v7060_v35  ;;  %v458_v25 = vand.u32 %v449_v11, %v7060_v35  ;;  %v782_v18 = vand.u32 %v7060_v35, %v6959_v23 }
  0x98   :  { %v441_v16 = vpop.permute.xlu0 %440  ;;  %6339 = vmatmul.mubr.msk.bf16.vlgmr.msra.gmra.mrb[8].mxu0 %vm132_vm2, %v6881_v1  ;;  %6574 = vmatpush3.bf16.msra.mxu1 %v310_v5  ;;  %v445_v20 = vpop.permute.xlu1 %444 }
  0x99   :  { %v450_v24 = vsel %vm448_vm5, %v439_v57, %v441_v16  ;;  %504 = vmatprep.mubr.bf16.mxu0 %v8576_v2  ;;  %v779_v57 = vand.u32 %v7060_v35, %v6950_v21 }
  0x9a   :  { %v461_v26 = vand.u32 %v450_v24, %v7060_v35 }
  0x9c   :  { %v443_v27 = vpop.permute.xlu0 %442  ;;  %6576 = vmatmul.mubr.msk.bf16.vlgmr.msra.gmra.mrb[8].mxu1 %vm132_vm2, %v6881_v1  ;;  %472 = vmatprep.subr.bf16.mxu0 %v461_v26  ;;  %v447_v28 = vpop.permute.xlu1 %446 }
  0x9d   :  { %v451_v29 = vsel %vm448_vm5, %v441_v16, %v443_v27  ;;  %v452_v30 = vsel %vm448_vm5, %v443_v27, %v445_v20  ;;  %473 = vmatpush1.bf16.msra.mxu0 %v458_v25  ;;  %v453_v31 = vsel %vm448_vm5, %v445_v20, %v447_v28  ;;  %545 = vmatprep.mubr.bf16.mxu1 %v8576_v2 }
  0x9e   :  { %v464_v32 = vand.u32 %v451_v29, %v7060_v35  ;;  %v467_v33 = vand.u32 %v452_v30, %v7060_v35  ;;  %v470_v34 = vand.u32 %v453_v31, %v7060_v35  ;;  %6579 = vmatprep.subr.bf16.mxu0 %v8578_v44 }
  0xa0   :  { %v435_v1 = vpop.permute.xlu0 %434  ;;  %513 = vmatprep.subr.bf16.mxu1 %v467_v33  ;;  %v606_v36 = vpop.permute.xlu1 %605 }
  0xa1   :  { %6341 = vmatmul.mubr.msk.bf16.vlgmr.msra.gmra.mrb[12].mxu0 %vm132_vm2, %v435_v1  ;;  %514 = vmatpush1.bf16.msra.mxu1 %v464_v32 }
  0xa2   :  { %6580 = vmatpush3.bf16.msra.mxu0 %v470_v34  ;;  %6581 = vmatprep.mubr.msk.bf16.mxu0 %vm6850_vm4, %v8578_v44 }
  0xa4   :  { %v604_v37 = vpop.permute.xlu0 %603  ;;  %6342 = vmatmul.mubr.msk.bf16.vlgmr.msra.gmra.mrb[12].mxu1 %vm132_vm2, %v435_v1  ;;  %v608_v38 = vpop.permute.xlu1 %607 }
  0xa5   :  { %v615_v39 = vsel %vm132_vm2, %v604_v37, %v606_v36  ;;  %669 = vmatprep.mubr.bf16.mxu1 %v8576_v2  ;;  %v616_v46 = vsel %vm132_vm2, %v606_v36, %v608_v38 }
  0xa6   :  { %v626_v40 = vand.u32 %v615_v39, %v7060_v35  ;;  %v629_v52 = vand.u32 %v616_v46, %v7060_v35 }
  0xa8   :  { %v602_v41 = vpop.permute.xlu0 %601  ;;  %637 = vmatprep.subr.bf16.mxu1 %v626_v40  ;;  %v600_v42 = vpop.permute.xlu1 %599 }
  0xa9   :  { %v614_v43 = vsel %vm132_vm2, %v602_v41, %v604_v37  ;;  %6582 = vmatmul.mubr.msk.bf16.vlgmr.msra.gmra.mrb[16].mxu0 %vm132_vm2, %v435_v1 }
  0xaa   :  { %v623_v45 = vand.u32 %v614_v43, %v7060_v35  ;;  %710 = vmatprep.mubr.bf16.mxu0 %v8576_v2 }
  0xac   :  { %v610_v47 = vpop.permute.xlu0 %609  ;;  %638 = vmatpush1.bf16.msra.mxu1 %v623_v45  ;;  %v765_v48 = vpop.permute.xlu1 %764 }
  0xad   :  { %v617_v49 = vsel %vm132_vm2, %v608_v38, %v610_v47  ;;  %6585 = vmatprep.subr.bf16.mxu1 %v8578_v44 }
  0xae   :  { %v632_v50 = vand.u32 %v617_v49, %v7060_v35 }
  0xaf   :  { %6344 = vmatmul.mubr.msk.bf16.vlgmr.msra.gmra.mrb[16].mxu1 %vm132_vm2, %v600_v42 }
  0xb0   :  { %v612_v53 = vpop.permute.xlu0 %611  ;;  %678 = vmatprep.subr.bf16.mxu0 %v632_v50  ;;  %v919_v54 = vpop.permute.xlu1 %918  ;;  %6587 = vmatprep.mubr.msk.bf16.mxu1 %vm6850_vm4, %v8578_v44 }
  0xb1   :  { %v618_v55 = vsel %vm132_vm2, %v610_v47, %v612_v53  ;;  %679 = vmatpush1.bf16.msra.mxu0 %v629_v52 }
  0xb2   :  { %v635_v17 = vand.u32 %v618_v55, %v7060_v35  ;;  %784 = vmatprep.subr.bf16.mxu0 %v773_v51 }
  0xb4   :  { %v917_v58 = vpop.permute.xlu0 %916  ;;  %6345 = vmatmul.mubr.msk.bf16.vlgmr.msra.gmra.mrb[20].mxu0 %vm132_vm2, %v600_v42  ;;  %6586 = vmatpush3.bf16.msra.mxu1 %v635_v17  ;;  %v921_v59 = vpop.permute.xlu1 %920 }
  0xb5   :  { %v928_v61 = vsel %vm926_vm6, %v917_v58, %v919_v54  ;;  %785 = vmatpush1.bf16.msra.mxu0 %v770_v56  ;;  %825 = vmatprep.subr.bf16.mxu1 %v779_v57  ;;  %v929_v23 = vsel %vm926_vm6, %v919_v54, %v921_v59 }
  0xb6   :  { %816 = vmatprep.mubr.bf16.mxu0 %v8576_v2  ;;  %v939_v15 = vand.u32 %v928_v61, %v7060_v35  ;;  %6591 = vmatprep.subr.bf16.mxu0 %v8578_v44  ;;  %v942_v26 = vand.u32 %v929_v23, %v7060_v35 }
  0xb7   :  { %6588 = vmatmul.mubr.msk.bf16.vlgmr.msra.gmra.mrb[20].mxu1 %vm132_vm2, %v600_v42 }
  0xb8   :  { %v915_v21 = vpop.permute.xlu0 %914  ;;  %826 = vmatpush1.bf16.msra.mxu1 %v776_v60  ;;  %v912_v62 = vpop.permute.xlu1 %911  ;;  %857 = vmatprep.mubr.bf16.mxu1 %v8576_v2 }
  0xb9   :  { %950 = vmatprep.subr.bf16.mxu1 %v939_v15  ;;  %v927_v63 = vsel %vm926_vm6, %v915_v21, %v917_v58 }
  0xba   :  { %v936_v16 = vand.u32 %v927_v63, %v7060_v35 }
  0xbc   :  { %v923_v3 = vpop.permute.xlu0 %922  ;;  %6347 = vmatmul.mubr.msk.bf16.vlgmr.msra.gmra.mrb[24].mxu0 %vm132_vm2, %v765_v48  ;;  %v1084_v5 = vpop.permute.xlu1 %1083 }
  0xbd   :  { %v930_v11 = vsel %vm926_vm6, %v921_v59, %v923_v3  ;;  %6592 = vmatpush3.bf16.msra.mxu0 %v782_v18  ;;  %6593 = vmatprep.mubr.msk.bf16.mxu0 %vm6850_vm4, %v8578_v44 }
  0xbe   :  { %v945_v20 = vand.u32 %v930_v11, %v7060_v35 }
  0xbf   :  { %6348 = vmatmul.mubr.msk.bf16.vlgmr.msra.gmra.mrb[24].mxu1 %vm132_vm2, %v765_v48 }
  0xc0   :  { %951 = vmatpush1.bf16.msra.mxu1 %v936_v16  ;;  %v925_v24 = vpop.permute.xlu0 %924  ;;  %991 = vmatprep.subr.bf16.mxu0 %v945_v20  ;;  %v1082_v25 = vpop.permute.xlu1 %1081 }
  0xc1   :  { %982 = vmatprep.mubr.bf16.mxu1 %v8576_v2  ;;  %6597 = vmatprep.subr.bf16.mxu1 %v8578_v44  ;;  %v931_v27 = vsel %vm926_vm6, %v923_v3, %v925_v24  ;;  %v1094_v33 = vsel %vm1093_vm7, %v1082_v25, %v1084_v5 }
  0xc2   :  { %v948_v31 = vand.u32 %v931_v27, %v7060_v35  ;;  %v1103_v38 = vand.u32 %v1094_v33, %v7060_v35 }
  0xc4   :  { %v1086_v28 = vpop.permute.xlu0 %1085  ;;  %6594 = vmatmul.mubr.msk.bf16.vlgmr.msra.gmra.mrb[28].mxu0 %vm132_vm2, %v765_v48  ;;  %v1090_v29 = vpop.permute.xlu1 %1089 }
  0xc5   :  { %v1095_v30 = vsel %vm1093_vm7, %v1084_v5, %v1086_v28  ;;  %992 = vmatpush1.bf16.msra.mxu0 %v942_v26  ;;  %1023 = vmatprep.mubr.bf16.mxu0 %v8576_v2 }
  0xc6   :  { %v1106_v32 = vand.u32 %v1095_v30, %v7060_v35 }
  0xc7   :  { %6350 = vmatmul.mubr.msk.bf16.vlgmr.msra.gmra.mrb[28].mxu1 %vm132_vm2, %v912_v62 }
  0xc8   :  { %6598 = vmatpush3.bf16.msra.mxu1 %v948_v31  ;;  %v1088_v34 = vpop.permute.xlu0 %1087  ;;  %1117 = vmatprep.subr.bf16.mxu0 %v1106_v32  ;;  %v1092_v1 = vpop.permute.xlu1 %1091 }
  0xc9   :  { %v1097_v36 = vsel %vm1093_vm7, %v1088_v34, %v1090_v29  ;;  %6599 = vmatprep.mubr.msk.bf16.mxu1 %vm6850_vm4, %v8578_v44  ;;  %v1096_v39 = vsel %vm1093_vm7, %v1086_v28, %v1088_v34  ;;  %v1098_v43 = vsel %vm1093_vm7, %v1090_v29, %v1092_v1  ;;  %v8580_v29 = vmov 0.0|0.0  }
  0xca   :  { %v1112_v37 = vand.u32 %v1097_v36, %v7060_v35  ;;  %v1109_v42 = vand.u32 %v1096_v39, %v7060_v35  ;;  %v1115_v49 = vand.u32 %v1098_v43, %v7060_v35  ;;  %1617 = vrot.lane.b32.xlu1 %v8580_v29, %s6834_s0 }
  0xcc   :  { %v1080_v40 = vpop.permute.xlu0 %1079  ;;  %6351 = vmatmul.mubr.msk.bf16.vlgmr.msra.gmra.mrb[32].mxu0 %vm132_vm2, %v912_v62  ;;  %1158 = vmatprep.subr.bf16.mxu1 %v1112_v37  ;;  %v1251_v41 = vpop.permute.xlu1 %1250 }
  0xcd   :  { %1118 = vmatpush1.bf16.msra.mxu0 %v1103_v38  ;;  %1149 = vmatprep.mubr.bf16.mxu0 %v8576_v2 }
  0xce   :  { %6603 = vmatprep.subr.bf16.mxu0 %v8578_v44 }
  0xcf   :  { %6600 = vmatmul.mubr.msk.bf16.vlgmr.msra.gmra.mrb[32].mxu1 %vm132_vm2, %v912_v62 }
  0xd0   :  { %1159 = vmatpush1.bf16.msra.mxu1 %v1109_v42  ;;  %v1249_v45 = vpop.permute.xlu0 %1248  ;;  %v1253_v46 = vpop.permute.xlu1 %1252  ;;  %1190 = vmatprep.mubr.bf16.mxu1 %v8576_v2 }
  0xd1   :  { %v1260_v47 = vsel %vm1258_vm8, %v1249_v45, %v1251_v41  ;;  %v1261_v54 = vsel %vm1258_vm8, %v1251_v41, %v1253_v46 }
  0xd2   :  { %v1271_v48 = vand.u32 %v1260_v47, %v7060_v35  ;;  %v1274_v58 = vand.u32 %v1261_v54, %v7060_v35 }
  0xd4   :  { %v1247_v50 = vpop.permute.xlu0 %1246  ;;  %6354 = vmatmul.mubr.msk.bf16.vlgmr.msra.gmra.mrb[36].mxu0 %vm132_vm2, %v1080_v40  ;;  %1282 = vmatprep.subr.bf16.mxu1 %v1271_v48  ;;  %v1245_v51 = vpop.permute.xlu1 %1244 }
  0xd5   :  { %v1259_v52 = vsel %vm1258_vm8, %v1247_v50, %v1249_v45  ;;  %6604 = vmatpush3.bf16.msra.mxu0 %v1115_v49  ;;  %6605 = vmatprep.mubr.msk.bf16.mxu0 %vm6850_vm4, %v8578_v44 }
  0xd6   :  { %v1268_v53 = vand.u32 %v1259_v52, %v7060_v35 }
  0xd7   :  { %6355 = vmatmul.mubr.msk.bf16.vlgmr.msra.gmra.mrb[36].mxu1 %vm132_vm2, %v1080_v40 }
  0xd8   :  { %v1255_v55 = vpop.permute.xlu0 %1254  ;;  %1283 = vmatpush1.bf16.msra.mxu1 %v1268_v53  ;;  %v1414_v56 = vpop.permute.xlu1 %1413  ;;  %1314 = vmatprep.mubr.bf16.mxu1 %v8576_v2 }
  0xd9   :  { %v1262_v57 = vsel %vm1258_vm8, %v1253_v46, %v1255_v55  ;;  %6609 = vmatprep.subr.bf16.mxu1 %v8578_v44 }
  0xda   :  { %v1277_v17 = vand.u32 %v1262_v57, %v7060_v35 }
  0xdc   :  { %v1257_v59 = vpop.permute.xlu0 %1256  ;;  %6606 = vmatmul.mubr.msk.bf16.vlgmr.msra.gmra.mrb[40].mxu0 %vm132_vm2, %v1080_v40  ;;  %1323 = vmatprep.subr.bf16.mxu0 %v1277_v17  ;;  %v1412_v60 = vpop.permute.xlu1 %1411 }
  0xdd   :  { %v1263_v61 = vsel %vm1258_vm8, %v1255_v55, %v1257_v59  ;;  %1324 = vmatpush1.bf16.msra.mxu0 %v1274_v58  ;;  %1355 = vmatprep.mubr.bf16.mxu0 %v8576_v2  ;;  %v1424_v21 = vsel %vm1423_vm9, %v1412_v60, %v1414_v56 }
  0xde   :  { %v1280_v15 = vand.u32 %v1263_v61, %v7060_v35  ;;  %v1433_v3 = vand.u32 %v1424_v21, %v7060_v35 }
  0xdf   :  { %6357 = vmatmul.mubr.msk.bf16.vlgmr.msra.gmra.mrb[40].mxu1 %vm132_vm2, %v1245_v51 }
  0xe0   :  { %v1416_v62 = vpop.permute.xlu0 %1415  ;;  %6610 = vmatpush3.bf16.msra.mxu1 %v1280_v15  ;;  %v1420_v18 = vpop.permute.xlu1 %1419  ;;  %6611 = vmatprep.mubr.msk.bf16.mxu1 %vm6850_vm4, %v8578_v44 }
  0xe1   :  { %v1425_v63 = vsel %vm1423_vm9, %v1414_v56, %v1416_v62 }
  0xe2   :  { %v1436_v5 = vand.u32 %v1425_v63, %v7060_v35 }
  0xe4   :  { %v1418_v11 = vpop.permute.xlu0 %1417  ;;  %6358 = vmatmul.mubr.msk.bf16.vlgmr.msra.gmra.mrb[44].mxu0 %vm132_vm2, %v1245_v51  ;;  %1447 = vmatprep.subr.bf16.mxu0 %v1436_v5  ;;  %v1422_v16 = vpop.permute.xlu1 %1421 }
  0xe5   :  { %v1426_v20 = vsel %vm1423_vm9, %v1416_v62, %v1418_v11  ;;  %v1427_v23 = vsel %vm1423_vm9, %v1418_v11, %v1420_v18  ;;  %1448 = vmatpush1.bf16.msra.mxu0 %v1433_v3  ;;  %1479 = vmatprep.mubr.bf16.mxu0 %v8576_v2  ;;  %v1428_v26 = vsel %vm1423_vm9, %v1420_v18, %v1422_v16 }
  0xe6   :  { %v1439_v24 = vand.u32 %v1426_v20, %v7060_v35  ;;  %v1442_v25 = vand.u32 %v1427_v23, %v7060_v35  ;;  %6615 = vmatprep.subr.bf16.mxu0 %v8578_v44  ;;  %v1445_v28 = vand.u32 %v1428_v26, %v7060_v35  ;;  %v7231_v35 = vld [vmem:[%s8570_s2 + $0x8] sm:$0xff] }
  0xe7   :  { %6612 = vmatmul.mubr.msk.bf16.vlgmr.msra.gmra.mrb[44].mxu1 %vm132_vm2, %v1245_v51  ;;  %v7235_v30 = vcombine.low %v7231_v35, %v7231_v35 }
  0xe8   :  { %1488 = vmatprep.subr.bf16.mxu1 %v1442_v25  ;;  %1520 = vmatprep.mubr.bf16.mxu1 %v8576_v2  ;;  %v1410_v27 = vpop.permute.xlu0 %1409 }
  0xe9   :  { %1489 = vmatpush1.bf16.msra.mxu1 %v1439_v24  ;;  %1609 = vrot.lane.b32.xlu1 %v7235_v30, %s6833_s19 }
  0xec   :  { %6360 = vmatmul.mubr.msk.bf16.vlgmr.msra.gmra.mrb[48].mxu0 %vm132_vm2, %v1410_v27 }
  0xed   :  { %6616 = vmatpush3.bf16.msra.mxu0 %v1445_v28  ;;  %6617 = vmatprep.mubr.msk.bf16.mxu0 %vm6850_vm4, %v8578_v44 }
  0xef   :  { %6361 = vmatmul.mubr.msk.bf16.vlgmr.msra.gmra.mrb[48].mxu1 %vm132_vm2, %v1410_v27 }
  0xf0   :  { %1686 = vmatprep.mubr.bf16.mxu1 %v8576_v2 }
  0xf4   :  { %6618 = vmatmul.mubr.msk.bf16.vlgmr.msra.gmra.mrb[52].mxu0 %vm132_vm2, %v1410_v27 }
  0xf5   :  { %1727 = vmatprep.mubr.bf16.mxu0 %v8576_v2 }
 0x15b   :  { %v188_v31 = vpop.f32.mrb[0].mxu0 }
 0x15c   :  { %v190_v32 = vpop.f32.mrb[1].mxu0 }
 0x15d   :  { %v192_v33 = vpop.f32.mrb[2].mxu0 }
 0x15e   :  { %v193_v34 = vpop.f32.mrb[3].mxu0 }
 0x15f   :  { %v229_v1 = vpop.f32.mrb[0].mxu1 }
 0x160   :  { %v231_v36 = vpop.f32.mrb[1].mxu1 }
 0x161   :  { %v233_v37 = vpop.f32.mrb[2].mxu1 }
 0x162   :  { %v234_v38 = vpop.f32.mrb[3].mxu1 }
 0x163   :  { %v270_v39 = vpop.f32.mrb[4].mxu0 }
 0x164   :  { %v6571_v40 = vpop.f32.mrb[5].mxu0 }
 0x165   :  { %v273_v41 = vpop.f32.mrb[6].mxu0 }
 0x166   :  { %v6572_v42 = vpop.f32.mrb[7].mxu0 }
 0x167   :  { %v346_v43 = vpop.f32.mrb[4].mxu1 }
 0x168   :  { %v347_v45 = vadd.f32 %v346_v43, %v188_v31  ;;  %v348_v46 = vpop.f32.mrb[5].mxu1 }
 0x169   :  { %v349_v47 = vadd.f32 %v348_v46, %v190_v32  ;;  %v350_v48 = vpop.f32.mrb[6].mxu1 }
 0x16a   :  { %v351_v49 = vpop.f32.mrb[7].mxu1 }
 0x16b   :  { %v387_v50 = vpop.f32.mrb[8].mxu0 }
 0x16c   :  { %v388_v51 = vadd.f32 %v387_v50, %v229_v1  ;;  %v389_v52 = vpop.f32.mrb[9].mxu0 }
 0x16d   :  { %v390_v53 = vadd.f32 %v389_v52, %v231_v36  ;;  %v391_v54 = vpop.f32.mrb[10].mxu0 }
 0x16e   :  { %v392_v55 = vpop.f32.mrb[11].mxu0 }
 0x16f   :  { %v428_v56 = vpop.f32.mrb[8].mxu1 }
 0x170   :  { %v429_v57 = vadd.f32 %v428_v56, %v270_v39  ;;  %v6577_v17 = vpop.f32.mrb[9].mxu1 }
 0x171   :  { %v431_v58 = vpop.f32.mrb[10].mxu1 }
 0x172   :  { %v6578_v59 = vpop.f32.mrb[11].mxu1 }
 0x174   :  { %v506_v60 = vpop.f32.mrb[12].mxu0 }
 0x175   :  { %v594_v61 = vadd.f32 %v506_v60, %v347_v45  ;;  %v508_v15 = vpop.f32.mrb[13].mxu0 }
 0x176   :  { %v595_v21 = vadd.f32 %v508_v15, %v349_v47  ;;  %v510_v62 = vpop.f32.mrb[14].mxu0 }
 0x177   :  { %v511_v18 = vpop.f32.mrb[15].mxu0  ;;  %v547_v63 = vpop.f32.mrb[12].mxu1 }
 0x178   :  { %v596_v3 = vadd.f32 %v547_v63, %v388_v51  ;;  %v549_v5 = vpop.f32.mrb[13].mxu1 }
 0x179   :  { %v597_v11 = vadd.f32 %v549_v5, %v390_v53  ;;  %v551_v16 = vpop.f32.mrb[14].mxu1 }
 0x17a   :  { %v552_v20 = vpop.f32.mrb[15].mxu1 }
 0x17c   :  { %v588_v23 = vpop.f32.mrb[16].mxu0 }
 0x17d   :  { %v598_v24 = vadd.f32 %v588_v23, %v429_v57  ;;  %v6583_v25 = vpop.f32.mrb[17].mxu0 }
 0x17e   :  { %v591_v26 = vpop.f32.mrb[18].mxu0 }
 0x17f   :  { %v6584_v27 = vpop.f32.mrb[19].mxu0 }
 0x182   :  { %v671_v28 = vpop.f32.mrb[16].mxu1 }
 0x183   :  { %v759_v31 = vadd.f32 %v671_v28, %v594_v61  ;;  %v673_v32 = vpop.f32.mrb[17].mxu1 }
 0x184   :  { %v760_v33 = vadd.f32 %v673_v32, %v595_v21  ;;  %v675_v34 = vpop.f32.mrb[18].mxu1 }
 0x185   :  { %v676_v1 = vpop.f32.mrb[19].mxu1 }
 0x187   :  { %v712_v36 = vpop.f32.mrb[20].mxu0 }
 0x188   :  { %v761_v37 = vadd.f32 %v712_v36, %v596_v3  ;;  %v714_v38 = vpop.f32.mrb[21].mxu0 }
 0x189   :  { %v762_v39 = vadd.f32 %v714_v38, %v597_v11  ;;  %v716_v40 = vpop.f32.mrb[22].mxu0 }
 0x18a   :  { %v717_v41 = vpop.f32.mrb[23].mxu0  ;;  %v753_v42 = vpop.f32.mrb[20].mxu1 }
 0x18b   :  { %v763_v43 = vadd.f32 %v753_v42, %v598_v24  ;;  %v6589_v45 = vpop.f32.mrb[21].mxu1 }
 0x18c   :  { %v756_v46 = vpop.f32.mrb[22].mxu1 }
 0x18d   :  { %v6590_v47 = vpop.f32.mrb[23].mxu1 }
 0x18f   :  { %v818_v48 = vpop.f32.mrb[24].mxu0 }
 0x190   :  { %v906_v49 = vadd.f32 %v818_v48, %v759_v31  ;;  %v820_v50 = vpop.f32.mrb[25].mxu0 }
 0x191   :  { %v907_v51 = vadd.f32 %v820_v50, %v760_v33  ;;  %v822_v52 = vpop.f32.mrb[26].mxu0 }
 0x192   :  { %v823_v53 = vpop.f32.mrb[27].mxu0  ;;  %v859_v54 = vpop.f32.mrb[24].mxu1 }
 0x193   :  { %v908_v55 = vadd.f32 %v859_v54, %v761_v37  ;;  %v861_v56 = vpop.f32.mrb[25].mxu1 }
 0x194   :  { %v909_v57 = vadd.f32 %v861_v56, %v762_v39  ;;  %v863_v17 = vpop.f32.mrb[26].mxu1 }
 0x195   :  { %v864_v58 = vpop.f32.mrb[27].mxu1 }
 0x197   :  { %v900_v59 = vpop.f32.mrb[28].mxu0 }
 0x198   :  { %v910_v60 = vadd.f32 %v900_v59, %v763_v43  ;;  %v6595_v61 = vpop.f32.mrb[29].mxu0 }
 0x199   :  { %v903_v15 = vpop.f32.mrb[30].mxu0 }
 0x19a   :  { %v6596_v21 = vpop.f32.mrb[31].mxu0  ;;  %v984_v62 = vpop.f32.mrb[28].mxu1 }
 0x19b   :  { %v1072_v18 = vadd.f32 %v984_v62, %v906_v49  ;;  %v986_v63 = vpop.f32.mrb[29].mxu1 }
 0x19c   :  { %v1073_v3 = vadd.f32 %v986_v63, %v907_v51  ;;  %v988_v5 = vpop.f32.mrb[30].mxu1 }
 0x19d   :  { %v989_v11 = vpop.f32.mrb[31].mxu1 }
 0x19f   :  { %v1025_v16 = vpop.f32.mrb[32].mxu0 }
 0x1a0   :  { %v1074_v20 = vadd.f32 %v1025_v16, %v908_v55  ;;  %v1027_v23 = vpop.f32.mrb[33].mxu0  ;;  %v1577_v16 = vpop.permute.xlu0 %1576 }
 0x1a1   :  { %v1075_v24 = vadd.f32 %v1027_v23, %v909_v57  ;;  %v1029_v25 = vpop.f32.mrb[34].mxu0 }
 0x1a2   :  { %v1030_v26 = vpop.f32.mrb[35].mxu0  ;;  %v1066_v27 = vpop.f32.mrb[32].mxu1 }
 0x1a3   :  { %v1076_v28 = vadd.f32 %v1066_v27, %v910_v60  ;;  %v6601_v31 = vpop.f32.mrb[33].mxu1 }
 0x1a4   :  { %v1069_v32 = vpop.f32.mrb[34].mxu1 }
 0x1a5   :  { %v6602_v33 = vpop.f32.mrb[35].mxu1 }
 0x1a7   :  { %v1151_v34 = vpop.f32.mrb[36].mxu0 }
 0x1a8   :  { %v1239_v1 = vadd.f32 %v1151_v34, %v1072_v18  ;;  %v1153_v36 = vpop.f32.mrb[37].mxu0 }
 0x1a9   :  { %v1240_v37 = vadd.f32 %v1153_v36, %v1073_v3  ;;  %v1155_v38 = vpop.f32.mrb[38].mxu0  ;;  %v24_v3 = vld [vmem:[%s8573_s1] sm:$0x1f] }
 0x1aa   :  { %v1156_v39 = vpop.f32.mrb[39].mxu0  ;;  %v1192_v40 = vpop.f32.mrb[36].mxu1  ;;  %v7248_v27 = vrot.slane %v24_v3, %v32_v6  ;;  %v7252_v34 = vrot.slane %v24_v3, %v36_v8  ;;  %v7266_v8 = vrot.slane %v24_v3, %v40_v9 }
 0x1ab   :  { %v1241_v41 = vadd.f32 %v1192_v40, %v1074_v20  ;;  %v1194_v42 = vpop.f32.mrb[37].mxu1  ;;  %v7244_v20 = vrot.slane %v24_v3, %v28_v7 }
 0x1ac   :  { %v1242_v43 = vadd.f32 %v1194_v42, %v1075_v24  ;;  %v1196_v45 = vpop.f32.mrb[38].mxu1 }
 0x1ad   :  { %v1197_v46 = vpop.f32.mrb[39].mxu1 }
 0x1af   :  { %v1233_v47 = vpop.f32.mrb[40].mxu0 }
 0x1b0   :  { %v1243_v48 = vadd.f32 %v1233_v47, %v1076_v28  ;;  %v6607_v49 = vpop.f32.mrb[41].mxu0 }
 0x1b1   :  { %v1236_v50 = vpop.f32.mrb[42].mxu0 }
 0x1b2   :  { %v6608_v51 = vpop.f32.mrb[43].mxu0  ;;  %v1316_v52 = vpop.f32.mrb[40].mxu1 }
 0x1b3   :  { %v1404_v53 = vadd.f32 %v1316_v52, %v1239_v1  ;;  %v1318_v54 = vpop.f32.mrb[41].mxu1  ;;  %v7288_v51 = vrot.slane %v24_v3, %v44_v13 }
 0x1b4   :  { %v1405_v55 = vadd.f32 %v1318_v54, %v1240_v37  ;;  %v1320_v56 = vpop.f32.mrb[42].mxu1 }
 0x1b5   :  { %v1321_v57 = vpop.f32.mrb[43].mxu1  ;;  %v1618_v56 = vpop.permute.xlu1 %1617 }
 0x1b6   :  { %v56_v57 = vld [vmem:[%s8572_s3 + $0x8] sm:$0xff] }
 0x1b7   :  { %v1357_v17 = vpop.f32.mrb[44].mxu0 }
 0x1b8   :  { %v1406_v58 = vadd.f32 %v1357_v17, %v1241_v41  ;;  %v1359_v59 = vpop.f32.mrb[45].mxu0 }
 0x1b9   :  { %v1407_v60 = vadd.f32 %v1359_v59, %v1242_v43  ;;  %v1361_v61 = vpop.f32.mrb[46].mxu0  ;;  %v1610_v17 = vpop.permute.xlu1 %1609 }
 0x1ba   :  { %v1362_v15 = vpop.f32.mrb[47].mxu0  ;;  %v1398_v21 = vpop.f32.mrb[44].mxu1 }
 0x1bb   :  { %v1408_v62 = vadd.f32 %v1398_v21, %v1243_v48  ;;  %v6613_v18 = vpop.f32.mrb[45].mxu1 }
 0x1bc   :  { %v1401_v63 = vpop.f32.mrb[46].mxu1 }
 0x1bd   :  { %v6614_v5 = vpop.f32.mrb[47].mxu1 }
 0x1bf   :  { %v1481_v11 = vpop.f32.mrb[48].mxu0 }
 0x1c0   :  { %v1569_v23 = vadd.f32 %v1481_v11, %v1404_v53  ;;  %v1483_v24 = vpop.f32.mrb[49].mxu0 }
 0x1c1   :  { %v1570_v25 = vadd.f32 %v1483_v24, %v1405_v55  ;;  %v1485_v26 = vpop.f32.mrb[50].mxu0 }
 0x1c2   :  { %v1579_v28 = vadd.f32 %v1577_v16, %v1569_v23  ;;  %v1486_v31 = vpop.f32.mrb[51].mxu0  ;;  %v1522_v32 = vpop.f32.mrb[48].mxu1 }
 0x1c3   :  { %v1580_v33 = vadd.f32 %v1577_v16, %v1570_v25  ;;  %v1571_v1 = vadd.f32 %v1522_v32, %v1406_v58  ;;  %v1524_v36 = vpop.f32.mrb[49].mxu1 }
 0x1c4   :  { %v7255_v7 = vmul.f32 %v1579_v28, %v7244_v20  ;;  %v1572_v37 = vadd.f32 %v1524_v36, %v1407_v60  ;;  %v1526_v38 = vpop.f32.mrb[50].mxu1 }
 0x1c5   :  { %v1581_v39 = vadd.f32 %v1577_v16, %v1571_v1  ;;  %v1527_v40 = vpop.f32.mrb[51].mxu1  ;;  %v7258_v6 = vmul.f32 %v1580_v33, %v7248_v27 }
 0x1c6   :  { %v7262_v41 = vpack.c.bf16 %v7255_v7, %v7255_v7  ;;  %v1582_v42 = vadd.f32 %v1577_v16, %v1572_v37 }
 0x1c7   :  { %v7269_v43 = vmul.f32 %v1581_v39, %v7252_v34  ;;  %v1563_v45 = vpop.f32.mrb[52].mxu0  ;;  %v7281_v9 = vpack.c.bf16 %v7258_v6, %v7258_v6 }
 0x1c8   :  { %v1573_v46 = vadd.f32 %v1563_v45, %v1408_v62  ;;  %1778 = vrot.lane.b32.xlu0 %v7262_v41, %s6835_s20  ;;  %1619 = vrot.lane.b32.xlu1 %v7262_v41, %s6834_s0  ;;  %v6619_v47 = vpop.f32.mrb[53].mxu0  ;;  %v7284_v50 = vmul.f32 %v1582_v42, %v7266_v8 }
 0x1c9   :  { %v7277_v48 = vpack.c.bf16 %v7269_v43, %v7269_v43  ;;  %v1566_v49 = vpop.f32.mrb[54].mxu0 }
 0x1ca   :  { %v1583_v52 = vadd.f32 %v1577_v16, %v1573_v46  ;;  %v6620_v53 = vpop.f32.mrb[55].mxu0  ;;  %v7296_v54 = vpack.c.bf16 %v7284_v50, %v7284_v50 }
 0x1cc   :  { %1621 = vrot.lane.b32.xlu0 %v7281_v9, %s6834_s0  ;;  %1623 = vrot.lane.b32.xlu1 %v7277_v48, %s6834_s0  ;;  %v7299_v55 = vmul.f32 %v1583_v52, %v7288_v51 }
 0x1ce   :  { %v7307_v13 = vpack.c.bf16 %v7299_v55, %v7299_v55 }
 0x1d0   :  { %1776 = vrot.lane.b32.xlu1 %v8580_v29, %s6835_s20  ;;  %1625 = vrot.lane.b32.xlu0 %v7296_v54, %s6834_s0 }
 0x1d4   :  { %1780 = vrot.lane.b32.xlu1 %v7281_v9, %s6835_s20  ;;  %1627 = vrot.lane.b32.xlu0 %v7307_v13, %s6834_s0 }
 0x1d8   :  { %1784 = vrot.lane.b32.xlu1 %v7296_v54, %s6835_s20  ;;  %1782 = vrot.lane.b32.xlu0 %v7277_v48, %s6835_s20 }
 0x1dc   :  { %1935 = vrot.lane.b32.xlu1 %v8580_v29, %s6836_s21  ;;  %1937 = vrot.lane.b32.xlu0 %v7262_v41, %s6836_s21 }
 0x1e0   :  { %1939 = vrot.lane.b32.xlu1 %v7281_v9, %s6836_s21  ;;  %1786 = vrot.lane.b32.xlu0 %v7307_v13, %s6835_s20 }
 0x1e4   :  { %1943 = vrot.lane.b32.xlu1 %v7296_v54, %s6836_s21  ;;  %1941 = vrot.lane.b32.xlu0 %v7277_v48, %s6836_s21 }
 0x1e8   :  { %2101 = vrot.lane.b32.xlu1 %v7262_v41, %s6838_s23  ;;  %1933 = vrot.lane.b32.xlu0 %v7235_v30, %s6837_s22 }
 0x1ec   :  { %1945 = vrot.lane.b32.xlu1 %v7307_v13, %s6836_s21  ;;  %2099 = vrot.lane.b32.xlu0 %v8580_v29, %s6838_s23 }
 0x1f0   :  { %2097 = vrot.lane.b32.xlu1 %v7235_v30, %s6839_s24  ;;  %2103 = vrot.lane.b32.xlu0 %v7281_v9, %s6838_s23 }
 0x1f4   :  { %2107 = vrot.lane.b32.xlu1 %v7296_v54, %s6838_s23  ;;  %2105 = vrot.lane.b32.xlu0 %v7277_v48, %s6838_s23 }
 0x1f8   :  { %2261 = vrot.lane.b32.xlu1 %v7235_v30, %s6840_s25  ;;  %2109 = vrot.lane.b32.xlu0 %v7307_v13, %s6838_s23 }
 0x1fc   :  { %2430 = vrot.lane.b32.xlu1 %v7281_v9, %s6841_s26  ;;  %2428 = vrot.lane.b32.xlu0 %v7262_v41, %s6841_s26 }
 0x200   :  { %2420 = vrot.lane.b32.xlu1 %v7235_v30, %s6842_s27  ;;  %2432 = vrot.lane.b32.xlu0 %v7277_v48, %s6841_s26  ;;  %v6394_v30 = vcombine.high %v7231_v35, %v7231_v35 }
 0x204   :  { %2594 = vrot.lane.b32.xlu1 %v7262_v41, %s6843_s28  ;;  %2434 = vrot.lane.b32.xlu0 %v7296_v54, %s6841_s26 }
 0x208   :  { %2436 = vrot.lane.b32.xlu1 %v7307_v13, %s6841_s26  ;;  %2438 = vrot.lane.b32.xlu0 %v8580_v29, %s6841_s26 }
 0x20c   :  { %2598 = vrot.lane.b32.xlu1 %v7277_v48, %s6843_s28  ;;  %2596 = vrot.lane.b32.xlu0 %v7281_v9, %s6843_s28 }
 0x210   :  { %2604 = vrot.lane.b32.xlu1 %v8580_v29, %s6843_s28  ;;  %2600 = vrot.lane.b32.xlu0 %v7296_v54, %s6843_s28 }
 0x214   :  { %2602 = vrot.lane.b32.xlu1 %v7307_v13, %s6843_s28  ;;  %2592 = vrot.lane.b32.xlu0 %v6394_v30, %s6844_s29 }
 0x218   :  { %2760 = vrot.lane.b32.xlu1 %v7281_v9, %s6845_s30  ;;  %2758 = vrot.lane.b32.xlu0 %v7262_v41, %s6845_s30 }
 0x21c   :  { %2756 = vrot.lane.b32.xlu1 %v6394_v30, %s6846_s5  ;;  %2762 = vrot.lane.b32.xlu0 %v7277_v48, %s6845_s30 }
 0x220   :  { %2766 = vrot.lane.b32.xlu1 %v7307_v13, %s6845_s30  ;;  %2764 = vrot.lane.b32.xlu0 %v7296_v54, %s6845_s30 }
 0x224   :  { %2922 = vrot.lane.b32.xlu1 %v7262_v41, %s6847_s6  ;;  %2768 = vrot.lane.b32.xlu0 %v8580_v29, %s6845_s30 }
 0x228   :  { %2926 = vrot.lane.b32.xlu1 %v7277_v48, %s6847_s6  ;;  %2924 = vrot.lane.b32.xlu0 %v7281_v9, %s6847_s6 }
 0x22c   :  { %2930 = vrot.lane.b32.xlu1 %v7307_v13, %s6847_s6  ;;  %2928 = vrot.lane.b32.xlu0 %v7296_v54, %s6847_s6 }
 0x230   :  { %2932 = vrot.lane.b32.xlu1 %v8580_v29, %s6847_s6  ;;  %2920 = vrot.lane.b32.xlu0 %v6394_v30, %s6848_s7 }
 0x234   :  { %3086 = vperm.xlu0 %6822, %v56_v57   ;;  %3138 = vrot.lane.b32.xlu1 %v8580_v29, %s6834_s0 }
 0x23a   :  { %v1779_v58 = vpop.permute.xlu0 %1778  ;;  %v1620_v59 = vpop.permute.xlu1 %1619 }
 0x23b   :  { %v1629_v60 = vsel %vm126_vm0, %v1618_v56, %v1620_v59 }
 0x23c   :  { %v1640_v62 = vsel %vm1638_vm10, %v1629_v60, 0 }
 0x23e   :  { %v1622_v61 = vpop.permute.xlu0 %1621  ;;  %v1624_v15 = vpop.permute.xlu1 %1623 }
 0x23f   :  { %v1630_v21 = vsel %vm126_vm0, %v1620_v59, %v1622_v61  ;;  %v1631_v18 = vsel %vm126_vm0, %v1622_v61, %v1624_v15 }
 0x240   :  { %6364 = vmatprep.subr.msk.bf16.mxu1 %vm1638_vm10, %v1630_v21  ;;  %v1646_v11 = vsel %vm1638_vm10, %v1631_v18, 0 }
 0x241   :  { %1655 = vmatpush1.bf16.msra.mxu1 %v1640_v62 }
 0x242   :  { %v1626_v63 = vpop.permute.xlu0 %1625  ;;  %v1777_v3 = vpop.permute.xlu1 %1776  ;;  %6621 = vmatprep.subr.bf16.mxu1 %v8578_v44 }
 0x243   :  { %v1632_v5 = vsel %vm126_vm0, %v1624_v15, %v1626_v63  ;;  %v1788_v16 = vsel %vm288_vm3, %v1777_v3, %v1779_v58 }
 0x244   :  { %6365 = vmatmul.mubr.msk.bf16.vlgmr.msra.gmra.mrb[52].mxu1 %vm1634_vm11, %v1610_v17  ;;  %6366 = vmatprep.subr.msk.bf16.mxu0 %vm1638_vm10, %v1632_v5  ;;  %v1797_v28 = vsel %vm1638_vm10, %v1788_v16, 0 }
 0x245   :  { %1696 = vmatpush1.bf16.msra.mxu0 %v1646_v11  ;;  %6623 = vmatprep.mubr.msk.bf16.mxu1 %vm6850_vm4, %v8578_v44 }
 0x246   :  { %v1628_v23 = vpop.permute.xlu0 %1627  ;;  %v1781_v24 = vpop.permute.xlu1 %1780 }
 0x247   :  { %v1633_v25 = vsel %vm126_vm0, %v1626_v63, %v1628_v23  ;;  %v1789_v26 = vsel %vm288_vm3, %v1779_v58, %v1781_v24 }
 0x248   :  { %v1652_v31 = vsel %vm1638_vm10, %v1633_v25, 0  ;;  %6367 = vmatmul.mubr.msk.bf16.vlgmr.msra.gmra.mrb[56].mxu0 %vm1634_vm11, %v1610_v17  ;;  %6369 = vmatprep.subr.msk.bf16.mxu0 %vm1638_vm10, %v1789_v26 }
 0x249   :  { %6622 = vmatpush3.bf16.msra.mxu1 %v1652_v31  ;;  %1812 = vmatpush1.bf16.msra.mxu0 %v1797_v28 }
 0x24a   :  { %v1783_v32 = vpop.permute.xlu0 %1782  ;;  %v1785_v33 = vpop.permute.xlu1 %1784  ;;  %1843 = vmatprep.mubr.bf16.mxu0 %v8576_v2  ;;  %6627 = vmatprep.subr.bf16.mxu0 %v8578_v44 }
 0x24b   :  { %v1790_v1 = vsel %vm288_vm3, %v1781_v24, %v1783_v32  ;;  %v1791_v36 = vsel %vm288_vm3, %v1783_v32, %v1785_v33  ;;  %v2267_v32 = vsel %vm1638_vm10, %v7262_v41, 0 }
 0x24c   :  { %6624 = vmatmul.mubr.msk.bf16.vlgmr.msra.gmra.mrb[56].mxu1 %vm1634_vm11, %v1610_v17  ;;  %6371 = vmatprep.subr.msk.bf16.mxu1 %vm1638_vm10, %v1791_v36  ;;  %v1803_v37 = vsel %vm1638_vm10, %v1790_v1, 0 }
 0x24d   :  { %1853 = vmatpush1.bf16.msra.mxu1 %v1803_v37  ;;  %1884 = vmatprep.mubr.bf16.mxu1 %v8576_v2 }
 0x24e   :  { %v1938_v38 = vpop.permute.xlu0 %1937  ;;  %v1936_v39 = vpop.permute.xlu1 %1935 }
 0x24f   :  { %v1947_v40 = vsel %vm448_vm5, %v1936_v39, %v1938_v38 }
 0x250   :  { %6370 = vmatmul.mubr.msk.bf16.vlgmr.msra.gmra.mrb[60].mxu0 %vm1634_vm11, %v7231_v35  ;;  %v1956_v49 = vsel %vm1638_vm10, %v1947_v40, 0 }
 0x251   :  { %6629 = vmatprep.mubr.msk.bf16.mxu0 %vm6850_vm4, %v8578_v44 }
 0x252   :  { %v1787_v42 = vpop.permute.xlu0 %1786  ;;  %v1940_v45 = vpop.permute.xlu1 %1939 }
 0x253   :  { %v1792_v46 = vsel %vm288_vm3, %v1785_v33, %v1787_v42  ;;  %v1948_v47 = vsel %vm448_vm5, %v1938_v38, %v1940_v45 }
 0x254   :  { %v1809_v52 = vsel %vm1638_vm10, %v1792_v46, 0  ;;  %6372 = vmatmul.mubr.msk.bf16.vlgmr.msra.gmra.mrb[60].mxu1 %vm1634_vm11, %v7231_v35  ;;  %6374 = vmatprep.subr.msk.bf16.mxu1 %vm1638_vm10, %v1948_v47 }
 0x255   :  { %6628 = vmatpush3.bf16.msra.mxu0 %v1809_v52  ;;  %1971 = vmatpush1.bf16.msra.mxu1 %v1956_v49 }
 0x256   :  { %v1942_v53 = vpop.permute.xlu0 %1941  ;;  %v1944_v30 = vpop.permute.xlu1 %1943  ;;  %2002 = vmatprep.mubr.bf16.mxu1 %v8576_v2  ;;  %6633 = vmatprep.subr.bf16.mxu1 %v8578_v44 }
 0x257   :  { %v1949_v56 = vsel %vm448_vm5, %v1940_v45, %v1942_v53  ;;  %v1950_v57 = vsel %vm448_vm5, %v1942_v53, %v1944_v30 }
 0x258   :  { %6630 = vmatmul.mubr.msk.bf16.vlgmr.msra.gmra.mrb[64].mxu0 %vm1634_vm11, %v7231_v35  ;;  %6376 = vmatprep.subr.msk.bf16.mxu0 %vm1638_vm10, %v1950_v57  ;;  %v1962_v17 = vsel %vm1638_vm10, %v1949_v56, 0 }
 0x259   :  { %2012 = vmatpush1.bf16.msra.mxu0 %v1962_v17  ;;  %2043 = vmatprep.mubr.bf16.mxu0 %v8576_v2 }
 0x25a   :  { %v1934_v58 = vpop.permute.xlu0 %1933  ;;  %v2102_v59 = vpop.permute.xlu1 %2101 }
 0x25c   :  { %6375 = vmatmul.mubr.msk.bf16.vlgmr.msra.gmra.mrb[64].mxu1 %vm1634_vm11, %v1934_v58 }
 0x25d   :  { %6635 = vmatprep.mubr.msk.bf16.mxu1 %vm6850_vm4, %v8578_v44 }
 0x25e   :  { %v2100_v60 = vpop.permute.xlu0 %2099  ;;  %v1946_v61 = vpop.permute.xlu1 %1945 }
 0x25f   :  { %v1951_v15 = vsel %vm448_vm5, %v1944_v30, %v1946_v61  ;;  %v2111_v21 = vsel %vm132_vm2, %v2100_v60, %v2102_v59 }
 0x260   :  { %v1968_v35 = vsel %vm1638_vm10, %v1951_v15, 0  ;;  %6377 = vmatmul.mubr.msk.bf16.vlgmr.msra.gmra.mrb[68].mxu0 %vm1634_vm11, %v1934_v58  ;;  %v2120_v3 = vsel %vm1638_vm10, %v2111_v21, 0 }
 0x261   :  { %6634 = vmatpush3.bf16.msra.mxu1 %v1968_v35  ;;  %2166 = vmatprep.mubr.bf16.mxu0 %v8576_v2 }
 0x262   :  { %v2104_v62 = vpop.permute.xlu0 %2103  ;;  %v2098_v18 = vpop.permute.xlu1 %2097 }
 0x263   :  { %v2112_v63 = vsel %vm132_vm2, %v2102_v59, %v2104_v62 }
 0x264   :  { %6636 = vmatmul.mubr.msk.bf16.vlgmr.msra.gmra.mrb[68].mxu1 %vm1634_vm11, %v1934_v58  ;;  %6379 = vmatprep.subr.msk.bf16.mxu0 %vm1638_vm10, %v2112_v63 }
 0x265   :  { %2135 = vmatpush1.bf16.msra.mxu0 %v2120_v3  ;;  %2207 = vmatprep.mubr.bf16.mxu1 %v8576_v2 }
 0x266   :  { %v2106_v5 = vpop.permute.xlu0 %2105  ;;  %v2108_v11 = vpop.permute.xlu1 %2107  ;;  %6639 = vmatprep.subr.bf16.mxu0 %v8578_v44 }
 0x267   :  { %v2113_v16 = vsel %vm132_vm2, %v2104_v62, %v2106_v5  ;;  %v2114_v23 = vsel %vm132_vm2, %v2106_v5, %v2108_v11 }
 0x268   :  { %6380 = vmatmul.mubr.msk.bf16.vlgmr.msra.gmra.mrb[72].mxu0 %vm1634_vm11, %v2098_v18  ;;  %6381 = vmatprep.subr.msk.bf16.mxu1 %vm1638_vm10, %v2114_v23  ;;  %v2126_v24 = vsel %vm1638_vm10, %v2113_v16, 0 }
 0x269   :  { %2176 = vmatpush1.bf16.msra.mxu1 %v2126_v24  ;;  %6641 = vmatprep.mubr.msk.bf16.mxu0 %vm6850_vm4, %v8578_v44 }
 0x26a   :  { %v2110_v25 = vpop.permute.xlu0 %2109  ;;  %6384 = vmatprep.subr.msk.bf16.mxu1 %vm1638_vm10, %v7281_v9  ;;  %v2262_v26 = vpop.permute.xlu1 %2261  ;;  %v2273_v9 = vsel %vm1638_vm10, %v7277_v48, 0 }
 0x26b   :  { %v2115_v28 = vsel %vm132_vm2, %v2108_v11, %v2110_v25 }
 0x26c   :  { %v2132_v31 = vsel %vm1638_vm10, %v2115_v28, 0  ;;  %6382 = vmatmul.mubr.msk.bf16.vlgmr.msra.gmra.mrb[72].mxu1 %vm1634_vm11, %v2098_v18 }
 0x26d   :  { %6640 = vmatpush3.bf16.msra.mxu0 %v2132_v31  ;;  %2282 = vmatpush1.bf16.msra.mxu1 %v2267_v32 }
 0x26e   :  { %v2429_v33 = vpop.permute.xlu0 %2428  ;;  %6386 = vmatprep.subr.msk.bf16.mxu0 %vm1638_vm10, %v7296_v54  ;;  %v2431_v1 = vpop.permute.xlu1 %2430  ;;  %2313 = vmatprep.mubr.bf16.mxu1 %v8576_v2  ;;  %v2279_v54 = vsel %vm1638_vm10, %v7307_v13, 0 }
 0x26f   :  { %6645 = vmatprep.subr.bf16.mxu1 %v8578_v44  ;;  %v2440_v38 = vsel %vm926_vm6, %v2429_v33, %v2431_v1 }
 0x270   :  { %6642 = vmatmul.mubr.msk.bf16.vlgmr.msra.gmra.mrb[76].mxu0 %vm1634_vm11, %v2098_v18  ;;  %v2449_v40 = vsel %vm1638_vm10, %v2440_v38, 0 }
 0x271   :  { %2323 = vmatpush1.bf16.msra.mxu0 %v2273_v9  ;;  %2354 = vmatprep.mubr.bf16.mxu0 %v8576_v2 }
 0x272   :  { %v2433_v41 = vpop.permute.xlu0 %2432  ;;  %v2421_v36 = vpop.permute.xlu1 %2420 }
 0x273   :  { %v2441_v37 = vsel %vm926_vm6, %v2431_v1, %v2433_v41 }
 0x274   :  { %6385 = vmatmul.mubr.msk.bf16.vlgmr.msra.gmra.mrb[76].mxu1 %vm1634_vm11, %v2262_v26  ;;  %6389 = vmatprep.subr.msk.bf16.mxu0 %vm1638_vm10, %v2441_v37 }
 0x275   :  { %6646 = vmatpush3.bf16.msra.mxu1 %v2279_v54  ;;  %6647 = vmatprep.mubr.msk.bf16.mxu1 %vm6850_vm4, %v8578_v44 }
 0x276   :  { %v2435_v48 = vpop.permute.xlu0 %2434  ;;  %v2595_v39 = vpop.permute.xlu1 %2594 }
 0x277   :  { %v2442_v42 = vsel %vm926_vm6, %v2433_v41, %v2435_v48 }
 0x278   :  { %6387 = vmatmul.mubr.msk.bf16.vlgmr.msra.gmra.mrb[80].mxu0 %vm1634_vm11, %v2262_v26  ;;  %v2455_v47 = vsel %vm1638_vm10, %v2442_v42, 0 }
 0x279   :  { %2464 = vmatpush1.bf16.msra.mxu0 %v2449_v40  ;;  %2495 = vmatprep.mubr.bf16.mxu0 %v8576_v2 }
 0x27a   :  { %v2439_v13 = vpop.permute.xlu0 %2438  ;;  %v2437_v45 = vpop.permute.xlu1 %2436  ;;  %6651 = vmatprep.subr.bf16.mxu0 %v8578_v44 }
 0x27b   :  { %v2443_v46 = vsel %vm926_vm6, %v2435_v48, %v2437_v45  ;;  %v2444_v49 = vsel %vm926_vm6, %v2437_v45, %v2439_v13 }
 0x27c   :  { %6648 = vmatmul.mubr.msk.bf16.vlgmr.msra.gmra.mrb[80].mxu1 %vm1634_vm11, %v2262_v26  ;;  %6391 = vmatprep.subr.msk.bf16.mxu1 %vm1638_vm10, %v2443_v46  ;;  %v2461_v56 = vsel %vm1638_vm10, %v2444_v49, 0 }
 0x27d   :  { %2505 = vmatpush1.bf16.msra.mxu1 %v2455_v47  ;;  %2536 = vmatprep.mubr.bf16.mxu1 %v8576_v2 }
 0x27e   :  { %v2597_v52 = vpop.permute.xlu0 %2596  ;;  %v2599_v53 = vpop.permute.xlu1 %2598 }
 0x27f   :  { %v2607_v30 = vsel %vm1093_vm7, %v2597_v52, %v2599_v53  ;;  %v2606_v57 = vsel %vm1093_vm7, %v2595_v39, %v2597_v52 }
 0x280   :  { %6390 = vmatmul.mubr.msk.bf16.vlgmr.msra.gmra.mrb[84].mxu0 %vm1634_vm11, %v2421_v36  ;;  %6395 = vmatprep.subr.msk.bf16.mxu1 %vm1638_vm10, %v2607_v30  ;;  %v2615_v59 = vsel %vm1638_vm10, %v2606_v57, 0 }
 0x281   :  { %6652 = vmatpush3.bf16.msra.mxu0 %v2461_v56  ;;  %6653 = vmatprep.mubr.msk.bf16.mxu0 %vm6850_vm4, %v8578_v44 }
 0x282   :  { %v2601_v17 = vpop.permute.xlu0 %2600  ;;  %v2605_v58 = vpop.permute.xlu1 %2604 }
 0x283   :  { %v2608_v60 = vsel %vm1093_vm7, %v2599_v53, %v2601_v17  ;;  %v7577_v53 = vld [vmem:[%s8570_s2 + $0x10] sm:$0xff] }
 0x284   :  { %6392 = vmatmul.mubr.msk.bf16.vlgmr.msra.gmra.mrb[84].mxu1 %vm1634_vm11, %v2421_v36  ;;  %v2621_v21 = vsel %vm1638_vm10, %v2608_v60, 0  ;;  %v7581_v30 = vcombine.low %v7577_v53, %v7577_v53 }
 0x285   :  { %2630 = vmatpush1.bf16.msra.mxu1 %v2615_v59  ;;  %2661 = vmatprep.mubr.bf16.mxu1 %v8576_v2 }
 0x286   :  { %v2593_v61 = vpop.permute.xlu0 %2592  ;;  %v2603_v15 = vpop.permute.xlu1 %2602  ;;  %6657 = vmatprep.subr.bf16.mxu1 %v8578_v44  ;;  %3130 = vrot.lane.b32.xlu0 %v7581_v30, %s6833_s19 }
 0x287   :  { %v2609_v35 = vsel %vm1093_vm7, %v2601_v17, %v2603_v15  ;;  %v2610_v62 = vsel %vm1093_vm7, %v2603_v15, %v2605_v58 }
 0x288   :  { %6654 = vmatmul.mubr.msk.bf16.vlgmr.msra.gmra.mrb[88].mxu0 %vm1634_vm11, %v2421_v36  ;;  %6397 = vmatprep.subr.msk.bf16.mxu0 %vm1638_vm10, %v2609_v35  ;;  %v2627_v3 = vsel %vm1638_vm10, %v2610_v62, 0 }
 0x289   :  { %2671 = vmatpush1.bf16.msra.mxu0 %v2621_v21  ;;  %2702 = vmatprep.mubr.bf16.mxu0 %v8576_v2 }
 0x28a   :  { %v2759_v18 = vpop.permute.xlu0 %2758  ;;  %v2761_v63 = vpop.permute.xlu1 %2760 }
 0x28b   :  { %v2770_v5 = vsel %vm1258_vm8, %v2759_v18, %v2761_v63 }
 0x28c   :  { %6396 = vmatmul.mubr.msk.bf16.vlgmr.msra.gmra.mrb[88].mxu1 %vm1634_vm11, %v2593_v61  ;;  %v2779_v24 = vsel %vm1638_vm10, %v2770_v5, 0 }
 0x28d   :  { %6658 = vmatpush3.bf16.msra.mxu1 %v2627_v3  ;;  %6659 = vmatprep.mubr.msk.bf16.mxu1 %vm6850_vm4, %v8578_v44 }
 0x28e   :  { %v2763_v11 = vpop.permute.xlu0 %2762  ;;  %v2757_v16 = vpop.permute.xlu1 %2756 }
 0x28f   :  { %v2771_v23 = vsel %vm1258_vm8, %v2761_v63, %v2763_v11 }
 0x290   :  { %6398 = vmatmul.mubr.msk.bf16.vlgmr.msra.gmra.mrb[92].mxu0 %vm1634_vm11, %v2593_v61  ;;  %6400 = vmatprep.subr.msk.bf16.mxu0 %vm1638_vm10, %v2771_v23 }
 0x291   :  { %2794 = vmatpush1.bf16.msra.mxu0 %v2779_v24  ;;  %2825 = vmatprep.mubr.bf16.mxu0 %v8576_v2 }
 0x292   :  { %v2765_v25 = vpop.permute.xlu0 %2764  ;;  %v2767_v26 = vpop.permute.xlu1 %2766  ;;  %6663 = vmatprep.subr.bf16.mxu0 %v8578_v44 }
 0x293   :  { %v2772_v28 = vsel %vm1258_vm8, %v2763_v11, %v2765_v25  ;;  %v2773_v31 = vsel %vm1258_vm8, %v2765_v25, %v2767_v26 }
 0x294   :  { %6660 = vmatmul.mubr.msk.bf16.vlgmr.msra.gmra.mrb[92].mxu1 %vm1634_vm11, %v2593_v61  ;;  %6402 = vmatprep.subr.msk.bf16.mxu1 %vm1638_vm10, %v2773_v31  ;;  %v2785_v32 = vsel %vm1638_vm10, %v2772_v28, 0 }
 0x295   :  { %2835 = vmatpush1.bf16.msra.mxu1 %v2785_v32  ;;  %2866 = vmatprep.mubr.bf16.mxu1 %v8576_v2 }
 0x296   :  { %v2769_v33 = vpop.permute.xlu0 %2768  ;;  %v2923_v1 = vpop.permute.xlu1 %2922 }
 0x297   :  { %v2774_v9 = vsel %vm1258_vm8, %v2767_v26, %v2769_v33 }
 0x298   :  { %v2791_v41 = vsel %vm1638_vm10, %v2774_v9, 0  ;;  %6401 = vmatmul.mubr.msk.bf16.vlgmr.msra.gmra.mrb[96].mxu0 %vm1634_vm11, %v2757_v16 }
 0x299   :  { %6664 = vmatpush3.bf16.msra.mxu0 %v2791_v41  ;;  %6665 = vmatprep.mubr.msk.bf16.mxu0 %vm6850_vm4, %v8578_v44 }
 0x29a   :  { %v2925_v36 = vpop.permute.xlu0 %2924  ;;  %v2927_v37 = vpop.permute.xlu1 %2926 }
 0x29b   :  { %v2934_v54 = vsel %vm1423_vm9, %v2923_v1, %v2925_v36  ;;  %v2935_v38 = vsel %vm1423_vm9, %v2925_v36, %v2927_v37 }
 0x29c   :  { %6403 = vmatmul.mubr.msk.bf16.vlgmr.msra.gmra.mrb[96].mxu1 %vm1634_vm11, %v2757_v16  ;;  %6405 = vmatprep.subr.msk.bf16.mxu1 %vm1638_vm10, %v2935_v38  ;;  %v2943_v48 = vsel %vm1638_vm10, %v2934_v54, 0 }
 0x29d   :  { %2958 = vmatpush1.bf16.msra.mxu1 %v2943_v48  ;;  %2989 = vmatprep.mubr.bf16.mxu1 %v8576_v2 }
 0x29e   :  { %v2929_v39 = vpop.permute.xlu0 %2928  ;;  %v2931_v40 = vpop.permute.xlu1 %2930  ;;  %6669 = vmatprep.subr.bf16.mxu1 %v8578_v44 }
 0x29f   :  { %v2936_v42 = vsel %vm1423_vm9, %v2927_v37, %v2929_v39  ;;  %v2937_v13 = vsel %vm1423_vm9, %v2929_v39, %v2931_v40 }
 0x2a0   :  { %6666 = vmatmul.mubr.msk.bf16.vlgmr.msra.gmra.mrb[100].mxu0 %vm1634_vm11, %v2757_v16  ;;  %6407 = vmatprep.subr.msk.bf16.mxu0 %vm1638_vm10, %v2937_v13  ;;  %v2949_v45 = vsel %vm1638_vm10, %v2936_v42, 0 }
 0x2a1   :  { %2999 = vmatpush1.bf16.msra.mxu0 %v2949_v45  ;;  %3030 = vmatprep.mubr.bf16.mxu0 %v8576_v2 }
 0x2a2   :  { %v2933_v46 = vpop.permute.xlu1 %2932  ;;  %v2921_v47 = vpop.permute.xlu0 %2920 }
 0x2a3   :  { %v2938_v49 = vsel %vm1423_vm9, %v2931_v40, %v2933_v46 }
 0x2a4   :  { %v2955_v52 = vsel %vm1638_vm10, %v2938_v49, 0  ;;  %6406 = vmatmul.mubr.msk.bf16.vlgmr.msra.gmra.mrb[100].mxu1 %vm1634_vm11, %v2921_v47 }
 0x2a5   :  { %6670 = vmatpush3.bf16.msra.mxu1 %v2955_v52  ;;  %6671 = vmatprep.mubr.msk.bf16.mxu1 %vm6850_vm4, %v8578_v44 }
 0x2a8   :  { %6408 = vmatmul.mubr.msk.bf16.vlgmr.msra.gmra.mrb[104].mxu0 %vm1634_vm11, %v2921_v47 }
 0x2a9   :  { %3196 = vmatprep.mubr.bf16.mxu0 %v8576_v2 }
 0x2ac   :  { %6672 = vmatmul.mubr.msk.bf16.vlgmr.msra.gmra.mrb[104].mxu1 %vm1634_vm11, %v2921_v47 }
 0x2ad   :  { %3237 = vmatprep.mubr.bf16.mxu1 %v8576_v2 }
 0x317   :  { %v1688_v56 = vpop.f32.mrb[52].mxu1 }
 0x318   :  { %v1690_v57 = vpop.f32.mrb[53].mxu1 }
 0x319   :  { %v1692_v17 = vpop.f32.mrb[54].mxu1 }
 0x31a   :  { %v1693_v58 = vpop.f32.mrb[55].mxu1 }
 0x31b   :  { %v1729_v59 = vpop.f32.mrb[56].mxu0 }
 0x31c   :  { %v1731_v60 = vpop.f32.mrb[57].mxu0 }
 0x31d   :  { %v1733_v61 = vpop.f32.mrb[58].mxu0 }
 0x31e   :  { %v1734_v15 = vpop.f32.mrb[59].mxu0 }
 0x31f   :  { %v1770_v35 = vpop.f32.mrb[56].mxu1 }
 0x320   :  { %v6625_v21 = vpop.f32.mrb[57].mxu1 }
 0x321   :  { %v1773_v62 = vpop.f32.mrb[58].mxu1 }
 0x322   :  { %v6626_v18 = vpop.f32.mrb[59].mxu1 }
 0x323   :  { %v1845_v63 = vpop.f32.mrb[60].mxu0 }
 0x324   :  { %v1846_v3 = vadd.f32 %v1845_v63, %v1688_v56  ;;  %v1847_v5 = vpop.f32.mrb[61].mxu0 }
 0x325   :  { %v1848_v11 = vadd.f32 %v1847_v5, %v1690_v57  ;;  %v1849_v16 = vpop.f32.mrb[62].mxu0 }
 0x326   :  { %v1850_v23 = vpop.f32.mrb[63].mxu0 }
 0x327   :  { %v1886_v24 = vpop.f32.mrb[60].mxu1 }
 0x328   :  { %v1887_v25 = vadd.f32 %v1886_v24, %v1729_v59  ;;  %v1888_v26 = vpop.f32.mrb[61].mxu1 }
 0x329   :  { %v1889_v28 = vadd.f32 %v1888_v26, %v1731_v60  ;;  %v1890_v31 = vpop.f32.mrb[62].mxu1 }
 0x32a   :  { %v1891_v32 = vpop.f32.mrb[63].mxu1 }
 0x32b   :  { %v1927_v33 = vpop.f32.mrb[64].mxu0 }
 0x32c   :  { %v1928_v1 = vadd.f32 %v1927_v33, %v1770_v35  ;;  %v6631_v9 = vpop.f32.mrb[65].mxu0 }
 0x32d   :  { %v1930_v41 = vpop.f32.mrb[66].mxu0 }
 0x32e   :  { %v6632_v36 = vpop.f32.mrb[67].mxu0 }
 0x32f   :  { %v2004_v37 = vpop.f32.mrb[64].mxu1 }
 0x330   :  { %v2092_v54 = vadd.f32 %v2004_v37, %v1846_v3  ;;  %v2006_v38 = vpop.f32.mrb[65].mxu1 }
 0x331   :  { %v2093_v48 = vadd.f32 %v2006_v38, %v1848_v11  ;;  %v2008_v39 = vpop.f32.mrb[66].mxu1 }
 0x332   :  { %v2009_v40 = vpop.f32.mrb[67].mxu1 }
 0x333   :  { %v2045_v42 = vpop.f32.mrb[68].mxu0 }
 0x334   :  { %v2094_v13 = vadd.f32 %v2045_v42, %v1887_v25  ;;  %v2047_v45 = vpop.f32.mrb[69].mxu0 }
 0x335   :  { %v2095_v46 = vadd.f32 %v2047_v45, %v1889_v28  ;;  %v2049_v47 = vpop.f32.mrb[70].mxu0 }
 0x336   :  { %v2050_v49 = vpop.f32.mrb[71].mxu0 }
 0x337   :  { %v2086_v52 = vpop.f32.mrb[68].mxu1 }
 0x338   :  { %v2096_v56 = vadd.f32 %v2086_v52, %v1928_v1  ;;  %v6637_v57 = vpop.f32.mrb[69].mxu1 }
 0x339   :  { %v2089_v17 = vpop.f32.mrb[70].mxu1 }
 0x33a   :  { %v6638_v58 = vpop.f32.mrb[71].mxu1 }
 0x33b   :  { %v2168_v59 = vpop.f32.mrb[72].mxu0 }
 0x33c   :  { %v2256_v60 = vadd.f32 %v2168_v59, %v2092_v54  ;;  %v2170_v61 = vpop.f32.mrb[73].mxu0 }
 0x33d   :  { %v2257_v15 = vadd.f32 %v2170_v61, %v2093_v48  ;;  %v2172_v35 = vpop.f32.mrb[74].mxu0 }
 0x33e   :  { %v2173_v21 = vpop.f32.mrb[75].mxu0 }
 0x33f   :  { %v2209_v62 = vpop.f32.mrb[72].mxu1 }
 0x340   :  { %v2258_v18 = vadd.f32 %v2209_v62, %v2094_v13  ;;  %v2211_v63 = vpop.f32.mrb[73].mxu1 }
 0x341   :  { %v2259_v3 = vadd.f32 %v2211_v63, %v2095_v46  ;;  %v2213_v5 = vpop.f32.mrb[74].mxu1 }
 0x342   :  { %v2214_v11 = vpop.f32.mrb[75].mxu1 }
 0x343   :  { %v2250_v16 = vpop.f32.mrb[76].mxu0 }
 0x344   :  { %v2260_v23 = vadd.f32 %v2250_v16, %v2096_v56  ;;  %v6643_v24 = vpop.f32.mrb[77].mxu0 }
 0x345   :  { %v2253_v25 = vpop.f32.mrb[78].mxu0 }
 0x346   :  { %v6644_v26 = vpop.f32.mrb[79].mxu0 }
 0x347   :  { %v2315_v28 = vpop.f32.mrb[76].mxu1 }
 0x348   :  { %v2403_v31 = vadd.f32 %v2315_v28, %v2256_v60  ;;  %v2317_v32 = vpop.f32.mrb[77].mxu1 }
 0x349   :  { %v2404_v33 = vadd.f32 %v2317_v32, %v2257_v15  ;;  %v2319_v1 = vpop.f32.mrb[78].mxu1 }
 0x34a   :  { %v2320_v9 = vpop.f32.mrb[79].mxu1 }
 0x34b   :  { %v2356_v41 = vpop.f32.mrb[80].mxu0 }
 0x34c   :  { %v2405_v36 = vadd.f32 %v2356_v41, %v2258_v18  ;;  %v2358_v37 = vpop.f32.mrb[81].mxu0 }
 0x34d   :  { %v2406_v54 = vadd.f32 %v2358_v37, %v2259_v3  ;;  %v2360_v38 = vpop.f32.mrb[82].mxu0 }
 0x34e   :  { %v2361_v48 = vpop.f32.mrb[83].mxu0 }
 0x34f   :  { %v2397_v39 = vpop.f32.mrb[80].mxu1 }
 0x350   :  { %v2407_v40 = vadd.f32 %v2397_v39, %v2260_v23  ;;  %v6649_v42 = vpop.f32.mrb[81].mxu1 }
 0x351   :  { %v2400_v13 = vpop.f32.mrb[82].mxu1 }
 0x352   :  { %v6650_v45 = vpop.f32.mrb[83].mxu1 }
 0x353   :  { %v2497_v46 = vpop.f32.mrb[84].mxu0 }
 0x354   :  { %v2585_v47 = vadd.f32 %v2497_v46, %v2403_v31  ;;  %v2499_v49 = vpop.f32.mrb[85].mxu0 }
 0x355   :  { %v2586_v52 = vadd.f32 %v2499_v49, %v2404_v33  ;;  %v2501_v56 = vpop.f32.mrb[86].mxu0 }
 0x356   :  { %v2502_v57 = vpop.f32.mrb[87].mxu0 }
 0x357   :  { %v2538_v17 = vpop.f32.mrb[84].mxu1 }
 0x358   :  { %v2587_v58 = vadd.f32 %v2538_v17, %v2405_v36  ;;  %v2540_v59 = vpop.f32.mrb[85].mxu1 }
 0x359   :  { %v2588_v60 = vadd.f32 %v2540_v59, %v2406_v54  ;;  %v2542_v61 = vpop.f32.mrb[86].mxu1 }
 0x35a   :  { %v2543_v15 = vpop.f32.mrb[87].mxu1 }
 0x35b   :  { %v2579_v35 = vpop.f32.mrb[88].mxu0 }
 0x35c   :  { %v2589_v21 = vadd.f32 %v2579_v35, %v2407_v40  ;;  %v6655_v62 = vpop.f32.mrb[89].mxu0  ;;  %v3087_v35 = vpop.permute.xlu0 %3086 }
 0x35d   :  { %v2582_v18 = vpop.f32.mrb[90].mxu0 }
 0x35e   :  { %v6656_v63 = vpop.f32.mrb[91].mxu0 }
 0x35f   :  { %v2663_v3 = vpop.f32.mrb[88].mxu1 }
 0x360   :  { %v2751_v5 = vadd.f32 %v2663_v3, %v2585_v47  ;;  %v2665_v11 = vpop.f32.mrb[89].mxu1 }
 0x361   :  { %v2752_v16 = vadd.f32 %v2665_v11, %v2586_v52  ;;  %v2667_v23 = vpop.f32.mrb[90].mxu1 }
 0x362   :  { %v2668_v24 = vpop.f32.mrb[91].mxu1 }
 0x363   :  { %v2704_v25 = vpop.f32.mrb[92].mxu0 }
 0x364   :  { %v2753_v26 = vadd.f32 %v2704_v25, %v2587_v58  ;;  %v2706_v28 = vpop.f32.mrb[93].mxu0 }
 0x365   :  { %v2754_v31 = vadd.f32 %v2706_v28, %v2588_v60  ;;  %v2708_v32 = vpop.f32.mrb[94].mxu0 }
 0x366   :  { %v2709_v33 = vpop.f32.mrb[95].mxu0 }
 0x367   :  { %v2745_v1 = vpop.f32.mrb[92].mxu1 }
 0x368   :  { %v2755_v9 = vadd.f32 %v2745_v1, %v2589_v21  ;;  %v6661_v41 = vpop.f32.mrb[93].mxu1 }
 0x369   :  { %v2748_v36 = vpop.f32.mrb[94].mxu1 }
 0x36a   :  { %v6662_v37 = vpop.f32.mrb[95].mxu1 }
 0x36b   :  { %v2827_v54 = vpop.f32.mrb[96].mxu0 }
 0x36c   :  { %v2915_v38 = vadd.f32 %v2827_v54, %v2751_v5  ;;  %v2829_v48 = vpop.f32.mrb[97].mxu0 }
 0x36d   :  { %v2916_v39 = vadd.f32 %v2829_v48, %v2752_v16  ;;  %v2831_v40 = vpop.f32.mrb[98].mxu0 }
 0x36e   :  { %v2832_v42 = vpop.f32.mrb[99].mxu0 }
 0x36f   :  { %v2868_v13 = vpop.f32.mrb[96].mxu1 }
 0x370   :  { %v2917_v45 = vadd.f32 %v2868_v13, %v2753_v26  ;;  %v2870_v46 = vpop.f32.mrb[97].mxu1 }
 0x371   :  { %v2918_v47 = vadd.f32 %v2870_v46, %v2754_v31  ;;  %v2872_v49 = vpop.f32.mrb[98].mxu1 }
 0x372   :  { %v2873_v52 = vpop.f32.mrb[99].mxu1 }
 0x373   :  { %v2909_v56 = vpop.f32.mrb[100].mxu0 }
 0x374   :  { %v2919_v57 = vadd.f32 %v2909_v56, %v2755_v9  ;;  %v6667_v17 = vpop.f32.mrb[101].mxu0 }
 0x375   :  { %v2912_v58 = vpop.f32.mrb[102].mxu0 }
 0x376   :  { %v6668_v59 = vpop.f32.mrb[103].mxu0 }
 0x377   :  { %v2991_v60 = vpop.f32.mrb[100].mxu1 }
 0x378   :  { %v3079_v61 = vadd.f32 %v2991_v60, %v2915_v38  ;;  %v2993_v15 = vpop.f32.mrb[101].mxu1 }
 0x379   :  { %v3080_v21 = vadd.f32 %v2993_v15, %v2916_v39  ;;  %v2995_v62 = vpop.f32.mrb[102].mxu1 }
 0x37a   :  { %v3089_v18 = vadd.f32 %v3087_v35, %v3079_v61  ;;  %v2996_v63 = vpop.f32.mrb[103].mxu1 }
 0x37b   :  { %v3032_v3 = vpop.f32.mrb[104].mxu0  ;;  %v3090_v11 = vadd.f32 %v3087_v35, %v3080_v21 }
 0x37c   :  { %v3094_v5 = vmax.f32 %v3089_v18, 0.0  ;;  %v3081_v16 = vadd.f32 %v3032_v3, %v2917_v45  ;;  %v3034_v23 = vpop.f32.mrb[105].mxu0 }
 0x37d   :  { %v3082_v24 = vadd.f32 %v3034_v23, %v2918_v47  ;;  %v3036_v25 = vpop.f32.mrb[106].mxu0  ;;  %v3095_v9 = vmax.f32 %v3090_v11, 0.0 }
 0x37e   :  { %v3099_v26 = vmul.f32 %v3094_v5, %v7244_v20  ;;  %v3091_v28 = vadd.f32 %v3087_v35, %v3081_v16  ;;  %v3037_v31 = vpop.f32.mrb[107].mxu0 }
 0x37f   :  { %v3092_v32 = vadd.f32 %v3087_v35, %v3082_v24  ;;  %v3073_v33 = vpop.f32.mrb[104].mxu1  ;;  %v3100_v13 = vmul.f32 %v3095_v9, %v7248_v27 }
 0x380   :  { %v7587_v1 = vpack.c.bf16 %v3099_v26, %v7255_v7  ;;  %v3096_v41 = vmax.f32 %v3091_v28, 0.0  ;;  %v3083_v36 = vadd.f32 %v3073_v33, %v2919_v57  ;;  %v6673_v37 = vpop.f32.mrb[105].mxu1  ;;  %v7725_v57 = vld [vmem:[%s8570_s2 + $0x18] sm:$0x11] }
 0x381   :  { %v3097_v54 = vmax.f32 %v3092_v32, 0.0  ;;  %v3076_v38 = vpop.f32.mrb[106].mxu1  ;;  %v7605_v47 = vpack.c.bf16 %v3100_v13, %v7258_v6  ;;  %v6426_v6 = vcombine.high %v7577_v53, %v7577_v53  ;;  %v7734_v59 = vcombine.low %v7725_v57, %v7725_v57 }
 0x382   :  { %v3101_v48 = vmul.f32 %v3096_v41, %v7252_v34  ;;  %v3093_v39 = vadd.f32 %v3087_v35, %v3083_v36  ;;  %3140 = vrot.lane.b32.xlu1 %v7587_v1, %s6834_s0  ;;  %v6674_v40 = vpop.f32.mrb[107].mxu1 }
 0x383   :  { %v3102_v42 = vmul.f32 %v3097_v54, %v7266_v8 }
 0x384   :  { %v7595_v7 = vpack.c.bf16 %v3101_v48, %v7269_v43  ;;  %v3098_v46 = vmax.f32 %v3093_v39, 0.0 }
 0x385   :  { %v7598_v45 = vpack.c.bf16 %v3102_v42, %v7284_v50  ;;  %v3139_v50 = vpop.permute.xlu1 %3138 }
 0x386   :  { %3144 = vrot.lane.b32.xlu0 %v7595_v7, %s6834_s0  ;;  %v3103_v49 = vmul.f32 %v3098_v46, %v7288_v51 }
 0x387   :  { %3146 = vrot.lane.b32.xlu1 %v7598_v45, %s6834_s0 }
 0x388   :  { %v7613_v43 = vpack.c.bf16 %v3103_v49, %v7299_v55  ;;  %v57_v55 = vld [vmem:[%s8572_s3 + $0x10] sm:$0xff] }
 0x38a   :  { %3142 = vrot.lane.b32.xlu0 %v7605_v47, %s6834_s0 }
 0x38b   :  { %3290 = vrot.lane.b32.xlu1 %v7605_v47, %s6835_s20 }
 0x38e   :  { %3288 = vrot.lane.b32.xlu0 %v7587_v1, %s6835_s20 }
 0x38f   :  { %3148 = vrot.lane.b32.xlu1 %v7613_v43, %s6834_s0 }
 0x392   :  { %3286 = vrot.lane.b32.xlu0 %v8580_v29, %s6835_s20 }
 0x393   :  { %3292 = vrot.lane.b32.xlu1 %v7595_v7, %s6835_s20 }
 0x396   :  { %3294 = vrot.lane.b32.xlu0 %v7598_v45, %s6835_s20 }
 0x397   :  { %3439 = vrot.lane.b32.xlu1 %v7605_v47, %s6836_s21 }
 0x39a   :  { %3437 = vrot.lane.b32.xlu0 %v7587_v1, %s6836_s21 }
 0x39b   :  { %3296 = vrot.lane.b32.xlu1 %v7613_v43, %s6835_s20 }
 0x39e   :  { %3435 = vrot.lane.b32.xlu0 %v8580_v29, %s6836_s21 }
 0x39f   :  { %3441 = vrot.lane.b32.xlu1 %v7595_v7, %s6836_s21 }
 0x3a2   :  { %3443 = vrot.lane.b32.xlu0 %v7598_v45, %s6836_s21 }
 0x3a3   :  { %3433 = vrot.lane.b32.xlu1 %v7581_v30, %s6837_s22 }
 0x3a6   :  { %3593 = vrot.lane.b32.xlu0 %v7605_v47, %s6838_s23 }
 0x3a7   :  { %3591 = vrot.lane.b32.xlu1 %v7587_v1, %s6838_s23 }
 0x3aa   :  { %3445 = vrot.lane.b32.xlu0 %v7613_v43, %s6836_s21 }
 0x3ab   :  { %3589 = vrot.lane.b32.xlu1 %v8580_v29, %s6838_s23 }
 0x3ae   :  { %3587 = vrot.lane.b32.xlu0 %v7581_v30, %s6839_s24 }
 0x3af   :  { %3595 = vrot.lane.b32.xlu1 %v7595_v7, %s6838_s23 }
 0x3b2   :  { %3597 = vrot.lane.b32.xlu0 %v7598_v45, %s6838_s23 }
 0x3b3   :  { %3599 = vrot.lane.b32.xlu1 %v7613_v43, %s6838_s23 }
 0x3b6   :  { %3741 = vrot.lane.b32.xlu0 %v7581_v30, %s6840_s25 }
 0x3b7   :  { %3907 = vrot.lane.b32.xlu1 %v7605_v47, %s6841_s26 }
 0x3ba   :  { %3909 = vrot.lane.b32.xlu0 %v7595_v7, %s6841_s26 }
 0x3bb   :  { %3905 = vrot.lane.b32.xlu1 %v7587_v1, %s6841_s26 }
 0x3be   :  { %3893 = vrot.lane.b32.xlu0 %v7581_v30, %s6842_s27  ;;  %v3131_v30 = vpop.permute.xlu0 %3130 }
 0x3bf   :  { %3895 = vrot.lane.b32.xlu1 %v6426_v6, %s6842_s27 }
 0x3c2   :  { %3911 = vrot.lane.b32.xlu0 %v7598_v45, %s6841_s26 }
 0x3c3   :  { %4061 = vrot.lane.b32.xlu1 %v7605_v47, %s6843_s28 }
 0x3c6   :  { %3915 = vrot.lane.b32.xlu0 %v8580_v29, %s6841_s26 }
 0x3c7   :  { %3913 = vrot.lane.b32.xlu1 %v7613_v43, %s6841_s26 }
 0x3ca   :  { %4063 = vrot.lane.b32.xlu0 %v7595_v7, %s6843_s28 }
 0x3cb   :  { %4059 = vrot.lane.b32.xlu1 %v7587_v1, %s6843_s28 }
 0x3ce   :  { %4065 = vrot.lane.b32.xlu0 %v7598_v45, %s6843_s28 }
 0x3cf   :  { %4069 = vrot.lane.b32.xlu1 %v8580_v29, %s6843_s28 }
 0x3d2   :  { %4057 = vrot.lane.b32.xlu0 %v6426_v6, %s6844_s29 }
 0x3d3   :  { %4067 = vrot.lane.b32.xlu1 %v7613_v43, %s6843_s28 }
 0x3d6   :  { %4215 = vrot.lane.b32.xlu0 %v7605_v47, %s6845_s30 }
 0x3d7   :  { %4217 = vrot.lane.b32.xlu1 %v7595_v7, %s6845_s30 }
 0x3da   :  { %4213 = vrot.lane.b32.xlu0 %v7587_v1, %s6845_s30 }
 0x3db   :  { %4211 = vrot.lane.b32.xlu1 %v6426_v6, %s6846_s5 }
 0x3de   :  { %4219 = vrot.lane.b32.xlu0 %v7598_v45, %s6845_s30 }
 0x3df   :  { %4221 = vrot.lane.b32.xlu1 %v7613_v43, %s6845_s30 }
 0x3e2   :  { %4223 = vrot.lane.b32.xlu0 %v8580_v29, %s6845_s30 }
 0x3e3   :  { %4369 = vrot.lane.b32.xlu1 %v7605_v47, %s6847_s6 }
 0x3e6   :  { %4371 = vrot.lane.b32.xlu0 %v7595_v7, %s6847_s6 }
 0x3e7   :  { %4367 = vrot.lane.b32.xlu1 %v7587_v1, %s6847_s6 }
 0x3ea   :  { %4373 = vrot.lane.b32.xlu0 %v7598_v45, %s6847_s6 }
 0x3eb   :  { %4375 = vrot.lane.b32.xlu1 %v7613_v43, %s6847_s6 }
 0x3ee   :  { %4365 = vrot.lane.b32.xlu0 %v6426_v6, %s6848_s7 }
 0x3ef   :  { %4377 = vrot.lane.b32.xlu1 %v8580_v29, %s6847_s6 }
 0x3f2   :  { %4521 = vperm.xlu0 %6822, %v57_v55  }
 0x3f3   :  { %4593 = vrot.lane.b32.xlu1 %v7587_v1, %s6834_s0 }
 0x3f4   :  { %v3141_v52 = vpop.permute.xlu1 %3140 }
 0x3f5   :  { %v3150_v21 = vsel %vm126_vm0, %v3139_v50, %v3141_v52 }
 0x3f6   :  { %4595 = vrot.lane.b32.xlu0 %v7605_v47, %s6834_s0 }
 0x3f7   :  { %4591 = vrot.lane.b32.xlu1 %v8580_v29, %s6834_s0 }
 0x3f8   :  { %v3145_v56 = vpop.permute.xlu0 %3144 }
 0x3f9   :  { %v3147_v17 = vpop.permute.xlu1 %3146 }
 0x3fa   :  { %4597 = vrot.lane.b32.xlu0 %v7595_v7, %s6834_s0  ;;  %v3153_v58 = vsel %vm126_vm0, %v3145_v56, %v3147_v17 }
 0x3fb   :  { %4599 = vrot.lane.b32.xlu1 %v7598_v45, %s6834_s0  ;;  %3205 = vmatprep.subr.bf16.mxu1 %v3153_v58 }
 0x3fc   :  { %v3143_v60 = vpop.permute.xlu0 %3142 }
 0x3fd   :  { %v3291_v61 = vpop.permute.xlu1 %3290  ;;  %v3151_v15 = vsel %vm126_vm0, %v3141_v52, %v3143_v60  ;;  %v3152_v35 = vsel %vm126_vm0, %v3143_v60, %v3145_v56 }
 0x3fe   :  { %4603 = vrot.lane.b32.xlu0 %v8580_v29, %s6834_s0  ;;  %3164 = vmatprep.subr.bf16.mxu0 %v3151_v15 }
 0x3ff   :  { %3206 = vmatpush1.bf16.msra.mxu1 %v3152_v35  ;;  %4577 = vrot.lane.b32.xlu1 %v7734_v59, %s6833_s19 }
 0x400   :  { %3165 = vmatpush1.bf16.msra.mxu0 %v3150_v21  ;;  %v3289_v62 = vpop.permute.xlu0 %3288  ;;  %v7847_v21 = vcombine.high %v7725_v57, %v7725_v57 }
 0x401   :  { %v3149_v18 = vpop.permute.xlu1 %3148  ;;  %6675 = vmatprep.subr.bf16.mxu0 %v8578_v44  ;;  %v3299_v63 = vsel %vm288_vm3, %v3289_v62, %v3291_v61 }
 0x402   :  { %6412 = vmatmul.mubr.msk.bf16.vlgmr.msra.gmra.mrb[108].mxu1 %vm3160_vm12, %v3131_v30  ;;  %v3154_v3 = vsel %vm126_vm0, %v3147_v17, %v3149_v18  ;;  %4775 = vrot.lane.b32.xlu0 %v7605_v47, %s6835_s20 }
 0x403   :  { %6411 = vmatmul.mubr.msk.bf16.vlgmr.msra.gmra.mrb[108].mxu0 %vm3160_vm12, %v3131_v30  ;;  %3311 = vmatprep.subr.bf16.mxu1 %v3299_v63 }
 0x404   :  { %4773 = vrot.lane.b32.xlu1 %v7587_v1, %s6835_s20  ;;  %6676 = vmatpush3.bf16.msra.mxu0 %v3154_v3  ;;  %v3287_v5 = vpop.permute.xlu0 %3286 }
 0x405   :  { %v3298_v11 = vsel %vm288_vm3, %v3287_v5, %v3289_v62  ;;  %v3293_v16 = vpop.permute.xlu1 %3292  ;;  %3343 = vmatprep.mubr.bf16.mxu1 %v8576_v2  ;;  %6677 = vmatprep.mubr.msk.bf16.mxu0 %vm6850_vm4, %v8578_v44 }
 0x406   :  { %4771 = vrot.lane.b32.xlu0 %v8580_v29, %s6835_s20  ;;  %3312 = vmatpush1.bf16.msra.mxu1 %v3298_v11  ;;  %v3300_v26 = vsel %vm288_vm3, %v3291_v61, %v3293_v16 }
 0x407   :  { %6681 = vmatprep.subr.bf16.mxu1 %v8578_v44 }
 0x408   :  { %4783 = vrot.lane.b32.xlu1 %v8580_v29, %s6835_s20  ;;  %v3295_v23 = vpop.permute.xlu0 %3294 }
 0x409   :  { %v3440_v24 = vpop.permute.xlu1 %3439  ;;  %v3301_v25 = vsel %vm288_vm3, %v3293_v16, %v3295_v23 }
 0x40a   :  { %6414 = vmatmul.mubr.msk.bf16.vlgmr.msra.gmra.mrb[112].mxu1 %vm3160_vm12, %v7577_v53  ;;  %4777 = vrot.lane.b32.xlu0 %v7595_v7, %s6835_s20 }
 0x40b   :  { %6678 = vmatmul.mubr.msk.bf16.vlgmr.msra.gmra.mrb[112].mxu0 %vm3160_vm12, %v3131_v30  ;;  %3352 = vmatprep.subr.bf16.mxu0 %v3301_v25 }
 0x40c   :  { %4779 = vrot.lane.b32.xlu1 %v7598_v45, %s6835_s20  ;;  %3353 = vmatpush1.bf16.msra.mxu0 %v3300_v26  ;;  %v3438_v28 = vpop.permute.xlu0 %3437 }
 0x40d   :  { %v3297_v31 = vpop.permute.xlu1 %3296  ;;  %v3448_v32 = vsel %vm448_vm5, %v3438_v28, %v3440_v24  ;;  %3384 = vmatprep.mubr.bf16.mxu0 %v8576_v2  ;;  %6683 = vmatprep.mubr.msk.bf16.mxu1 %vm6850_vm4, %v8578_v44 }
 0x40e   :  { %v3302_v33 = vsel %vm288_vm3, %v3295_v23, %v3297_v31  ;;  %4954 = vrot.lane.b32.xlu0 %v7587_v1, %s6836_s21  ;;  %3460 = vmatprep.subr.bf16.mxu0 %v3448_v32 }
 0x40f   :  { %6682 = vmatpush3.bf16.msra.mxu1 %v3302_v33 }
 0x410   :  { %4956 = vrot.lane.b32.xlu1 %v7605_v47, %s6836_s21  ;;  %v3436_v9 = vpop.permute.xlu0 %3435 }
 0x411   :  { %v3447_v41 = vsel %vm448_vm5, %v3436_v9, %v3438_v28  ;;  %v3442_v36 = vpop.permute.xlu1 %3441 }
 0x412   :  { %4952 = vrot.lane.b32.xlu0 %v8580_v29, %s6836_s21  ;;  %6684 = vmatmul.mubr.msk.bf16.vlgmr.msra.gmra.mrb[116].mxu1 %vm3160_vm12, %v7577_v53 }
 0x413   :  { %6415 = vmatmul.mubr.msk.bf16.vlgmr.msra.gmra.mrb[116].mxu0 %vm3160_vm12, %v7577_v53  ;;  %3533 = vmatprep.mubr.bf16.mxu1 %v8576_v2  ;;  %v3449_v53 = vsel %vm448_vm5, %v3440_v24, %v3442_v36 }
 0x414   :  { %3461 = vmatpush1.bf16.msra.mxu0 %v3447_v41  ;;  %4958 = vrot.lane.b32.xlu1 %v7595_v7, %s6836_s21  ;;  %v3444_v37 = vpop.permute.xlu0 %3443 }
 0x415   :  { %v3434_v54 = vpop.permute.xlu1 %3433  ;;  %v3450_v38 = vsel %vm448_vm5, %v3442_v36, %v3444_v37  ;;  %3492 = vmatprep.mubr.bf16.mxu0 %v8576_v2  ;;  %6687 = vmatprep.subr.bf16.mxu0 %v8578_v44 }
 0x416   :  { %4960 = vrot.lane.b32.xlu0 %v7598_v45, %s6836_s21  ;;  %3501 = vmatprep.subr.bf16.mxu1 %v3450_v38 }
 0x417   :  { %3502 = vmatpush1.bf16.msra.mxu1 %v3449_v53 }
 0x418   :  { %4964 = vrot.lane.b32.xlu1 %v8580_v29, %s6836_s21  ;;  %v3594_v48 = vpop.permute.xlu0 %3593 }
 0x419   :  { %v3592_v39 = vpop.permute.xlu1 %3591 }
 0x41a   :  { %4950 = vrot.lane.b32.xlu0 %v7734_v59, %s6837_s22  ;;  %6418 = vmatmul.mubr.msk.bf16.vlgmr.msra.gmra.mrb[120].mxu1 %vm3160_vm12, %v3434_v54  ;;  %v3602_v40 = vsel %vm132_vm2, %v3592_v39, %v3594_v48 }
 0x41b   :  { %6417 = vmatmul.mubr.msk.bf16.vlgmr.msra.gmra.mrb[120].mxu0 %vm3160_vm12, %v3434_v54  ;;  %3614 = vmatprep.subr.bf16.mxu1 %v3602_v40 }
 0x41c   :  { %5142 = vrot.lane.b32.xlu1 %v7605_v47, %s6838_s23  ;;  %v3446_v42 = vpop.permute.xlu0 %3445  ;;  %6689 = vmatprep.mubr.msk.bf16.mxu0 %vm6850_vm4, %v8578_v44 }
 0x41d   :  { %v3451_v13 = vsel %vm448_vm5, %v3444_v37, %v3446_v42  ;;  %v3590_v46 = vpop.permute.xlu1 %3589  ;;  %3646 = vmatprep.mubr.bf16.mxu1 %v8576_v2 }
 0x41e   :  { %v3601_v49 = vsel %vm132_vm2, %v3590_v46, %v3592_v39  ;;  %5140 = vrot.lane.b32.xlu0 %v7587_v1, %s6838_s23  ;;  %6688 = vmatpush3.bf16.msra.mxu0 %v3451_v13 }
 0x41f   :  { %3615 = vmatpush1.bf16.msra.mxu1 %v3601_v49 }
 0x420   :  { %5138 = vrot.lane.b32.xlu1 %v8580_v29, %s6838_s23  ;;  %v3588_v6 = vpop.permute.xlu0 %3587  ;;  %6693 = vmatprep.subr.bf16.mxu1 %v8578_v44 }
 0x421   :  { %v3596_v50 = vpop.permute.xlu1 %3595 }
 0x422   :  { %5150 = vrot.lane.b32.xlu0 %v8580_v29, %s6838_s23  ;;  %6420 = vmatmul.mubr.msk.bf16.vlgmr.msra.gmra.mrb[124].mxu1 %vm3160_vm12, %v3588_v6  ;;  %v3603_v17 = vsel %vm132_vm2, %v3594_v48, %v3596_v50 }
 0x423   :  { %6690 = vmatmul.mubr.msk.bf16.vlgmr.msra.gmra.mrb[124].mxu0 %vm3160_vm12, %v3434_v54  ;;  %6695 = vmatprep.mubr.msk.bf16.mxu1 %vm6850_vm4, %v8578_v44 }
 0x424   :  { %5144 = vrot.lane.b32.xlu1 %v7595_v7, %s6838_s23  ;;  %v3598_v55 = vpop.permute.xlu0 %3597  ;;  %3687 = vmatprep.mubr.bf16.mxu0 %v8576_v2 }
 0x425   :  { %v3600_v30 = vpop.permute.xlu1 %3599  ;;  %v3604_v52 = vsel %vm132_vm2, %v3596_v50, %v3598_v55 }
 0x426   :  { %v3605_v56 = vsel %vm132_vm2, %v3598_v55, %v3600_v30  ;;  %5146 = vrot.lane.b32.xlu0 %v7598_v45, %s6838_s23  ;;  %3655 = vmatprep.subr.bf16.mxu0 %v3604_v52 }
 0x427   :  { %3656 = vmatpush1.bf16.msra.mxu0 %v3603_v17  ;;  %6694 = vmatpush3.bf16.msra.mxu1 %v3605_v56 }
 0x428   :  { %5136 = vrot.lane.b32.xlu1 %v7734_v59, %s6839_s24  ;;  %v3742_v58 = vpop.permute.xlu0 %3741  ;;  %3746 = vmatprep.subr.bf16.mxu0 %v7605_v47 }
 0x429   :  { %3787 = vmatprep.subr.bf16.mxu1 %v7598_v45  ;;  %v3908_v60 = vpop.permute.xlu1 %3907 }
 0x42a   :  { %5322 = vrot.lane.b32.xlu0 %v7734_v59, %s6840_s25  ;;  %6696 = vmatmul.mubr.msk.bf16.vlgmr.msra.gmra.mrb[128].mxu1 %vm3160_vm12, %v3588_v6 }
 0x42b   :  { %6421 = vmatmul.mubr.msk.bf16.vlgmr.msra.gmra.mrb[128].mxu0 %vm3160_vm12, %v3588_v6  ;;  %3788 = vmatpush1.bf16.msra.mxu1 %v7595_v7 }
 0x42c   :  { %5520 = vrot.lane.b32.xlu1 %v7605_v47, %s6841_s26  ;;  %3747 = vmatpush1.bf16.msra.mxu0 %v7587_v1  ;;  %v3910_v61 = vpop.permute.xlu0 %3909 }
 0x42d   :  { %v3906_v15 = vpop.permute.xlu1 %3905  ;;  %v3918_v35 = vsel %vm926_vm6, %v3908_v60, %v3910_v61  ;;  %3778 = vmatprep.mubr.bf16.mxu0 %v8576_v2  ;;  %3819 = vmatprep.mubr.bf16.mxu1 %v8576_v2 }
 0x42e   :  { %5522 = vrot.lane.b32.xlu0 %v7595_v7, %s6841_s26  ;;  %3930 = vmatprep.subr.bf16.mxu1 %v3918_v35  ;;  %v3917_v63 = vsel %vm926_vm6, %v3906_v15, %v3908_v60 }
 0x42f   :  { %6699 = vmatprep.subr.bf16.mxu0 %v8578_v44 }
 0x430   :  { %5518 = vrot.lane.b32.xlu1 %v7587_v1, %s6841_s26  ;;  %v3894_v62 = vpop.permute.xlu0 %3893 }
 0x431   :  { %v3896_v18 = vpop.permute.xlu1 %3895 }
 0x432   :  { %5503 = vrot.lane.b32.xlu0 %v7847_v21, %s6842_s27  ;;  %6424 = vmatmul.mubr.msk.bf16.vlgmr.msra.gmra.mrb[132].mxu1 %vm3160_vm12, %v3742_v58  ;;  %v3898_v11 = vsel %vm1634_vm11, %v3894_v62, %v3896_v18 }
 0x433   :  { %6423 = vmatmul.mubr.msk.bf16.vlgmr.msra.gmra.mrb[132].mxu0 %vm3160_vm12, %v3742_v58  ;;  %3931 = vmatpush1.bf16.msra.mxu1 %v3917_v63 }
 0x434   :  { %6700 = vmatpush3.bf16.msra.mxu0 %v7613_v43  ;;  %5524 = vrot.lane.b32.xlu1 %v7598_v45, %s6841_s26  ;;  %v3912_v57 = vpop.permute.xlu0 %3911 }
 0x435   :  { %v4062_v3 = vpop.permute.xlu1 %4061  ;;  %6701 = vmatprep.mubr.msk.bf16.mxu0 %vm6850_vm4, %v8578_v44  ;;  %3962 = vmatprep.mubr.bf16.mxu1 %v8576_v2  ;;  %v3919_v25 = vsel %vm926_vm6, %v3910_v61, %v3912_v57 }
 0x436   :  { %4601 = vrot.lane.b32.xlu0 %v7613_v43, %s6834_s0  ;;  %6705 = vmatprep.subr.bf16.mxu1 %v8578_v44 }
 0x438   :  { %5501 = vrot.lane.b32.xlu1 %v7734_v59, %s6842_s27  ;;  %v3916_v5 = vpop.permute.xlu0 %3915 }
 0x439   :  { %v3914_v16 = vpop.permute.xlu1 %3913 }
 0x43a   :  { %4781 = vrot.lane.b32.xlu0 %v7613_v43, %s6835_s20  ;;  %6427 = vmatmul.mubr.msk.bf16.vlgmr.msra.gmra.mrb[136].mxu1 %vm3160_vm12, %v3898_v11  ;;  %v3920_v23 = vsel %vm926_vm6, %v3912_v57, %v3914_v16  ;;  %v3921_v24 = vsel %vm926_vm6, %v3914_v16, %v3916_v5 }
 0x43b   :  { %6702 = vmatmul.mubr.msk.bf16.vlgmr.msra.gmra.mrb[136].mxu0 %vm3160_vm12, %v3742_v58  ;;  %3971 = vmatprep.subr.bf16.mxu0 %v3920_v23 }
 0x43c   :  { %4962 = vrot.lane.b32.xlu1 %v7613_v43, %s6836_s21  ;;  %6706 = vmatpush3.bf16.msra.mxu1 %v3921_v24  ;;  %v4064_v59 = vpop.permute.xlu0 %4063 }
 0x43d   :  { %3972 = vmatpush1.bf16.msra.mxu0 %v3919_v25  ;;  %v4060_v26 = vpop.permute.xlu1 %4059  ;;  %v4072_v28 = vsel %vm1093_vm7, %v4062_v3, %v4064_v59  ;;  %4003 = vmatprep.mubr.bf16.mxu0 %v8576_v2 }
 0x43e   :  { %5148 = vrot.lane.b32.xlu0 %v7613_v43, %s6838_s23  ;;  %4084 = vmatprep.subr.bf16.mxu0 %v4072_v28  ;;  %v4071_v33 = vsel %vm1093_vm7, %v4060_v26, %v4062_v3 }
 0x43f   :  { %6707 = vmatprep.mubr.msk.bf16.mxu1 %vm6850_vm4, %v8578_v44 }
 0x440   :  { %v4066_v31 = vpop.permute.xlu0 %4065 }
 0x441   :  { %v4070_v32 = vpop.permute.xlu1 %4069  ;;  %v4073_v37 = vsel %vm1093_vm7, %v4064_v59, %v4066_v31 }
 0x442   :  { %5526 = vrot.lane.b32.xlu0 %v7613_v43, %s6841_s26  ;;  %6708 = vmatmul.mubr.msk.bf16.vlgmr.msra.gmra.mrb[140].mxu1 %vm3160_vm12, %v3898_v11 }
 0x443   :  { %6428 = vmatmul.mubr.msk.bf16.vlgmr.msra.gmra.mrb[140].mxu0 %vm3160_vm12, %v3898_v11  ;;  %4157 = vmatprep.mubr.bf16.mxu1 %v8576_v2 }
 0x444   :  { %4085 = vmatpush1.bf16.msra.mxu0 %v4071_v33  ;;  %v4058_v9 = vpop.permute.xlu0 %4057  ;;  %4116 = vmatprep.mubr.bf16.mxu0 %v8576_v2 }
 0x445   :  { %v4068_v41 = vpop.permute.xlu1 %4067  ;;  %6711 = vmatprep.subr.bf16.mxu0 %v8578_v44 }
 0x446   :  { %v4074_v36 = vsel %vm1093_vm7, %v4066_v31, %v4068_v41  ;;  %v4075_v48 = vsel %vm1093_vm7, %v4068_v41, %v4070_v32 }
 0x447   :  { %4125 = vmatprep.subr.bf16.mxu1 %v4074_v36 }
 0x448   :  { %v4216_v54 = vpop.permute.xlu0 %4215  ;;  %4126 = vmatpush1.bf16.msra.mxu1 %v4073_v37 }
 0x449   :  { %v4218_v38 = vpop.permute.xlu1 %4217 }
 0x44a   :  { %v4226_v53 = vsel %vm1258_vm8, %v4216_v54, %v4218_v38 }
 0x44b   :  { %6430 = vmatmul.mubr.msk.bf16.vlgmr.msra.gmra.mrb[144].mxu0 %vm3160_vm12, %v4058_v9  ;;  %6431 = vmatmul.mubr.msk.bf16.vlgmr.msra.gmra.mrb[144].mxu1 %vm3160_vm12, %v4058_v9 }
 0x44c   :  { %6712 = vmatpush3.bf16.msra.mxu0 %v4075_v48  ;;  %4238 = vmatprep.subr.bf16.mxu1 %v4226_v53  ;;  %v4214_v39 = vpop.permute.xlu0 %4213 }
 0x44d   :  { %v4225_v40 = vsel %vm1258_vm8, %v4214_v39, %v4216_v54  ;;  %v4212_v42 = vpop.permute.xlu1 %4211  ;;  %6713 = vmatprep.mubr.msk.bf16.mxu0 %vm6850_vm4, %v8578_v44  ;;  %4270 = vmatprep.mubr.bf16.mxu1 %v8576_v2 }
 0x44e   :  { %4239 = vmatpush1.bf16.msra.mxu1 %v4225_v40 }
 0x44f   :  { %6717 = vmatprep.subr.bf16.mxu1 %v8578_v44 }
 0x450   :  { %v4220_v13 = vpop.permute.xlu0 %4219 }
 0x451   :  { %v4222_v46 = vpop.permute.xlu1 %4221  ;;  %v4227_v50 = vsel %vm1258_vm8, %v4218_v38, %v4220_v13 }
 0x452   :  { %v4228_v49 = vsel %vm1258_vm8, %v4220_v13, %v4222_v46 }
 0x453   :  { %6714 = vmatmul.mubr.msk.bf16.vlgmr.msra.gmra.mrb[148].mxu0 %vm3160_vm12, %v4058_v9  ;;  %6433 = vmatmul.mubr.msk.bf16.vlgmr.msra.gmra.mrb[148].mxu1 %vm3160_vm12, %v4212_v42 }
 0x454   :  { %4279 = vmatprep.subr.bf16.mxu0 %v4228_v49  ;;  %v4224_v6 = vpop.permute.xlu0 %4223  ;;  %4311 = vmatprep.mubr.bf16.mxu0 %v8576_v2 }
 0x455   :  { %v4229_v55 = vsel %vm1258_vm8, %v4222_v46, %v4224_v6  ;;  %4280 = vmatpush1.bf16.msra.mxu0 %v4227_v50  ;;  %v4370_v30 = vpop.permute.xlu1 %4369  ;;  %6719 = vmatprep.mubr.msk.bf16.mxu1 %vm6850_vm4, %v8578_v44 }
 0x456   :  { %6718 = vmatpush3.bf16.msra.mxu1 %v4229_v55 }
 0x458   :  { %v4372_v52 = vpop.permute.xlu0 %4371 }
 0x459   :  { %v4368_v56 = vpop.permute.xlu1 %4367  ;;  %v4380_v17 = vsel %vm1423_vm9, %v4370_v30, %v4372_v52 }
 0x45a   :  { %v4379_v58 = vsel %vm1423_vm9, %v4368_v56, %v4370_v30  ;;  %4392 = vmatprep.subr.bf16.mxu0 %v4380_v17 }
 0x45b   :  { %6434 = vmatmul.mubr.msk.bf16.vlgmr.msra.gmra.mrb[152].mxu0 %vm3160_vm12, %v4212_v42  ;;  %6720 = vmatmul.mubr.msk.bf16.vlgmr.msra.gmra.mrb[152].mxu1 %vm3160_vm12, %v4212_v42 }
 0x45c   :  { %4393 = vmatpush1.bf16.msra.mxu0 %v4379_v58  ;;  %v4374_v60 = vpop.permute.xlu0 %4373  ;;  %4424 = vmatprep.mubr.bf16.mxu0 %v8576_v2 }
 0x45d   :  { %v4376_v61 = vpop.permute.xlu1 %4375  ;;  %4465 = vmatprep.mubr.bf16.mxu1 %v8576_v2  ;;  %6723 = vmatprep.subr.bf16.mxu0 %v8578_v44  ;;  %v4381_v35 = vsel %vm1423_vm9, %v4372_v52, %v4374_v60 }
 0x45e   :  { %v4382_v15 = vsel %vm1423_vm9, %v4374_v60, %v4376_v61 }
 0x45f   :  { %4433 = vmatprep.subr.bf16.mxu1 %v4382_v15 }
 0x460   :  { %4434 = vmatpush1.bf16.msra.mxu1 %v4381_v35  ;;  %v4366_v62 = vpop.permute.xlu0 %4365 }
 0x461   :  { %v4378_v18 = vpop.permute.xlu1 %4377 }
 0x462   :  { %v4383_v63 = vsel %vm1423_vm9, %v4376_v61, %v4378_v18 }
 0x463   :  { %6436 = vmatmul.mubr.msk.bf16.vlgmr.msra.gmra.mrb[156].mxu0 %vm3160_vm12, %v4366_v62  ;;  %6437 = vmatmul.mubr.msk.bf16.vlgmr.msra.gmra.mrb[156].mxu1 %vm3160_vm12, %v4366_v62 }
 0x464   :  { %6724 = vmatpush3.bf16.msra.mxu0 %v4383_v63  ;;  %6725 = vmatprep.mubr.msk.bf16.mxu0 %vm6850_vm4, %v8578_v44 }
 0x465   :  { %v4594_v57 = vpop.permute.xlu1 %4593  ;;  %4681 = vmatprep.mubr.bf16.mxu1 %v8576_v2 }
 0x469   :  { %v4592_v3 = vpop.permute.xlu1 %4591 }
 0x46a   :  { %v4615_v25 = vsel %vm126_vm0, %v4592_v3, %v4594_v57 }
 0x46b   :  { %6726 = vmatmul.mubr.msk.bf16.vlgmr.msra.gmra.mrb[160].mxu0 %vm3160_vm12, %v4366_v62 }
 0x46c   :  { %4722 = vmatprep.mubr.bf16.mxu0 %v8576_v2 }
 0x46d   :  { %v7928_v5 = vpop.permute.xlu1 %4599 }
 0x471   :  { %v7930_v11 = vpop.permute.xlu0 %4521  ;;  %v7932_v16 = vpop.permute.xlu1 %4577 }
 0x475   :  { %v4596_v23 = vpop.permute.xlu0 %4595 }
 0x476   :  { %v7934_v24 = vpop.permute.xlu1 %4773  ;;  %v4616_v59 = vsel %vm126_vm0, %v4594_v57, %v4596_v23 }
 0x477   :  { %4649 = vmatprep.subr.bf16.mxu1 %v4616_v59 }
 0x478   :  { %4650 = vmatpush1.bf16.msra.mxu1 %v4615_v25 }
 0x479   :  { %v4598_v26 = vpop.permute.xlu0 %4597 }
 0x47a   :  { %v7938_v28 = vpop.permute.xlu1 %4783  ;;  %v4618_v31 = vsel %vm126_vm0, %v4598_v26, %v7928_v5  ;;  %v4617_v32 = vsel %vm126_vm0, %v4596_v23, %v4598_v26 }
 0x47b   :  { %4690 = vmatprep.subr.bf16.mxu0 %v4618_v31 }
 0x47c   :  { %4691 = vmatpush1.bf16.msra.mxu0 %v4617_v32 }
 0x47d   :  { %v7943_v33 = vpop.permute.xlu0 %4603 }
 0x47e   :  { %v7945_v9 = vpop.permute.xlu1 %4779 }
 0x481   :  { %v7947_v41 = vpop.permute.xlu0 %4775 }
 0x482   :  { %v4957_v36 = vpop.permute.xlu1 %4956 }
 0x485   :  { %v4772_v37 = vpop.permute.xlu0 %4771 }
 0x486   :  { %v7951_v54 = vsel %vm288_vm3, %v4772_v37, %v7934_v24  ;;  %v4959_v38 = vpop.permute.xlu1 %4958 }
 0x487   :  { %v7954_v53 = vsel %vm448_vm5, %v4957_v36, %v4959_v38 }
 0x489   :  { %v7956_v48 = vpop.permute.xlu0 %4777 }
 0x48a   :  { %v7958_v39 = vpop.permute.xlu1 %4964  ;;  %v7963_v40 = vsel %vm288_vm3, %v7956_v48, %v7945_v9 }
 0x48d   :  { %v4955_v42 = vpop.permute.xlu0 %4954 }
 0x48e   :  { %v5143_v13 = vpop.permute.xlu1 %5142  ;;  %v7966_v46 = vsel %vm448_vm5, %v4955_v42, %v4957_v36 }
 0x491   :  { %v4953_v49 = vpop.permute.xlu0 %4952 }
 0x492   :  { %v7969_v6 = vsel %vm448_vm5, %v4953_v49, %v4955_v42  ;;  %v5139_v50 = vpop.permute.xlu1 %5138 }
 0x495   :  { %v7971_v55 = vpop.permute.xlu0 %4960 }
 0x496   :  { %v5145_v30 = vpop.permute.xlu1 %5144  ;;  %v7975_v52 = vsel %vm448_vm5, %v4959_v38, %v7971_v55 }
 0x497   :  { %v7978_v56 = vsel %vm132_vm2, %v5143_v13, %v5145_v30 }
 0x499   :  { %v7980_v17 = vpop.permute.xlu0 %4950 }
 0x49a   :  { %v7982_v58 = vpop.permute.xlu1 %5136 }
 0x49d   :  { %v5141_v60 = vpop.permute.xlu0 %5140 }
 0x49e   :  { %v7985_v61 = vsel %vm132_vm2, %v5139_v50, %v5141_v60  ;;  %v5521_v15 = vpop.permute.xlu1 %5520  ;;  %v7988_v35 = vsel %vm132_vm2, %v5141_v60, %v5143_v13 }
 0x4a1   :  { %v7990_v62 = vpop.permute.xlu0 %5150 }
 0x4a2   :  { %v5519_v18 = vpop.permute.xlu1 %5518 }
 0x4a3   :  { %v7993_v63 = vsel %vm926_vm6, %v5519_v18, %v5521_v15 }
 0x4a4   :  { %8597 = vst [vmem:[#allocation9_spill] sm:$0xff] %v7993_v63 }
 0x4a5   :  { %v5147_v57 = vpop.permute.xlu0 %5146 }
 0x4a6   :  { %v7996_v3 = vsel %vm132_vm2, %v5145_v30, %v5147_v57  ;;  %v8000_v59 = vpop.permute.xlu1 %5524 }
 0x4a7   :  { %8599 = vst [vmem:[#allocation11_spill] sm:$0xff] %v8000_v59 }
 0x4a9   :  { %v7998_v23 = vpop.permute.xlu0 %5322 }
 0x4aa   :  { %8598 = vst [vmem:[#allocation10_spill] sm:$0xff] %v7998_v23  ;;  %v5502_v32 = vpop.permute.xlu1 %5501 }
 0x4ad   :  { %v5523_v25 = vpop.permute.xlu0 %5522 }
 0x4ae   :  { %v8004_v26 = vsel %vm926_vm6, %v5523_v25, %v8000_v59  ;;  %v8007_v31 = vsel %vm926_vm6, %v5521_v15, %v5523_v25 }
 0x4af   :  { %8600 = vst [vmem:[#allocation12_spill] sm:$0xff] %v8004_v26  ;;  %8601 = vst [vmem:[#allocation13_spill] sm:$0xff] %v8007_v31 }
 0x4b1   :  { %v5504_v36 = vpop.permute.xlu0 %5503 }
 0x4b2   :  { %v8010_v37 = vsel %vm1634_vm11, %v5502_v32, %v5504_v36 }
 0x4b3   :  { %8602 = vst [vmem:[#allocation14_spill] sm:$0xff] %v8010_v37 }
 0x4b5   :  { %v8012_v38 = vpop.permute.xlu0 %4601 }
 0x4b9   :  { %v8014_v42 = vpop.permute.xlu0 %4781 }
 0x4bd   :  { %v5149_v13 = vpop.permute.xlu0 %5148 }
 0x4be   :  { %v8017_v49 = vsel %vm132_vm2, %v5147_v57, %v5149_v13 }
 0x4bf   :  { %8603 = vst [vmem:[#allocation15_spill] sm:$0xff] %v8017_v49 }
 0x4d5   :  { %v3239_v50 = vpop.f32.mrb[108].mxu1 }
 0x4d6   :  { %v3198_v30 = vpop.f32.mrb[108].mxu0  ;;  %v3241_v60 = vpop.f32.mrb[109].mxu1 }
 0x4d7   :  { %v3200_v18 = vpop.f32.mrb[109].mxu0  ;;  %v3243_v0 = vpop.f32.mrb[110].mxu1 }
 0x4d8   :  { %v3202_v15 = vpop.f32.mrb[110].mxu0  ;;  %v3244_v25 = vpop.f32.mrb[111].mxu1 }
 0x4d9   :  { %v3203_v2 = vpop.f32.mrb[111].mxu0 }
 0x4dd   :  { %v3345_v44 = vpop.f32.mrb[112].mxu1 }
 0x4de   :  { %v3346_v29 = vadd.f32 %v3345_v44, %v3198_v30  ;;  %v3280_v32 = vpop.f32.mrb[112].mxu0  ;;  %v3347_v36 = vpop.f32.mrb[113].mxu1 }
 0x4df   :  { %v3348_v22 = vadd.f32 %v3347_v36, %v3200_v18  ;;  %v6679_v19 = vpop.f32.mrb[113].mxu0  ;;  %v3349_v4 = vpop.f32.mrb[114].mxu1 }
 0x4e0   :  { %v3283_v12 = vpop.f32.mrb[114].mxu0  ;;  %v3350_v14 = vpop.f32.mrb[115].mxu1 }
 0x4e1   :  { %v6680_v10 = vpop.f32.mrb[115].mxu0 }
 0x4e5   :  { %v3427_v57 = vpop.f32.mrb[116].mxu1 }
 0x4e6   :  { %v3386_v13 = vpop.f32.mrb[116].mxu0  ;;  %v3428_v26 = vadd.f32 %v3427_v57, %v3280_v32  ;;  %v6685_v37 = vpop.f32.mrb[117].mxu1 }
 0x4e7   :  { %v3387_v59 = vadd.f32 %v3386_v13, %v3239_v50  ;;  %v3388_v63 = vpop.f32.mrb[117].mxu0  ;;  %v3430_v0 = vpop.f32.mrb[118].mxu1 }
 0x4e8   :  { %v3389_v15 = vadd.f32 %v3388_v63, %v3241_v60  ;;  %v3390_v25 = vpop.f32.mrb[118].mxu0  ;;  %v6686_v2 = vpop.f32.mrb[119].mxu1 }
 0x4e9   :  { %v3391_v23 = vpop.f32.mrb[119].mxu0 }
 0x4ed   :  { %v3535_v44 = vpop.f32.mrb[120].mxu1 }
 0x4ee   :  { %v3494_v30 = vpop.f32.mrb[120].mxu0  ;;  %v3584_v31 = vadd.f32 %v3535_v44, %v3387_v59  ;;  %v3537_v18 = vpop.f32.mrb[121].mxu1 }
 0x4ef   :  { %v3582_v19 = vadd.f32 %v3494_v30, %v3346_v29  ;;  %v3496_v4 = vpop.f32.mrb[121].mxu0  ;;  %v3585_v12 = vadd.f32 %v3537_v18, %v3389_v15  ;;  %v3539_v14 = vpop.f32.mrb[122].mxu1 }
 0x4f0   :  { %v3583_v10 = vadd.f32 %v3496_v4, %v3348_v22  ;;  %v3498_v36 = vpop.f32.mrb[122].mxu0  ;;  %v3540_v49 = vpop.f32.mrb[123].mxu1 }
 0x4f1   :  { %v3499_v32 = vpop.f32.mrb[123].mxu0 }
 0x4f5   :  { %v3648_v37 = vpop.f32.mrb[124].mxu1 }
 0x4f6   :  { %v3576_v50 = vpop.f32.mrb[124].mxu0  ;;  %v3736_v57 = vadd.f32 %v3648_v37, %v3582_v19  ;;  %v3650_v13 = vpop.f32.mrb[125].mxu1 }
 0x4f7   :  { %v3586_v63 = vadd.f32 %v3576_v50, %v3428_v26  ;;  %v6691_v60 = vpop.f32.mrb[125].mxu0  ;;  %v3737_v0 = vadd.f32 %v3650_v13, %v3583_v10  ;;  %v3652_v23 = vpop.f32.mrb[126].mxu1 }
 0x4f8   :  { %v3579_v25 = vpop.f32.mrb[126].mxu0  ;;  %v3653_v2 = vpop.f32.mrb[127].mxu1 }
 0x4f9   :  { %v6692_v59 = vpop.f32.mrb[127].mxu0 }
 0x4fd   :  { %v3730_v44 = vpop.f32.mrb[128].mxu1 }
 0x4fe   :  { %v3689_v29 = vpop.f32.mrb[128].mxu0  ;;  %v3740_v30 = vadd.f32 %v3730_v44, %v3586_v63  ;;  %v6697_v15 = vpop.f32.mrb[129].mxu1 }
 0x4ff   :  { %v3738_v18 = vadd.f32 %v3689_v29, %v3584_v31  ;;  %v3691_v22 = vpop.f32.mrb[129].mxu0  ;;  %v3733_v4 = vpop.f32.mrb[130].mxu1 }
 0x500   :  { %v3739_v49 = vadd.f32 %v3691_v22, %v3585_v12  ;;  %v3693_v14 = vpop.f32.mrb[130].mxu0  ;;  %v6698_v36 = vpop.f32.mrb[131].mxu1 }
 0x501   :  { %v3694_v32 = vpop.f32.mrb[131].mxu0 }
 0x505   :  { %v3821_v19 = vpop.f32.mrb[132].mxu1 }
 0x506   :  { %v3780_v37 = vpop.f32.mrb[132].mxu0  ;;  %v3870_v26 = vadd.f32 %v3821_v19, %v3738_v18  ;;  %v3823_v50 = vpop.f32.mrb[133].mxu1 }
 0x507   :  { %v3868_v10 = vadd.f32 %v3780_v37, %v3736_v57  ;;  %v3782_v13 = vpop.f32.mrb[133].mxu0  ;;  %v3871_v60 = vadd.f32 %v3823_v50, %v3739_v49  ;;  %v3825_v23 = vpop.f32.mrb[134].mxu1 }
 0x508   :  { %v3869_v25 = vadd.f32 %v3782_v13, %v3737_v0  ;;  %v3784_v2 = vpop.f32.mrb[134].mxu0  ;;  %v3826_v59 = vpop.f32.mrb[135].mxu1 }
 0x509   :  { %v3785_v63 = vpop.f32.mrb[135].mxu0 }
 0x50d   :  { %v3964_v44 = vpop.f32.mrb[136].mxu1 }
 0x50e   :  { %v3862_v31 = vpop.f32.mrb[136].mxu0  ;;  %v4052_v29 = vadd.f32 %v3964_v44, %v3868_v10  ;;  %v3966_v15 = vpop.f32.mrb[137].mxu1 }
 0x50f   :  { %v3872_v12 = vadd.f32 %v3862_v31, %v3740_v30  ;;  %v6703_v22 = vpop.f32.mrb[137].mxu0  ;;  %v4053_v4 = vadd.f32 %v3966_v15, %v3869_v25  ;;  %v3968_v14 = vpop.f32.mrb[138].mxu1 }
 0x510   :  { %v3865_v36 = vpop.f32.mrb[138].mxu0  ;;  %v3969_v32 = vpop.f32.mrb[139].mxu1 }
 0x511   :  { %v6704_v18 = vpop.f32.mrb[139].mxu0 }
 0x515   :  { %v4046_v19 = vpop.f32.mrb[140].mxu1 }
 0x516   :  { %v4005_v57 = vpop.f32.mrb[140].mxu0  ;;  %v4056_v37 = vadd.f32 %v4046_v19, %v3872_v12  ;;  %v6709_v49 = vpop.f32.mrb[141].mxu1 }
 0x517   :  { %v4054_v50 = vadd.f32 %v4005_v57, %v3870_v26  ;;  %v4007_v0 = vpop.f32.mrb[141].mxu0  ;;  %v4049_v13 = vpop.f32.mrb[142].mxu1 }
 0x518   :  { %v4055_v23 = vadd.f32 %v4007_v0, %v3871_v60  ;;  %v4009_v2 = vpop.f32.mrb[142].mxu0  ;;  %v6710_v59 = vpop.f32.mrb[143].mxu1 }
 0x519   :  { %v4010_v63 = vpop.f32.mrb[143].mxu0 }
 0x51e   :  { %v4118_v10 = vpop.f32.mrb[144].mxu0  ;;  %v4159_v44 = vpop.f32.mrb[144].mxu1 }
 0x51f   :  { %v4206_v30 = vadd.f32 %v4118_v10, %v4052_v29  ;;  %v4120_v31 = vpop.f32.mrb[145].mxu0  ;;  %v4208_v25 = vadd.f32 %v4159_v44, %v4054_v50  ;;  %v4161_v15 = vpop.f32.mrb[145].mxu1 }
 0x520   :  { %v4207_v22 = vadd.f32 %v4120_v31, %v4053_v4  ;;  %v4122_v14 = vpop.f32.mrb[146].mxu0  ;;  %v4209_v36 = vadd.f32 %v4161_v15, %v4055_v23  ;;  %v4163_v32 = vpop.f32.mrb[146].mxu1 }
 0x521   :  { %v4123_v18 = vpop.f32.mrb[147].mxu0  ;;  %v4164_v12 = vpop.f32.mrb[147].mxu1 }
 0x526   :  { %v4200_v19 = vpop.f32.mrb[148].mxu0  ;;  %v4272_v26 = vpop.f32.mrb[148].mxu1 }
 0x527   :  { %v4210_v57 = vadd.f32 %v4200_v19, %v4056_v37  ;;  %v6715_v49 = vpop.f32.mrb[149].mxu0  ;;  %v4360_v60 = vadd.f32 %v4272_v26, %v4206_v30  ;;  %v4274_v0 = vpop.f32.mrb[149].mxu1 }
 0x528   :  { %v4203_v13 = vpop.f32.mrb[150].mxu0  ;;  %v4361_v2 = vadd.f32 %v4274_v0, %v4207_v22  ;;  %v4276_v59 = vpop.f32.mrb[150].mxu1 }
 0x529   :  { %v6716_v63 = vpop.f32.mrb[151].mxu0  ;;  %v4277_v29 = vpop.f32.mrb[151].mxu1 }
 0x52e   :  { %v4313_v10 = vpop.f32.mrb[152].mxu0  ;;  %v4354_v50 = vpop.f32.mrb[152].mxu1 }
 0x52f   :  { %v4362_v44 = vadd.f32 %v4313_v10, %v4208_v25  ;;  %v4315_v4 = vpop.f32.mrb[153].mxu0  ;;  %v4364_v31 = vadd.f32 %v4354_v50, %v4210_v57  ;;  %v6721_v23 = vpop.f32.mrb[153].mxu1 }
 0x530   :  { %v4363_v15 = vadd.f32 %v4315_v4, %v4209_v36  ;;  %v4317_v14 = vpop.f32.mrb[154].mxu0  ;;  %v4357_v32 = vpop.f32.mrb[154].mxu1 }
 0x531   :  { %v4318_v18 = vpop.f32.mrb[155].mxu0  ;;  %v6722_v12 = vpop.f32.mrb[155].mxu1 }
 0x536   :  { %v4426_v37 = vpop.f32.mrb[156].mxu0  ;;  %v4467_v19 = vpop.f32.mrb[156].mxu1 }
 0x537   :  { %v4514_v30 = vadd.f32 %v4426_v37, %v4360_v60  ;;  %v4428_v26 = vpop.f32.mrb[157].mxu0  ;;  %v4516_v49 = vadd.f32 %v4467_v19, %v4362_v44  ;;  %v4469_v22 = vpop.f32.mrb[157].mxu1 }
 0x538   :  { %v4515_v0 = vadd.f32 %v4428_v26, %v4361_v2  ;;  %v4517_v13 = vadd.f32 %v4469_v22, %v4363_v15  ;;  %v4430_v59 = vpop.f32.mrb[158].mxu0  ;;  %v4471_v63 = vpop.f32.mrb[158].mxu1  ;;  %v8604_v22 = vmov 0.0|0.0  }
 0x539   :  { %v4524_v25 = vadd.f32 %v7930_v11, %v4514_v30  ;;  %v4526_v57 = vadd.f32 %v7930_v11, %v4516_v49  ;;  %v4431_v29 = vpop.f32.mrb[159].mxu0  ;;  %v4472_v36 = vpop.f32.mrb[159].mxu1 }
 0x53a   :  { %v58_v36 = vld [vmem:[%s8572_s3 + $0x18] sm:$0x1] }
 0x53b   :  { %v4529_v10 = vmax.f32 %v4524_v25, 0.0  ;;  %v4531_v50 = vmax.f32 %v4526_v57, 0.0 }
 0x53d   :  { %v4534_v4 = vmul.f32 %v4529_v10, %v7244_v20  ;;  %v4536_v60 = vmul.f32 %v4531_v50, %v7252_v34  ;;  %v4525_v20 = vadd.f32 %v7930_v11, %v4515_v0  ;;  %v8153_v0 = vpop.permute.xlu0 %5526 }
 0x53e   :  { %v4508_v23 = vpop.f32.mrb[160].mxu0 }
 0x53f   :  { %v8022_v14 = vpack.c.bf16 %v4534_v4, %v4534_v4  ;;  %v4518_v44 = vadd.f32 %v4508_v23, %v4364_v31  ;;  %v6727_v2 = vpop.f32.mrb[161].mxu0  ;;  %v8029_v18 = vpack.c.bf16 %v4536_v60, %v4536_v60  ;;  %v4530_v34 = vmax.f32 %v4525_v20, 0.0 }
 0x540   :  { %v4511_v15 = vpop.f32.mrb[162].mxu0  ;;  %v4527_v31 = vadd.f32 %v7930_v11, %v4517_v13 }
 0x541   :  { %4785 = vrot.lane.b32.xlu0 %v8022_v14, %s6835_s20  ;;  %4605 = vrot.lane.b32.xlu1 %v8022_v14, %s6834_s0  ;;  %v6728_v32 = vpop.f32.mrb[163].mxu0  ;;  %v4535_v12 = vmul.f32 %v4530_v34, %v7248_v27  ;;  %v4528_v27 = vadd.f32 %v7930_v11, %v4518_v44 }
 0x542   :  { %v4532_v37 = vmax.f32 %v4527_v31, 0.0  ;;  %v8605_v31 = vmov 0.0  }
 0x543   :  { %v8050_v19 = vpack.c.bf16 %v4535_v12, %v4535_v12  ;;  %v4533_v49 = vmax.f32 %v4528_v27, 0.0 }
 0x544   :  { %v4537_v30 = vmul.f32 %v4532_v37, %v7266_v8 }
 0x545   :  { %4966 = vrot.lane.b32.xlu0 %v8022_v14, %s6836_s21  ;;  %4609 = vrot.lane.b32.xlu1 %v8029_v18, %s6834_s0  ;;  %v4538_v8 = vmul.f32 %v4533_v49, %v7288_v51  ;;  %v8151_v51 = vpop.permute.xlu1 %4962 }
 0x546   :  { %v8057_v26 = vpack.c.bf16 %v4537_v30, %v4537_v30  ;;  %v4796_v30 = vsel %vm288_vm3, %v7934_v24, %v7947_v41  ;;  %v8606_v24 = vmov 0  }
 0x547   :  { %v8073_v11 = vpack.c.bf16 %v4538_v8, %v4538_v8 }
 0x549   :  { %4970 = vrot.lane.b32.xlu0 %v8029_v18, %s6836_s21  ;;  %4789 = vrot.lane.b32.xlu1 %v8029_v18, %s6835_s20 }
 0x54d   :  { %5530 = vrot.lane.b32.xlu0 %v8022_v14, %s6841_s26  ;;  %5152 = vrot.lane.b32.xlu1 %v8022_v14, %s6838_s23 }
 0x551   :  { %5534 = vrot.lane.b32.xlu0 %v8029_v18, %s6841_s26  ;;  %5156 = vrot.lane.b32.xlu1 %v8029_v18, %s6838_s23 }
 0x555   :  { %4607 = vrot.lane.b32.xlu0 %v8050_v19, %s6834_s0  ;;  %4787 = vrot.lane.b32.xlu1 %v8050_v19, %s6835_s20 }
 0x559   :  { %4968 = vrot.lane.b32.xlu1 %v8050_v19, %s6836_s21  ;;  %4611 = vrot.lane.b32.xlu0 %v8057_v26, %s6834_s0 }
 0x55d   :  { %4972 = vrot.lane.b32.xlu1 %v8057_v26, %s6836_s21  ;;  %4791 = vrot.lane.b32.xlu0 %v8057_v26, %s6835_s20 }
 0x561   :  { %5532 = vrot.lane.b32.xlu1 %v8050_v19, %s6841_s26  ;;  %5154 = vrot.lane.b32.xlu0 %v8050_v19, %s6838_s23 }
 0x565   :  { %5158 = vrot.lane.b32.xlu0 %v8057_v26, %s6838_s23  ;;  %4613 = vrot.lane.b32.xlu1 %v8073_v11, %s6834_s0 }
 0x569   :  { %5536 = vrot.lane.b32.xlu0 %v8057_v26, %s6841_s26  ;;  %5528 = vrot.lane.b32.xlu1 %v8604_v22, %s6841_s26 }
 0x56d   :  { %5540 = vrot.lane.b32.xlu0 %v8604_v22, %s6841_s26  ;;  %4793 = vrot.lane.b32.xlu1 %v8073_v11, %s6835_s20 }
 0x571   :  { %5708 = vrot.lane.b32.xlu0 %v7595_v7, %s6843_s28  ;;  %5706 = vrot.lane.b32.xlu1 %v7605_v47, %s6843_s28 }
 0x575   :  { %4974 = vrot.lane.b32.xlu0 %v8073_v11, %s6836_s21  ;;  %5704 = vrot.lane.b32.xlu1 %v7587_v1, %s6843_s28 }
 0x579   :  { %5710 = vrot.lane.b32.xlu0 %v7598_v45, %s6843_s28  ;;  %5712 = vrot.lane.b32.xlu1 %v7613_v43, %s6843_s28 }
 0x57d   :  { %5716 = vrot.lane.b32.xlu0 %v8022_v14, %s6843_s28  ;;  %5718 = vrot.lane.b32.xlu1 %v8050_v19, %s6843_s28 }
 0x581   :  { %5720 = vrot.lane.b32.xlu0 %v8029_v18, %s6843_s28  ;;  %5722 = vrot.lane.b32.xlu1 %v8057_v26, %s6843_s28 }
 0x585   :  { %5714 = vrot.lane.b32.xlu0 %v8604_v22, %s6843_s28  ;;  %5160 = vrot.lane.b32.xlu1 %v8073_v11, %s6838_s23 }
 0x589   :  { %5894 = vrot.lane.b32.xlu0 %v7595_v7, %s6845_s30  ;;  %5702 = vrot.lane.b32.xlu1 %v7847_v21, %s6844_s29 }
 0x58d   :  { %5890 = vrot.lane.b32.xlu0 %v7587_v1, %s6845_s30  ;;  %5892 = vrot.lane.b32.xlu1 %v7605_v47, %s6845_s30 }
 0x591   :  { %5904 = vrot.lane.b32.xlu0 %v8050_v19, %s6845_s30  ;;  %5726 = vrot.lane.b32.xlu1 %v8604_v22, %s6843_s28 }
 0x595   :  { %5896 = vrot.lane.b32.xlu0 %v7598_v45, %s6845_s30  ;;  %5902 = vrot.lane.b32.xlu1 %v8022_v14, %s6845_s30 }
 0x599   :  { %5888 = vrot.lane.b32.xlu0 %v7847_v21, %s6846_s5  ;;  %5906 = vrot.lane.b32.xlu1 %v8029_v18, %s6845_s30 }
 0x59d   :  { %5908 = vrot.lane.b32.xlu0 %v8057_v26, %s6845_s30  ;;  %5538 = vrot.lane.b32.xlu1 %v8073_v11, %s6841_s26 }
 0x5a1   :  { %5724 = vrot.lane.b32.xlu0 %v8073_v11, %s6843_s28  ;;  %5898 = vrot.lane.b32.xlu1 %v7613_v43, %s6845_s30 }
 0x5a5   :  { %5912 = vrot.lane.b32.xlu0 %v8604_v22, %s6845_s30  ;;  %5900 = vrot.lane.b32.xlu1 %v8604_v22, %s6845_s30 }
 0x5a9   :  { %6080 = vrot.lane.b32.xlu0 %v7595_v7, %s6847_s6  ;;  %6078 = vrot.lane.b32.xlu1 %v7605_v47, %s6847_s6 }
 0x5ad   :  { %6082 = vrot.lane.b32.xlu0 %v7598_v45, %s6847_s6  ;;  %6076 = vrot.lane.b32.xlu1 %v7587_v1, %s6847_s6 }
 0x5b1   :  { %6088 = vrot.lane.b32.xlu0 %v8022_v14, %s6847_s6  ;;  %6084 = vrot.lane.b32.xlu1 %v7613_v43, %s6847_s6 }
 0x5b3   :  { %v4786_v13 = vpop.permute.xlu0 %4785  ;;  %v4606_v59 = vpop.permute.xlu1 %4605 }
 0x5b4   :  { %v4620_v60 = vsel %vm126_vm0, %v7943_v33, %v4606_v59  ;;  %v4619_v33 = vsel %vm126_vm0, %v7928_v5, %v8012_v38  ;;  %v4800_v5 = vsel %vm288_vm3, %v7938_v28, %v4786_v13 }
 0x5b5   :  { %6092 = vrot.lane.b32.xlu0 %v8029_v18, %s6847_s6  ;;  %5910 = vrot.lane.b32.xlu1 %v8073_v11, %s6845_s30  ;;  %v4635_v32 = vsel %vm1638_vm10, %v4620_v60, 0  ;;  %v6831_v60 = vld [vmem:[%s8570_s2 + $0x18] sm:$0x11] }
 0x5b7   :  { %v8163_v63 = vpop.permute.xlu0 %4966  ;;  %v4610_v25 = vpop.permute.xlu1 %4609 }
 0x5b9   :  { %6096 = vrot.lane.b32.xlu0 %v8073_v11, %s6847_s6  ;;  %6090 = vrot.lane.b32.xlu1 %v8050_v19, %s6847_s6 }
 0x5bb   :  { %v8169_v57 = vpop.permute.xlu0 %4970  ;;  %v8171_v29 = vpop.permute.xlu1 %4789 }
 0x5bd   :  { %6086 = vrot.lane.b32.xlu0 %v8604_v22, %s6847_s6  ;;  %6094 = vrot.lane.b32.xlu1 %v8057_v26, %s6847_s6 }
 0x5bf   :  { %v8180_v10 = vpop.permute.xlu0 %5530  ;;  %v8182_v50 = vpop.permute.xlu1 %5152 }
 0x5c1   :  { %6262 = vperm.xlu0 %6822, %v58_v36   ;;  %6074 = vrot.lane.b32.xlu1 %v7847_v21, %s6848_s7 }
 0x5c3   :  { %v8186_v4 = vpop.permute.xlu0 %5534  ;;  %v8188_v23 = vpop.permute.xlu1 %5156 }
 0x5c5   :  { %6098 = vrot.lane.b32.xlu1 %v8604_v22, %s6847_s6 }
 0x5c7   :  { %v4608_v44 = vpop.permute.xlu0 %4607  ;;  %v4788_v2 = vpop.permute.xlu1 %4787 }
 0x5c8   :  { %v4621_v15 = vsel %vm126_vm0, %v4606_v59, %v4608_v44  ;;  %v4622_v21 = vsel %vm126_vm0, %v4608_v44, %v4610_v25  ;;  %v4801_v38 = vsel %vm288_vm3, %v4786_v13, %v4788_v2  ;;  %v4814_v59 = vsel %vm1638_vm10, %v4800_v5, 0 }
 0x5c9   :  { %6440 = vmatprep.subr.msk.bf16.mxu1 %vm1638_vm10, %v4621_v15  ;;  %v4641_v37 = vsel %vm1638_vm10, %v4622_v21, 0 }
 0x5ca   :  { %4652 = vmatpush1.bf16.msra.mxu1 %v4635_v32 }
 0x5cb   :  { %v4612_v20 = vpop.permute.xlu0 %4611  ;;  %v8198_v34 = vpop.permute.xlu1 %4968  ;;  %6729 = vmatprep.subr.bf16.mxu1 %v8605_v31 }
 0x5cc   :  { %v4623_v12 = vsel %vm126_vm0, %v4610_v25, %v4612_v20 }
 0x5cd   :  { %6441 = vmatmul.mubr.msk.bf16.vlgmr.msra.gmra.mrb[160].mxu1 %vm4630_vm13, %v7932_v16  ;;  %6442 = vmatprep.subr.msk.bf16.mxu0 %vm1638_vm10, %v4623_v12  ;;  %v4982_v12 = vsel %vm448_vm5, %v8163_v63, %v8198_v34 }
 0x5ce   :  { %4693 = vmatpush1.bf16.msra.mxu0 %v4641_v37  ;;  %6730 = vmatpush3.bf16.msra.mxu1 %v4619_v33  ;;  %v5167_v37 = vsel %vm132_vm2, %v7990_v62, %v8182_v50 }
 0x5cf   :  { %v4792_v27 = vpop.permute.xlu0 %4791  ;;  %4828 = vmatprep.subr.bf16.mxu0 %v4796_v30  ;;  %v8212_v49 = vpop.permute.xlu1 %4972  ;;  %6731 = vmatprep.subr.bf16.mxu1 %v8605_v31  ;;  %v5181_v62 = vsel %vm1638_vm10, %v5167_v37, 0 }
 0x5d0   :  { %6733 = vmatprep.mubr.msk.bf16.mxu1 %vm6850_vm4, %v8605_v31 }
 0x5d1   :  { %6443 = vmatmul.mubr.msk.bf16.vlgmr.msra.gmra.mrb[164].mxu0 %vm4630_vm13, %v7932_v16 }
 0x5d2   :  { %4829 = vmatpush1.bf16.msra.mxu0 %v7951_v54  ;;  %4860 = vmatprep.mubr.bf16.mxu0 %v8606_v24  ;;  %v4799_v54 = vsel %vm288_vm3, %v7945_v9, %v8014_v42  ;;  %v4797_v9 = vsel %vm288_vm3, %v7947_v41, %v7956_v48  ;;  %v4802_v42 = vsel %vm288_vm3, %v4788_v2, %v8171_v29 }
 0x5d3   :  { %v8224_v8 = vpop.permute.xlu0 %5154  ;;  %6445 = vmatprep.subr.msk.bf16.mxu0 %vm1638_vm10, %v4801_v38  ;;  %v8227_v22 = vpop.permute.xlu1 %5532  ;;  %v4820_v41 = vsel %vm1638_vm10, %v4802_v42, 0  ;;  %v4981_v2 = vsel %vm448_vm5, %v7958_v39, %v8163_v63 }
 0x5d4   :  { %v4995_v63 = vsel %vm1638_vm10, %v4981_v2, 0 }
 0x5d6   :  { %4831 = vmatpush1.bf16.msra.mxu0 %v4814_v59 }
 0x5d7   :  { %v8230_v25 = vpop.permute.xlu0 %5158  ;;  %v4614_v36 = vpop.permute.xlu1 %4613  ;;  %6737 = vmatprep.subr.bf16.mxu0 %v8605_v31 }
 0x5d8   :  { %v4624_v28 = vsel %vm126_vm0, %v4612_v20, %v4614_v36  ;;  %v5170_v5 = vsel %vm132_vm2, %v8188_v23, %v8230_v25 }
 0x5d9   :  { %v4647_v13 = vsel %vm1638_vm10, %v4624_v28, 0  ;;  %6446 = vmatmul.mubr.msk.bf16.vlgmr.msra.gmra.mrb[168].mxu0 %vm4630_vm13, %v6831_v60  ;;  %v8610_v28 = vld [vmem:[#allocation9_spill] sm:$0xff] }
 0x5da   :  { %6732 = vmatpush3.bf16.msra.mxu1 %v4647_v13  ;;  %6738 = vmatpush3.bf16.msra.mxu0 %v4799_v54 }
 0x5db   :  { %v8242_v44 = vpop.permute.xlu0 %5536  ;;  %4869 = vmatprep.subr.bf16.mxu1 %v7963_v40  ;;  %v8245_v15 = vpop.permute.xlu1 %5528  ;;  %6739 = vmatprep.subr.bf16.mxu0 %v8605_v31  ;;  %v4803_v40 = vsel %vm288_vm3, %v8171_v29, %v4792_v27 }
 0x5dc   :  { %6741 = vmatprep.mubr.msk.bf16.mxu0 %vm6850_vm4, %v8605_v31 }
 0x5dd   :  { %6734 = vmatmul.mubr.msk.bf16.vlgmr.msra.gmra.mrb[164].mxu1 %vm4630_vm13, %v7932_v16 }
 0x5de   :  { %4870 = vmatpush1.bf16.msra.mxu1 %v4797_v9  ;;  %4901 = vmatprep.mubr.bf16.mxu1 %v8606_v24 }
 0x5df   :  { %v8260_v32 = vpop.permute.xlu0 %5540  ;;  %6447 = vmatprep.subr.msk.bf16.mxu1 %vm1638_vm10, %v4803_v40  ;;  %v4794_v21 = vpop.permute.xlu1 %4793  ;;  %v5546_v40 = vsel %vm926_vm6, %v8153_v0, %v8245_v15 }
 0x5e0   :  { %v4804_v20 = vsel %vm288_vm3, %v4792_v27, %v4794_v21  ;;  %v5549_v21 = vsel %vm926_vm6, %v8186_v4, %v8242_v44 }
 0x5e1   :  { %v4826_v16 = vsel %vm1638_vm10, %v4804_v20, 0  ;;  %v8613_v20 = vld [vmem:[#allocation12_spill] sm:$0xff] }
 0x5e2   :  { %4872 = vmatpush1.bf16.msra.mxu1 %v4820_v41  ;;  %6740 = vmatpush3.bf16.msra.mxu0 %v4826_v16 }
 0x5e3   :  { %v8266_v48 = vpop.permute.xlu0 %5708  ;;  %5009 = vmatprep.subr.bf16.mxu1 %v7966_v46  ;;  %5050 = vmatprep.subr.bf16.mxu0 %v7975_v52  ;;  %v8270_v29 = vpop.permute.xlu1 %5706  ;;  %v4983_v46 = vsel %vm448_vm5, %v8198_v34, %v8169_v57  ;;  %v4984_v52 = vsel %vm448_vm5, %v8169_v57, %v8212_v49  ;;  %v4980_v57 = vsel %vm448_vm5, %v7971_v55, %v8151_v51 }
 0x5e4   :  { %v5001_v34 = vsel %vm1638_vm10, %v4983_v46, 0 }
 0x5e5   :  { %6448 = vmatmul.mubr.msk.bf16.vlgmr.msra.gmra.mrb[168].mxu1 %vm4630_vm13, %v6831_v60  ;;  %6742 = vmatmul.mubr.msk.bf16.vlgmr.msra.gmra.mrb[172].mxu0 %vm4630_vm13, %v6831_v60 }
 0x5e6   :  { %5010 = vmatpush1.bf16.msra.mxu1 %v7969_v6  ;;  %5051 = vmatpush1.bf16.msra.mxu0 %v7954_v53 }
 0x5e7   :  { %v4975_v39 = vpop.permute.xlu0 %4974  ;;  %6450 = vmatprep.subr.msk.bf16.mxu1 %vm1638_vm10, %v4982_v12  ;;  %6452 = vmatprep.subr.msk.bf16.mxu0 %vm1638_vm10, %v4984_v52  ;;  %v8290_v33 = vpop.permute.xlu1 %5704  ;;  %v5729_v12 = vsel %vm1093_vm7, %v8270_v29, %v8266_v48 }
 0x5e8   :  { %5041 = vmatprep.mubr.bf16.mxu1 %v8606_v24  ;;  %5082 = vmatprep.mubr.bf16.mxu0 %v8606_v24  ;;  %v4985_v30 = vsel %vm448_vm5, %v8212_v49, %v4975_v39  ;;  %v5169_v49 = vsel %vm132_vm2, %v8224_v8, %v8188_v23  ;;  %v5728_v52 = vsel %vm1093_vm7, %v8290_v33, %v8270_v29 }
 0x5e9   :  { %v5187_v23 = vsel %vm1638_vm10, %v5169_v49, 0 }
 0x5ea   :  { %5012 = vmatpush1.bf16.msra.mxu1 %v4995_v63  ;;  %5053 = vmatpush1.bf16.msra.mxu0 %v5001_v34 }
 0x5eb   :  { %v8296_v6 = vpop.permute.xlu0 %5710  ;;  %5195 = vmatprep.subr.bf16.mxu0 %v7988_v35  ;;  %v8299_v53 = vpop.permute.xlu1 %5712  ;;  %6745 = vmatprep.subr.bf16.mxu1 %v8605_v31  ;;  %v5168_v35 = vsel %vm132_vm2, %v8182_v50, %v8224_v8  ;;  %v5007_v50 = vsel %vm1638_vm10, %v4985_v30, 0 }
 0x5ec   :  { %v5730_v39 = vsel %vm1093_vm7, %v8266_v48, %v8296_v6 }
 0x5ed   :  { %6451 = vmatmul.mubr.msk.bf16.vlgmr.msra.gmra.mrb[172].mxu1 %vm4630_vm13, %v7980_v17  ;;  %6453 = vmatmul.mubr.msk.bf16.vlgmr.msra.gmra.mrb[176].mxu0 %vm4630_vm13, %v7980_v17 }
 0x5ee   :  { %6746 = vmatpush3.bf16.msra.mxu1 %v4980_v57  ;;  %5196 = vmatpush1.bf16.msra.mxu0 %v7985_v61 }
 0x5ef   :  { %v8318_v55 = vpop.permute.xlu0 %5716  ;;  %6455 = vmatprep.subr.msk.bf16.mxu0 %vm1638_vm10, %v5168_v35  ;;  %v8321_v51 = vpop.permute.xlu1 %5718  ;;  %6747 = vmatprep.subr.bf16.mxu1 %v8605_v31 }
 0x5f0   :  { %6749 = vmatprep.mubr.msk.bf16.mxu1 %vm6850_vm4, %v8605_v31  ;;  %5227 = vmatprep.mubr.bf16.mxu0 %v8606_v24  ;;  %v5733_v63 = vsel %vm1093_vm7, %v8318_v55, %v8321_v51 }
 0x5f1   :  { %v5747_v57 = vsel %vm1638_vm10, %v5733_v63, 0 }
 0x5f2   :  { %6748 = vmatpush3.bf16.msra.mxu1 %v5007_v50  ;;  %5198 = vmatpush1.bf16.msra.mxu0 %v5181_v62 }
 0x5f3   :  { %v8329_v61 = vpop.permute.xlu0 %5720  ;;  %5236 = vmatprep.subr.bf16.mxu1 %v7996_v3  ;;  %v8332_v27 = vpop.permute.xlu1 %5722  ;;  %6753 = vmatprep.subr.bf16.mxu0 %v8605_v31  ;;  %v8607_v3 = vld [vmem:[#allocation15_spill] sm:$0xff] }
 0x5f4   :  { %v5734_v34 = vsel %vm1093_vm7, %v8321_v51, %v8329_v61  ;;  %v5735_v29 = vsel %vm1093_vm7, %v8329_v61, %v8332_v27 }
 0x5f5   :  { %6750 = vmatmul.mubr.msk.bf16.vlgmr.msra.gmra.mrb[176].mxu1 %vm4630_vm13, %v7980_v17  ;;  %6456 = vmatmul.mubr.msk.bf16.vlgmr.msra.gmra.mrb[180].mxu0 %vm4630_vm13, %v7982_v58  ;;  %v5753_v37 = vsel %vm1638_vm10, %v5735_v29, 0 }
 0x5f6   :  { %5237 = vmatpush1.bf16.msra.mxu1 %v7978_v56  ;;  %6754 = vmatpush3.bf16.msra.mxu0 %v8607_v3 }
 0x5f7   :  { %v8347_v38 = vpop.permute.xlu0 %5714  ;;  %6457 = vmatprep.subr.msk.bf16.mxu1 %vm1638_vm10, %v5170_v5  ;;  %v5161_v17 = vpop.permute.xlu1 %5160  ;;  %6755 = vmatprep.subr.bf16.mxu0 %v8605_v31 }
 0x5f8   :  { %v5171_v59 = vsel %vm132_vm2, %v8230_v25, %v5161_v17  ;;  %5268 = vmatprep.mubr.bf16.mxu1 %v8606_v24  ;;  %6757 = vmatprep.mubr.msk.bf16.mxu0 %vm6850_vm4, %v8605_v31  ;;  %v5732_v51 = vsel %vm1093_vm7, %v8299_v53, %v8347_v38 }
 0x5f9   :  { %v5193_v56 = vsel %vm1638_vm10, %v5171_v59, 0 }
 0x5fa   :  { %5239 = vmatpush1.bf16.msra.mxu1 %v5187_v23  ;;  %6756 = vmatpush3.bf16.msra.mxu0 %v5193_v56 }
 0x5fb   :  { %v8358_v8 = vpop.permute.xlu0 %5894  ;;  %5342 = vmatprep.subr.bf16.mxu1 %v7605_v47  ;;  %5383 = vmatprep.subr.bf16.mxu0 %v7598_v45  ;;  %v8362_v36 = vpop.permute.xlu1 %5702  ;;  %v5328_v47 = vsel %vm1638_vm10, %v8022_v14, 0  ;;  %v5547_v14 = vsel %vm926_vm6, %v8180_v10, %v8227_v22 }
 0x5fc   :  { %v5561_v10 = vsel %vm1638_vm10, %v5547_v14, 0 }
 0x5fd   :  { %6458 = vmatmul.mubr.msk.bf16.vlgmr.msra.gmra.mrb[180].mxu1 %vm4630_vm13, %v7982_v58  ;;  %6758 = vmatmul.mubr.msk.bf16.vlgmr.msra.gmra.mrb[184].mxu0 %vm4630_vm13, %v7982_v58  ;;  %v8608_v58 = vld [vmem:[#allocation13_spill] sm:$0xff] }
 0x5fe   :  { %5343 = vmatpush1.bf16.msra.mxu1 %v7587_v1  ;;  %5384 = vmatpush1.bf16.msra.mxu0 %v7595_v7  ;;  %v5334_v1 = vsel %vm1638_vm10, %v8029_v18, 0  ;;  %v5548_v18 = vsel %vm926_vm6, %v8227_v22, %v8186_v4  ;;  %v8611_v22 = vld [vmem:[#allocation11_spill] sm:$0xff]  ;;  %v5567_v4 = vsel %vm1638_vm10, %v5549_v21, 0 }
 0x5ff   :  { %v8370_v25 = vpop.permute.xlu0 %5890  ;;  %6460 = vmatprep.subr.msk.bf16.mxu1 %vm1638_vm10, %v8050_v19  ;;  %6462 = vmatprep.subr.msk.bf16.mxu0 %vm1638_vm10, %v8057_v26  ;;  %v8376_v45 = vpop.permute.xlu1 %5892  ;;  %v8609_v26 = vld [vmem:[#allocation10_spill] sm:$0xff]  ;;  %v5545_v60 = vsel %vm926_vm6, %v8611_v22, %v8153_v0 }
 0x600   :  { %5374 = vmatprep.mubr.bf16.mxu1 %v8606_v24  ;;  %5415 = vmatprep.mubr.bf16.mxu0 %v8606_v24  ;;  %v5915_v35 = vsel %vm1258_vm8, %v8376_v45, %v8358_v8  ;;  %v5914_v62 = vsel %vm1258_vm8, %v8370_v25, %v8376_v45 }
 0x602   :  { %5345 = vmatpush1.bf16.msra.mxu1 %v5328_v47  ;;  %5386 = vmatpush1.bf16.msra.mxu0 %v5334_v1 }
 0x603   :  { %v8384_v7 = vpop.permute.xlu0 %5904  ;;  %5575 = vmatprep.subr.bf16.mxu0 %v8608_v58  ;;  %v8387_v19 = vpop.permute.xlu1 %5726  ;;  %6761 = vmatprep.subr.bf16.mxu1 %v8605_v31 }
 0x605   :  { %6461 = vmatmul.mubr.msk.bf16.vlgmr.msra.gmra.mrb[184].mxu1 %vm4630_vm13, %v8609_v26  ;;  %6463 = vmatmul.mubr.msk.bf16.vlgmr.msra.gmra.mrb[188].mxu0 %vm4630_vm13, %v8609_v26 }
 0x606   :  { %6762 = vmatpush3.bf16.msra.mxu1 %v7613_v43  ;;  %5576 = vmatpush1.bf16.msra.mxu0 %v8610_v28  ;;  %v5340_v43 = vsel %vm1638_vm10, %v8073_v11, 0  ;;  %v8612_v11 = vld [vmem:[#allocation14_spill] sm:$0xff] }
 0x607   :  { %v8402_v54 = vpop.permute.xlu0 %5896  ;;  %6466 = vmatprep.subr.msk.bf16.mxu0 %vm1638_vm10, %v5548_v18  ;;  %v8405_v13 = vpop.permute.xlu1 %5902  ;;  %6763 = vmatprep.subr.bf16.mxu1 %v8605_v31 }
 0x608   :  { %6765 = vmatprep.mubr.msk.bf16.mxu1 %vm6850_vm4, %v8605_v31  ;;  %5607 = vmatprep.mubr.bf16.mxu0 %v8606_v24  ;;  %v5919_v50 = vsel %vm1258_vm8, %v8405_v13, %v8384_v7  ;;  %v5916_v23 = vsel %vm1258_vm8, %v8358_v8, %v8402_v54 }
 0x609   :  { %v5933_v5 = vsel %vm1638_vm10, %v5919_v50, 0 }
 0x60a   :  { %6764 = vmatpush3.bf16.msra.mxu1 %v5340_v43  ;;  %5578 = vmatpush1.bf16.msra.mxu0 %v5561_v10 }
 0x60b   :  { %v8417_v9 = vpop.permute.xlu0 %5888  ;;  %5616 = vmatprep.subr.bf16.mxu1 %v5545_v60  ;;  %v8419_v42 = vpop.permute.xlu1 %5906  ;;  %6769 = vmatprep.subr.bf16.mxu0 %v8605_v31 }
 0x60c   :  { %v5920_v61 = vsel %vm1258_vm8, %v8384_v7, %v8419_v42 }
 0x60d   :  { %6766 = vmatmul.mubr.msk.bf16.vlgmr.msra.gmra.mrb[188].mxu1 %vm4630_vm13, %v8609_v26  ;;  %6467 = vmatmul.mubr.msk.bf16.vlgmr.msra.gmra.mrb[192].mxu0 %vm4630_vm13, %v8612_v11 }
 0x60e   :  { %5617 = vmatpush1.bf16.msra.mxu1 %v8613_v20  ;;  %6770 = vmatpush3.bf16.msra.mxu0 %v5546_v40 }
 0x60f   :  { %v8433_v41 = vpop.permute.xlu0 %5908  ;;  %v5539_v16 = vpop.permute.xlu1 %5538  ;;  %6771 = vmatprep.subr.bf16.mxu0 %v8605_v31  ;;  %5648 = vmatprep.mubr.bf16.mxu1 %v8606_v24 }
 0x610   :  { %v5550_v0 = vsel %vm926_vm6, %v8242_v44, %v5539_v16  ;;  %v5551_v15 = vsel %vm926_vm6, %v5539_v16, %v8260_v32  ;;  %6773 = vmatprep.mubr.msk.bf16.mxu0 %vm6850_vm4, %v8605_v31  ;;  %v5731_v44 = vsel %vm1093_vm7, %v8296_v6, %v8299_v53  ;;  %v5921_v25 = vsel %vm1258_vm8, %v8419_v42, %v8433_v41 }
 0x611   :  { %v5573_v2 = vsel %vm1638_vm10, %v5551_v15, 0  ;;  %6468 = vmatprep.subr.msk.bf16.mxu1 %vm1638_vm10, %v5550_v0  ;;  %v5939_v1 = vsel %vm1638_vm10, %v5921_v25, 0 }
 0x612   :  { %5619 = vmatpush1.bf16.msra.mxu1 %v5567_v4  ;;  %6772 = vmatpush3.bf16.msra.mxu0 %v5573_v2 }
 0x613   :  { %v5725_v32 = vpop.permute.xlu0 %5724  ;;  %5761 = vmatprep.subr.bf16.mxu1 %v5729_v12  ;;  %5802 = vmatprep.subr.bf16.mxu0 %v5731_v44  ;;  %v5899_v46 = vpop.permute.xlu1 %5898 }
 0x614   :  { %v5736_v48 = vsel %vm1093_vm7, %v8332_v27, %v5725_v32  ;;  %v5737_v53 = vsel %vm1093_vm7, %v5725_v32, %v8387_v19  ;;  %v5917_v38 = vsel %vm1258_vm8, %v8402_v54, %v5899_v46 }
 0x615   :  { %6469 = vmatmul.mubr.msk.bf16.vlgmr.msra.gmra.mrb[192].mxu1 %vm4630_vm13, %v8612_v11  ;;  %6774 = vmatmul.mubr.msk.bf16.vlgmr.msra.gmra.mrb[196].mxu0 %vm4630_vm13, %v8612_v11  ;;  %v5759_v3 = vsel %vm1638_vm10, %v5737_v53, 0 }
 0x616   :  { %5762 = vmatpush1.bf16.msra.mxu1 %v5728_v52  ;;  %5803 = vmatpush1.bf16.msra.mxu0 %v5730_v39 }
 0x617   :  { %v5913_v33 = vpop.permute.xlu0 %5912  ;;  %6471 = vmatprep.subr.msk.bf16.mxu1 %vm1638_vm10, %v5734_v34  ;;  %6473 = vmatprep.subr.msk.bf16.mxu0 %vm1638_vm10, %v5736_v48  ;;  %v5901_v6 = vpop.permute.xlu1 %5900 }
 0x618   :  { %5793 = vmatprep.mubr.bf16.mxu1 %v8606_v24  ;;  %5834 = vmatprep.mubr.bf16.mxu0 %v8606_v24  ;;  %v5918_v56 = vsel %vm1258_vm8, %v5899_v46, %v5901_v6 }
 0x61a   :  { %5764 = vmatpush1.bf16.msra.mxu1 %v5747_v57  ;;  %5805 = vmatpush1.bf16.msra.mxu0 %v5753_v37 }
 0x61b   :  { %v6081_v30 = vpop.permute.xlu0 %6080  ;;  %5947 = vmatprep.subr.bf16.mxu0 %v5915_v35  ;;  %v6079_v55 = vpop.permute.xlu1 %6078  ;;  %6777 = vmatprep.subr.bf16.mxu1 %v8605_v31 }
 0x61c   :  { %v6101_v58 = vsel %vm1423_vm9, %v6079_v55, %v6081_v30 }
 0x61d   :  { %6472 = vmatmul.mubr.msk.bf16.vlgmr.msra.gmra.mrb[196].mxu1 %vm4630_vm13, %v8362_v36  ;;  %6474 = vmatmul.mubr.msk.bf16.vlgmr.msra.gmra.mrb[200].mxu0 %vm4630_vm13, %v8362_v36 }
 0x61e   :  { %6778 = vmatpush3.bf16.msra.mxu1 %v5732_v51  ;;  %5948 = vmatpush1.bf16.msra.mxu0 %v5914_v62 }
 0x61f   :  { %v6083_v27 = vpop.permute.xlu0 %6082  ;;  %6476 = vmatprep.subr.msk.bf16.mxu0 %vm1638_vm10, %v5920_v61  ;;  %v6077_v49 = vpop.permute.xlu1 %6076  ;;  %6779 = vmatprep.subr.bf16.mxu1 %v8605_v31 }
 0x620   :  { %6781 = vmatprep.mubr.msk.bf16.mxu1 %vm6850_vm4, %v8605_v31  ;;  %5979 = vmatprep.mubr.bf16.mxu0 %v8606_v24  ;;  %v6102_v18 = vsel %vm1423_vm9, %v6081_v30, %v6083_v27  ;;  %v6100_v28 = vsel %vm1423_vm9, %v6077_v49, %v6079_v55 }
 0x622   :  { %6780 = vmatpush3.bf16.msra.mxu1 %v5759_v3  ;;  %5950 = vmatpush1.bf16.msra.mxu0 %v5933_v5 }
 0x623   :  { %v6089_v17 = vpop.permute.xlu0 %6088  ;;  %5988 = vmatprep.subr.bf16.mxu1 %v5917_v38  ;;  %v6085_v59 = vpop.permute.xlu1 %6084  ;;  %6785 = vmatprep.subr.bf16.mxu0 %v8605_v31 }
 0x624   :  { %v6103_v19 = vsel %vm1423_vm9, %v6083_v27, %v6085_v59 }
 0x625   :  { %6782 = vmatmul.mubr.msk.bf16.vlgmr.msra.gmra.mrb[200].mxu1 %vm4630_vm13, %v8362_v36  ;;  %6477 = vmatmul.mubr.msk.bf16.vlgmr.msra.gmra.mrb[204].mxu0 %vm4630_vm13, %v8417_v9 }
 0x626   :  { %5989 = vmatpush1.bf16.msra.mxu1 %v5916_v23  ;;  %6786 = vmatpush3.bf16.msra.mxu0 %v5918_v56 }
 0x627   :  { %v6093_v45 = vpop.permute.xlu0 %6092  ;;  %v5911_v47 = vpop.permute.xlu1 %5910  ;;  %6787 = vmatprep.subr.bf16.mxu0 %v8605_v31  ;;  %6020 = vmatprep.mubr.bf16.mxu1 %v8606_v24 }
 0x628   :  { %v5922_v8 = vsel %vm1258_vm8, %v8433_v41, %v5911_v47  ;;  %v5923_v36 = vsel %vm1258_vm8, %v5911_v47, %v5913_v33  ;;  %6789 = vmatprep.mubr.msk.bf16.mxu0 %vm6850_vm4, %v8605_v31 }
 0x629   :  { %v5945_v7 = vsel %vm1638_vm10, %v5923_v36, 0  ;;  %6478 = vmatprep.subr.msk.bf16.mxu1 %vm1638_vm10, %v5922_v8 }
 0x62a   :  { %5991 = vmatpush1.bf16.msra.mxu1 %v5939_v1  ;;  %6788 = vmatpush3.bf16.msra.mxu0 %v5945_v7 }
 0x62b   :  { %6133 = vmatprep.subr.bf16.mxu1 %v6101_v58  ;;  %6174 = vmatprep.subr.bf16.mxu0 %v6103_v19  ;;  %v6091_v26 = vpop.permute.xlu1 %6090  ;;  %v6097_v14 = vpop.permute.xlu0 %6096 }
 0x62c   :  { %v6105_v54 = vsel %vm1423_vm9, %v6089_v17, %v6091_v26  ;;  %v6106_v13 = vsel %vm1423_vm9, %v6091_v26, %v6093_v45 }
 0x62d   :  { %6479 = vmatmul.mubr.msk.bf16.vlgmr.msra.gmra.mrb[204].mxu1 %vm4630_vm13, %v8417_v9  ;;  %6790 = vmatmul.mubr.msk.bf16.vlgmr.msra.gmra.mrb[208].mxu0 %vm4630_vm13, %v8417_v9  ;;  %v6119_v60 = vsel %vm1638_vm10, %v6105_v54, 0 }
 0x62e   :  { %6134 = vmatpush1.bf16.msra.mxu1 %v6100_v28  ;;  %6175 = vmatpush1.bf16.msra.mxu0 %v6102_v18 }
 0x62f   :  { %6481 = vmatprep.subr.msk.bf16.mxu1 %vm1638_vm10, %v6106_v13  ;;  %v6095_v10 = vpop.permute.xlu1 %6094  ;;  %6165 = vmatprep.mubr.bf16.mxu1 %v8606_v24  ;;  %v6087_v42 = vpop.permute.xlu0 %6086 }
 0x630   :  { %v6107_v43 = vsel %vm1423_vm9, %v6093_v45, %v6095_v10  ;;  %v6108_v22 = vsel %vm1423_vm9, %v6095_v10, %v6097_v14  ;;  %6206 = vmatprep.mubr.bf16.mxu0 %v8606_v24  ;;  %v6104_v11 = vsel %vm1423_vm9, %v6085_v59, %v6087_v42 }
 0x631   :  { %v6125_v9 = vsel %vm1638_vm10, %v6107_v43, 0  ;;  %6483 = vmatprep.subr.msk.bf16.mxu0 %vm1638_vm10, %v6108_v22 }
 0x632   :  { %6136 = vmatpush1.bf16.msra.mxu1 %v6119_v60  ;;  %6177 = vmatpush1.bf16.msra.mxu0 %v6125_v9 }
 0x633   :  { %v6075_v40 = vpop.permute.xlu1 %6074  ;;  %6793 = vmatprep.subr.bf16.mxu1 %v8605_v31 }
 0x635   :  { %6482 = vmatmul.mubr.msk.bf16.vlgmr.msra.gmra.mrb[208].mxu1 %vm4630_vm13, %v6075_v40  ;;  %6484 = vmatmul.mubr.msk.bf16.vlgmr.msra.gmra.mrb[212].mxu0 %vm4630_vm13, %v6075_v40 }
 0x636   :  { %6794 = vmatpush3.bf16.msra.mxu1 %v6104_v11  ;;  %6797 = vmatprep.mubr.msk.bf16.mxu1 %vm6850_vm4, %v8605_v31 }
 0x637   :  { %v6099_v24 = vpop.permute.xlu1 %6098  ;;  %6795 = vmatprep.subr.bf16.mxu1 %v8605_v31 }
 0x638   :  { %v6109_v21 = vsel %vm1423_vm9, %v6097_v14, %v6099_v24 }
 0x639   :  { %v6131_v20 = vsel %vm1638_vm10, %v6109_v21, 0 }
 0x63a   :  { %6796 = vmatpush3.bf16.msra.mxu1 %v6131_v20 }
 0x63d   :  { %6798 = vmatmul.mubr.msk.bf16.vlgmr.msra.gmra.mrb[212].mxu1 %vm4630_vm13, %v6075_v40 }
 0x6a0   :  { %v4683_v41 = vpop.f32.mrb[160].mxu1 }
 0x6a1   :  { %v4685_v16 = vpop.f32.mrb[161].mxu1 }
 0x6a2   :  { %v4687_v0 = vpop.f32.mrb[162].mxu1 }
 0x6a3   :  { %v4688_v15 = vpop.f32.mrb[163].mxu1 }
 0x6a4   :  { %v4724_v4 = vpop.f32.mrb[164].mxu0 }
 0x6a5   :  { %v4726_v2 = vpop.f32.mrb[165].mxu0 }
 0x6a6   :  { %v4728_v12 = vpop.f32.mrb[166].mxu0 }
 0x6a7   :  { %v4729_v44 = vpop.f32.mrb[167].mxu0 }
 0x6ac   :  { %v4862_v32 = vpop.f32.mrb[168].mxu0 }
 0x6ad   :  { %v4863_v46 = vadd.f32 %v4862_v32, %v4683_v41  ;;  %v4864_v52 = vpop.f32.mrb[169].mxu0 }
 0x6ae   :  { %v4865_v39 = vadd.f32 %v4864_v52, %v4685_v16  ;;  %v4866_v31 = vpop.f32.mrb[170].mxu0 }
 0x6af   :  { %v4867_v63 = vpop.f32.mrb[171].mxu0 }
 0x6b0   :  { %v4765_v34 = vpop.f32.mrb[164].mxu1 }
 0x6b1   :  { %v6735_v29 = vpop.f32.mrb[165].mxu1 }
 0x6b2   :  { %v4768_v48 = vpop.f32.mrb[166].mxu1 }
 0x6b3   :  { %v6736_v33 = vpop.f32.mrb[167].mxu1 }
 0x6b8   :  { %v4903_v6 = vpop.f32.mrb[168].mxu1  ;;  %v4944_v57 = vpop.f32.mrb[172].mxu0 }
 0x6b9   :  { %v4904_v37 = vadd.f32 %v4903_v6, %v4724_v4  ;;  %v4945_v35 = vadd.f32 %v4944_v57, %v4765_v34  ;;  %v4905_v30 = vpop.f32.mrb[169].mxu1  ;;  %v6743_v55 = vpop.f32.mrb[173].mxu0 }
 0x6ba   :  { %v4906_v51 = vadd.f32 %v4905_v30, %v4726_v2  ;;  %v4907_v62 = vpop.f32.mrb[170].mxu1  ;;  %v4947_v50 = vpop.f32.mrb[174].mxu0 }
 0x6bb   :  { %v4908_v61 = vpop.f32.mrb[171].mxu1  ;;  %v6744_v53 = vpop.f32.mrb[175].mxu0 }
 0x6c0   :  { %v5043_v27 = vpop.f32.mrb[172].mxu1  ;;  %v5084_v49 = vpop.f32.mrb[176].mxu0 }
 0x6c1   :  { %v5131_v5 = vadd.f32 %v5043_v27, %v4863_v46  ;;  %v5133_v3 = vadd.f32 %v5084_v49, %v4904_v37  ;;  %v5045_v38 = vpop.f32.mrb[173].mxu1  ;;  %v5086_v17 = vpop.f32.mrb[177].mxu0 }
 0x6c2   :  { %v5132_v59 = vadd.f32 %v5045_v38, %v4865_v39  ;;  %v5134_v23 = vadd.f32 %v5086_v17, %v4906_v51  ;;  %v5047_v56 = vpop.f32.mrb[174].mxu1  ;;  %v5088_v25 = vpop.f32.mrb[178].mxu0 }
 0x6c3   :  { %v5048_v45 = vpop.f32.mrb[175].mxu1  ;;  %v5089_v47 = vpop.f32.mrb[179].mxu0 }
 0x6c8   :  { %v5125_v8 = vpop.f32.mrb[176].mxu1  ;;  %v5229_v36 = vpop.f32.mrb[180].mxu0 }
 0x6c9   :  { %v5135_v1 = vadd.f32 %v5125_v8, %v4945_v35  ;;  %v5317_v7 = vadd.f32 %v5229_v36, %v5131_v5  ;;  %v6751_v58 = vpop.f32.mrb[177].mxu1  ;;  %v5231_v19 = vpop.f32.mrb[181].mxu0 }
 0x6ca   :  { %v5318_v26 = vadd.f32 %v5231_v19, %v5132_v59  ;;  %v5128_v14 = vpop.f32.mrb[178].mxu1  ;;  %v5233_v18 = vpop.f32.mrb[182].mxu0 }
 0x6cb   :  { %v6752_v28 = vpop.f32.mrb[179].mxu1  ;;  %v5234_v54 = vpop.f32.mrb[183].mxu0 }
 0x6d0   :  { %v5270_v13 = vpop.f32.mrb[180].mxu1  ;;  %v5311_v10 = vpop.f32.mrb[184].mxu0 }
 0x6d1   :  { %v5319_v43 = vadd.f32 %v5270_v13, %v5133_v3  ;;  %v5321_v22 = vadd.f32 %v5311_v10, %v5135_v1  ;;  %v5272_v60 = vpop.f32.mrb[181].mxu1  ;;  %v6759_v9 = vpop.f32.mrb[185].mxu0 }
 0x6d2   :  { %v5320_v42 = vadd.f32 %v5272_v60, %v5134_v23  ;;  %v5274_v40 = vpop.f32.mrb[182].mxu1  ;;  %v5314_v11 = vpop.f32.mrb[186].mxu0 }
 0x6d3   :  { %v5275_v24 = vpop.f32.mrb[183].mxu1  ;;  %v6760_v21 = vpop.f32.mrb[187].mxu0 }
 0x6d8   :  { %v5376_v20 = vpop.f32.mrb[184].mxu1  ;;  %v5417_v41 = vpop.f32.mrb[188].mxu0 }
 0x6d9   :  { %v5464_v16 = vadd.f32 %v5376_v20, %v5317_v7  ;;  %v5466_v0 = vadd.f32 %v5417_v41, %v5319_v43  ;;  %v5378_v15 = vpop.f32.mrb[185].mxu1  ;;  %v5419_v4 = vpop.f32.mrb[189].mxu0 }
 0x6da   :  { %v5465_v2 = vadd.f32 %v5378_v15, %v5318_v26  ;;  %v5467_v12 = vadd.f32 %v5419_v4, %v5320_v42  ;;  %v5380_v44 = vpop.f32.mrb[186].mxu1  ;;  %v5421_v32 = vpop.f32.mrb[190].mxu0 }
 0x6db   :  { %v5381_v46 = vpop.f32.mrb[187].mxu1  ;;  %v5422_v52 = vpop.f32.mrb[191].mxu0 }
 0x6dc   :  { %v6263_v15 = vpop.permute.xlu0 %6262 }
 0x6e0   :  { %v5458_v39 = vpop.f32.mrb[188].mxu1  ;;  %v5609_v31 = vpop.f32.mrb[192].mxu0 }
 0x6e1   :  { %v5468_v63 = vadd.f32 %v5458_v39, %v5321_v22  ;;  %v5697_v34 = vadd.f32 %v5609_v31, %v5464_v16  ;;  %v6767_v29 = vpop.f32.mrb[189].mxu1  ;;  %v5611_v48 = vpop.f32.mrb[193].mxu0 }
 0x6e2   :  { %v5698_v33 = vadd.f32 %v5611_v48, %v5465_v2  ;;  %v5461_v6 = vpop.f32.mrb[190].mxu1  ;;  %v5613_v57 = vpop.f32.mrb[194].mxu0 }
 0x6e3   :  { %v6768_v37 = vpop.f32.mrb[191].mxu1  ;;  %v5614_v35 = vpop.f32.mrb[195].mxu0 }
 0x6e8   :  { %v5650_v30 = vpop.f32.mrb[192].mxu1  ;;  %v5691_v55 = vpop.f32.mrb[196].mxu0 }
 0x6e9   :  { %v5699_v51 = vadd.f32 %v5650_v30, %v5466_v0  ;;  %v5701_v62 = vadd.f32 %v5691_v55, %v5468_v63  ;;  %v5652_v50 = vpop.f32.mrb[193].mxu1  ;;  %v6775_v61 = vpop.f32.mrb[197].mxu0 }
 0x6ea   :  { %v5700_v53 = vadd.f32 %v5652_v50, %v5467_v12  ;;  %v5654_v27 = vpop.f32.mrb[194].mxu1  ;;  %v5694_v49 = vpop.f32.mrb[198].mxu0  ;;  %v6852_v12 = vmov 1966171168   ;;  %v8614_v61 = vld [vmem:[#allocation4_spill] sm:$0xff] }
 0x6eb   :  { %v5655_v5 = vpop.f32.mrb[195].mxu1  ;;  %v6776_v3 = vpop.f32.mrb[199].mxu0  ;;  %v6288_v44 = vunpack.c.l.s4 %v6852_v12  ;;  %v8615_v27 = vld [vmem:[#allocation6_spill] sm:$0xff] }
 0x6ec   :  { %v8616_v5 = vld [vmem:[#allocation5_spill] sm:$0xff] }
 0x6ed   :  { %v6289_v35 = vunpack.c.0.s8 %v6288_v44 }
 0x6f0   :  { %v5795_v38 = vpop.f32.mrb[196].mxu1  ;;  %v5836_v17 = vpop.f32.mrb[200].mxu0 }
 0x6f1   :  { %v5883_v59 = vadd.f32 %v5795_v38, %v5697_v34  ;;  %v5885_v23 = vadd.f32 %v5836_v17, %v5699_v51  ;;  %v5797_v56 = vpop.f32.mrb[197].mxu1  ;;  %v5838_v25 = vpop.f32.mrb[201].mxu0  ;;  %v8617_v38 = vld [vmem:[#allocation3_spill] sm:$0xff] }
 0x6f2   :  { %v5884_v45 = vadd.f32 %v5797_v56, %v5698_v33  ;;  %v5886_v47 = vadd.f32 %v5838_v25, %v5700_v53  ;;  %v5799_v8 = vpop.f32.mrb[198].mxu1  ;;  %v5840_v36 = vpop.f32.mrb[202].mxu0  ;;  %v6292_v17 = vsub.s32 %v6289_v35, %v8617_v38 }
 0x6f3   :  { %v5800_v1 = vpop.f32.mrb[199].mxu1  ;;  %v5841_v7 = vpop.f32.mrb[203].mxu0 }
 0x6f8   :  { %v5877_v58 = vpop.f32.mrb[200].mxu1  ;;  %v5981_v19 = vpop.f32.mrb[204].mxu0 }
 0x6f9   :  { %v5887_v26 = vadd.f32 %v5877_v58, %v5701_v62  ;;  %v6069_v14 = vadd.f32 %v5981_v19, %v5883_v59  ;;  %v6783_v18 = vpop.f32.mrb[201].mxu1  ;;  %v5983_v28 = vpop.f32.mrb[205].mxu0  ;;  %v8618_v59 = vld [vmem:[#allocation7_spill] sm:$0xff] }
 0x6fa   :  { %v6070_v54 = vadd.f32 %v5983_v28, %v5884_v45  ;;  %v5880_v13 = vpop.f32.mrb[202].mxu1  ;;  %v5985_v10 = vpop.f32.mrb[206].mxu0  ;;  %v8619_v18 = vld [vmem:[#allocation8_spill] sm:$0xff] }
 0x6fb   :  { %v6784_v43 = vpop.f32.mrb[203].mxu1  ;;  %v5986_v22 = vpop.f32.mrb[207].mxu0 }
 0x6fc   :  { %v8620_v43 = vlaneseq }
 0x6fe   :  { %vm6327_vm14 = vcmp.lt.s32.totalorder %v8620_v43, 640 }
 0x700   :  { %v6022_v60 = vpop.f32.mrb[204].mxu1  ;;  %v6063_v9 = vpop.f32.mrb[208].mxu0 }
 0x701   :  { %v6071_v42 = vadd.f32 %v6022_v60, %v5885_v23  ;;  %v6073_v40 = vadd.f32 %v6063_v9, %v5887_v26  ;;  %v6024_v11 = vpop.f32.mrb[205].mxu1  ;;  %v6791_v24 = vpop.f32.mrb[209].mxu0 }
 0x702   :  { %v6072_v21 = vadd.f32 %v6024_v11, %v5886_v47  ;;  %v6026_v20 = vpop.f32.mrb[206].mxu1  ;;  %v6066_v41 = vpop.f32.mrb[210].mxu0 }
 0x703   :  { %v6027_v16 = vpop.f32.mrb[207].mxu1  ;;  %v6792_v0 = vpop.f32.mrb[211].mxu0 }
 0x708   :  { %v6167_v4 = vpop.f32.mrb[208].mxu1  ;;  %v6208_v2 = vpop.f32.mrb[212].mxu0 }
 0x709   :  { %v6255_v32 = vadd.f32 %v6167_v4, %v6069_v14  ;;  %v6257_v46 = vadd.f32 %v6208_v2, %v6071_v42  ;;  %v6169_v52 = vpop.f32.mrb[209].mxu1  ;;  %v6210_v39 = vpop.f32.mrb[213].mxu0 }
 0x70a   :  { %v6256_v31 = vadd.f32 %v6169_v52, %v6070_v54  ;;  %v6258_v63 = vadd.f32 %v6210_v39, %v6072_v21  ;;  %v6171_v34 = vpop.f32.mrb[210].mxu1  ;;  %v6212_v29 = vpop.f32.mrb[214].mxu0 }
 0x70b   :  { %v6265_v48 = vadd.f32 %v6263_v15, %v6255_v32  ;;  %v6267_v33 = vadd.f32 %v6263_v15, %v6257_v46  ;;  %v6172_v6 = vpop.f32.mrb[211].mxu1  ;;  %v6213_v57 = vpop.f32.mrb[215].mxu0 }
 0x70c   :  { %v6266_v37 = vadd.f32 %v6263_v15, %v6256_v31  ;;  %v6268_v30 = vadd.f32 %v6263_v15, %v6258_v63 }
 0x70d   :  { %v6270_v55 = vmax.f32 %v6265_v48, 0.0  ;;  %v6272_v51 = vmax.f32 %v6267_v33, 0.0 }
 0x70e   :  { %v6271_v62 = vmax.f32 %v6266_v37, 0.0  ;;  %v6273_v50 = vmax.f32 %v6268_v30, 0.0 }
 0x70f   :  { %v6275_v53 = vadd.f32 %v6270_v55, %v8614_v61  ;;  %v6277_v49 = vadd.f32 %v6272_v51, %v8615_v27 }
 0x710   :  { %v6276_v3 = vadd.f32 %v6271_v62, %v8616_v5  ;;  %v6278_v23 = vadd.f32 %v6273_v50, %v8618_v59  ;;  %v6249_v56 = vpop.f32.mrb[212].mxu1 }
 0x711   :  { %v6259_v25 = vadd.f32 %v6249_v56, %v6073_v40  ;;  %v6799_v45 = vpop.f32.mrb[213].mxu1 }
 0x712   :  { %v6285_v47 = vcombine.low %v6275_v53, %v6276_v3  ;;  %v6286_v8 = vcombine.low %v6277_v49, %v6278_v23  ;;  %v6252_v36 = vpop.f32.mrb[214].mxu1 }
 0x713   :  { %v6269_v1 = vadd.f32 %v6263_v15, %v6259_v25  ;;  %v6800_v7 = vpop.f32.mrb[215].mxu1 }
 0x714   :  { %v6293_v58 = vrot.slane %v6285_v47, %v6292_v17  ;;  %v6300_v19 = vrot.slane %v6286_v8, %v6292_v17 }
 0x715   :  { %v6274_v26 = vmax.f32 %v6269_v1, 0.0 }
 0x716   :  { %v6308_v14 = vcombine.low %v6293_v58, %v6300_v19 }
 0x717   :  { %v6279_v28 = vadd.f32 %v6274_v26, %v8619_v18 }
 0x718   :  { %v6315_v13 = vrot.slane %v6308_v14, %v6292_v17 }
 0x719   :  { %v6307_v54 = vrot.slane %v6279_v28, %v6292_v17 }
 0x71b   :  { %v6322_v10 = vrot.slane %v6307_v54, %v6292_v17 }
 0x71d   :  { %v6323_v22 = vcombine.low %v6315_v13, %v6322_v10 }
 0x71f   :  { %6329 = vst.msk [vmem:[%s8574_s4] sm:$0x1f] %vm6327_vm14, %v6323_v22 }

</bundles_post_ra>
